<compile_context>
chip_gen: v5e
topology: v5e:2x2
jax: 0.10.0
libtpu: 0.0.40
codegen_flags: <defaults>
</compile_context>

<pallas_src>
import math
import functools

import jax
import jax.numpy as jnp
from jax.experimental import pallas as pl
from jax.experimental.pallas import tpu as pltpu


_NEG_SLOPE = 0.2
_ACT_GAIN = math.sqrt(2.0)        # FusedLeakyReLU output scale
_RES_GAIN = 1.0 / math.sqrt(2.0)  # (out + skip) / sqrt(2)


# ---------------------------------------------------------------------------
# Kernel 1: 3x3 stride-1 conv (pre-scaled EqualConv2d weights) + FusedLeakyReLU.
# Input is a padded, spatially-flattened channels-last slab ("wide rows": row
# width = W+2, the 2 extra output columns per row are garbage and dropped in
# the wrapper).  The 9 taps are contiguous slices of the slab -> 9 MXU matmuls.
# ---------------------------------------------------------------------------
def _conv3x3_act_kernel(xf_ref, w_ref, b_ref, o_ref, *, n_out, row_w, k):
    # xf_ref: (1, L_in, C_in)  padded+flattened input slab
    # w_ref : (k*k, C_in, C_out) per-tap weights
    # b_ref : (1, C_out) f32 ;  o_ref: (1, n_out, C_out)
    cout = w_ref.shape[2]
    acc = jnp.zeros((n_out, cout), jnp.float32)
    for ky in range(k):
        for kx in range(k):
            start = ky * row_w + kx
            tap = xf_ref[0, start:start + n_out, :]
            acc = acc + jnp.dot(tap, w_ref[ky * k + kx],
                                preferred_element_type=jnp.float32)
    y = acc + b_ref[...]
    y = jnp.where(y >= 0.0, y, _NEG_SLOPE * y) * _ACT_GAIN
    o_ref[0] = y.astype(o_ref.dtype)


# ---------------------------------------------------------------------------
# Kernel 2: fused  (blur + 3x3 stride-2 conv + FusedLeakyReLU)  +
#                  (blur + 1x1 stride-2 skip conv)  +  residual add / sqrt(2).
# Both inputs are parity-stacked (even/odd rows & cols -> 4 channel blocks),
# padded and flattened, so every tap is a contiguous slice and the contraction
# dim is 4*C_in.  Blur is already folded into the weights.
# ---------------------------------------------------------------------------
def _down_block_kernel(af_ref, xf_ref, w2_ref, ws_ref, b2_ref, o_ref, *,
                       n_out, row_w):
    cout = w2_ref.shape[2]
    acc_main = jnp.zeros((n_out, cout), jnp.float32)
    acc_skip = jnp.zeros((n_out, cout), jnp.float32)
    for m in range(3):
        for n in range(3):
            start = m * row_w + n
            t = m * 3 + n
            a_tap = af_ref[0, start:start + n_out, :]
            x_tap = xf_ref[0, start:start + n_out, :]
            acc_main = acc_main + jnp.dot(a_tap, w2_ref[t],
                                          preferred_element_type=jnp.float32)
            acc_skip = acc_skip + jnp.dot(x_tap, ws_ref[t],
                                          preferred_element_type=jnp.float32)
    y = acc_main + b2_ref[...]
    y = jnp.where(y >= 0.0, y, _NEG_SLOPE * y) * _ACT_GAIN
    o_ref[0] = ((y + acc_skip) * _RES_GAIN).astype(o_ref.dtype)


# ---------------------------------------------------------------------------
# Wrapper-side layout glue (pure relayout, 1x data volume) + weight folding.
# ---------------------------------------------------------------------------
def _make_blur_kernel():
    k = jnp.array([1.0, 3.0, 3.0, 1.0], jnp.float32)
    k = k[None, :] * k[:, None]
    return k / jnp.sum(k)


def _flatten_padded(x_nhwc, pad_h, pad_w):
    """Pad (H, W) and flatten them into one axis (row width = W + sum(pad_w))."""
    b, h, w, c = x_nhwc.shape
    xp = jnp.pad(x_nhwc, ((0, 0), pad_h, pad_w, (0, 0)))
    hp, wp = h + sum(pad_h), w + sum(pad_w)
    return xp.reshape(b, hp * wp, c), wp


def _parity_stack(x_nhwc):
    """Even/odd rows & cols -> 4 channel blocks (p = 2*py + px), halo-pad each
    plane by 1 (+1 extra bottom row for the wide-row trick) and flatten."""
    b, h, w, c = x_nhwc.shape
    oh, ow = h // 2, w // 2
    t = x_nhwc.reshape(b, oh, 2, ow, 2, c).transpose(0, 2, 4, 1, 3, 5)
    t = t.reshape(b, 4, oh, ow, c)
    t = jnp.pad(t, ((0, 0), (0, 0), (1, 2), (1, 1), (0, 0)))
    t = t.transpose(0, 2, 3, 1, 4).reshape(b, oh + 3, ow + 2, 4 * c)
    return t.reshape(b, (oh + 3) * (ow + 2), 4 * c), ow + 2


def _fold_blur_into_conv2(w2s, blurk):
    """(Blur pad=(2,2)) o (3x3 conv, stride 2) == 6x6 stride-2 conv; regroup the
    effective 6x6 kernel for the parity-stacked input -> (9, 4*Cin, Cout)."""
    cout, cin, _, _ = w2s.shape
    w2_t = jnp.transpose(w2s, (2, 3, 1, 0))          # (3, 3, Cin, Cout)
    w_eff = jnp.zeros((6, 6, cin, cout), jnp.float32)
    for i in range(4):
        for j in range(4):
            w_eff = w_eff.at[i:i + 3, j:j + 3].add(blurk[i, j] * w2_t)
    # u = 2m+py, v = 2n+px  ->  tap (m,n), parity block p = 2py+px
    w_stk = w_eff.reshape(3, 2, 3, 2, cin, cout).transpose(0, 2, 1, 3, 4, 5)
    return w_stk.reshape(9, 4 * cin, cout)


# blur-tap index i -> (parity, padded-plane offset) for the stride-2 1x1 skip
_PARITY_OFFSET = ((1, 0), (0, 1), (1, 1), (0, 2))


def _fold_blur_into_skip(wsks, blurk):
    """(Blur pad=(1,1)) o (1x1 conv, stride 2) as 9 taps over the parity stack."""
    cout, cin, _, _ = wsks.shape
    w_t = jnp.transpose(wsks[:, :, 0, 0], (1, 0))    # (Cin, Cout)
    w_stk = jnp.zeros((9, 4 * cin, cout), jnp.float32)
    for i in range(4):
        py, dy = _PARITY_OFFSET[i]
        for j in range(4):
            px, dx = _PARITY_OFFSET[j]
            t = dy * 3 + dx
            p = 2 * py + px
            w_stk = w_stk.at[t, p * cin:(p + 1) * cin, :].add(blurk[i, j] * w_t)
    return w_stk


# ---------------------------------------------------------------------------
# ResBlock forward.
# ---------------------------------------------------------------------------
def resblock_forward(x_nchw, w1, b1, w2, b2, wsk, *, compute_dtype=jnp.bfloat16):
    """x: (B, Cin, H, W); w1: (Cin, Cin, 3, 3); b1: (Cin,);
    w2: (Cout, Cin, 3, 3); b2: (Cout,); wsk: (Cout, Cin, 1, 1).
    Returns (B, Cout, H//2, W//2) float32 (matches the PyTorch ResBlock)."""
    b, cin, h, w = x_nchw.shape
    cout = w2.shape[0]
    assert h % 2 == 0 and w % 2 == 0, "downsample block needs even spatial dims"
    oh, ow = h // 2, w // 2
    blurk = _make_blur_kernel()

    # ---- parameter prep (tiny, trace-time): fold EqualConv2d scales + blur ----
    s1 = 1.0 / math.sqrt(cin * 9)
    s2 = 1.0 / math.sqrt(cin * 9)
    ss = 1.0 / math.sqrt(cin * 1)
    w1_taps = jnp.transpose(w1 * s1, (2, 3, 1, 0)).reshape(9, cin, cin)
    w2_stk = _fold_blur_into_conv2(w2 * s2, blurk)        # (9, 4*Cin, Cout)
    ws_stk = _fold_blur_into_skip(wsk * ss, blurk)        # (9, 4*Cin, Cout)

    w1_taps = w1_taps.astype(compute_dtype)
    w2_stk = w2_stk.astype(compute_dtype)
    ws_stk = ws_stk.astype(compute_dtype)
    b1_row = b1.reshape(1, cin).astype(jnp.float32)
    b2_row = b2.reshape(1, cout).astype(jnp.float32)

    # ---- layout glue: NCHW -> channels-last (lane-dense), pad + flatten ----
    x_nhwc = jnp.transpose(x_nchw, (0, 2, 3, 1)).astype(compute_dtype)
    x_flat, row_w1 = _flatten_padded(x_nhwc, (1, 2), (1, 1))
    n1 = h * row_w1                                       # "wide" rows of conv1 output

    # ---- stage 1: conv1 (3x3, pad 1) + FusedLeakyReLU ----
    conv1 = pl.pallas_call(
        functools.partial(_conv3x3_act_kernel, n_out=n1, row_w=row_w1, k=3),
        out_shape=jax.ShapeDtypeStruct((b, n1, cin), compute_dtype),
        grid_spec=pltpu.PrefetchScalarGridSpec(
            num_scalar_prefetch=0,
            grid=(b,),
            in_specs=[
                pl.BlockSpec((1, x_flat.shape[1], cin), lambda i: (i, 0, 0)),
                pl.BlockSpec((9, cin, cin), lambda i: (0, 0, 0)),
                pl.BlockSpec((1, cin), lambda i: (0, 0)),
            ],
            out_specs=pl.BlockSpec((1, n1, cin), lambda i: (i, 0, 0)),
        ),
        compiler_params=pltpu.CompilerParams(dimension_semantics=("parallel",)),
    )(x_flat, w1_taps, b1_row)

    act1 = conv1.reshape(b, h, row_w1, cin)[:, :, :w, :]  # drop wide-row garbage cols

    # ---- layout glue: parity split (stride-2 -> stride-1 taps) ----
    a_par, row_w2 = _parity_stack(act1)                   # (B, (OH+3)*(OW+2), 4*Cin)
    x_par, _ = _parity_stack(x_nhwc)
    n2 = oh * row_w2

    # ---- stage 2: blur+conv2(stride 2)+act, blur+1x1 skip, residual ----
    out2 = pl.pallas_call(
        functools.partial(_down_block_kernel, n_out=n2, row_w=row_w2),
        out_shape=jax.ShapeDtypeStruct((b, n2, cout), jnp.float32),
        grid_spec=pltpu.PrefetchScalarGridSpec(
            num_scalar_prefetch=0,
            grid=(b,),
            in_specs=[
                pl.BlockSpec((1, a_par.shape[1], 4 * cin), lambda i: (i, 0, 0)),
                pl.BlockSpec((1, x_par.shape[1], 4 * cin), lambda i: (i, 0, 0)),
                pl.BlockSpec((9, 4 * cin, cout), lambda i: (0, 0, 0)),
                pl.BlockSpec((9, 4 * cin, cout), lambda i: (0, 0, 0)),
                pl.BlockSpec((1, cout), lambda i: (0, 0)),
            ],
            out_specs=pl.BlockSpec((1, n2, cout), lambda i: (i, 0, 0)),
        ),
        compiler_params=pltpu.CompilerParams(dimension_semantics=("parallel",)),
    )(a_par, x_par, w2_stk, ws_stk, b2_row)

    out = out2.reshape(b, oh, row_w2, cout)[:, :, :ow, :]
    return jnp.transpose(out, (0, 3, 1, 2))               # back to NCHW


# ---------------------------------------------------------------------------
# Pure-JAX reference matching the PyTorch ResBlock forward exactly.
# ---------------------------------------------------------------------------
def _resblock_reference(x, w1, b1, w2, b2, wsk):
    blurk = _make_blur_kernel()

    def fused_lrelu(t, bias):
        t = t + bias[None, :, None, None]
        return jnp.where(t >= 0, t, _NEG_SLOPE * t) * _ACT_GAIN

    def equal_conv(t, wgt, stride, padding):
        k = wgt.shape[-1]
        scale = 1.0 / math.sqrt(wgt.shape[1] * k * k)
        return jax.lax.conv_general_dilated(
            t, wgt * scale, (stride, stride), [(padding, padding)] * 2,
            dimension_numbers=("NCHW", "OIHW", "NCHW"),
            precision=jax.lax.Precision.HIGHEST)

    def blur(t, pad):
        bsz, ch, hh, ww = t.shape
        tp = jnp.pad(t, ((0, 0), (0, 0), (pad[0], pad[1]), (pad[0], pad[1])))
        kern = jnp.flip(blurk, (0, 1))[None, None]
        tr = tp.reshape(bsz * ch, 1, hh + pad[0] + pad[1], ww + pad[0] + pad[1])
        o = jax.lax.conv_general_dilated(
            tr, kern, (1, 1), "VALID",
            dimension_numbers=("NCHW", "OIHW", "NCHW"),
            precision=jax.lax.Precision.HIGHEST)
        return o.reshape(bsz, ch, o.shape[2], o.shape[3])

    out = fused_lrelu(equal_conv(x, w1, 1, 1), b1)         # conv1
    out = blur(out, (2, 2))                                # conv2 (downsample)
    out = fused_lrelu(equal_conv(out, w2, 2, 0), b2)
    skip = equal_conv(blur(x, (1, 1)), wsk, 2, 0)          # skip (downsample)
    return (out + skip) / math.sqrt(2)


if __name__ == "__main__":
    B, Cin, Cout, H, W = 2, 4, 8, 16, 16

    key = jax.random.PRNGKey(0)
    kx_, k1, k2, k3, k4, k5 = jax.random.split(key, 6)
    x = jax.random.normal(kx_, (B, Cin, H, W), jnp.float32)
    w1 = jax.random.normal(k1, (Cin, Cin, 3, 3), jnp.float32)     # conv1 EqualConv2d
    b1 = 0.1 * jax.random.normal(k2, (Cin,), jnp.float32)         # conv1 FusedLeakyReLU bias
    w2 = jax.random.normal(k3, (Cout, Cin, 3, 3), jnp.float32)    # conv2 EqualConv2d
    b2 = 0.1 * jax.random.normal(k4, (Cout,), jnp.float32)        # conv2 FusedLeakyReLU bias
    wsk = jax.random.normal(k5, (Cout, Cin, 1, 1), jnp.float32)   # skip EqualConv2d

    ref = _resblock_reference(x, w1, b1, w2, b2, wsk)

    fwd = jax.jit(resblock_forward, static_argnames=("compute_dtype",))

    # float32 MXU path (tight-ish check of the tap/parity/blur-folding math)
    out_f32 = jax.block_until_ready(fwd(x, w1, b1, w2, b2, wsk,
                                        compute_dtype=jnp.float32))
    assert out_f32.shape == (B, Cout, H // 2, W // 2)
    err32 = float(jnp.max(jnp.abs(out_f32 - ref)))
    assert jnp.allclose(out_f32, ref, rtol=2e-2, atol=2e-2), err32

    # bf16 MXU path (production default: bf16 operands, f32 accumulation)
    out_bf16 = jax.block_until_ready(fwd(x, w1, b1, w2, b2, wsk,
                                         compute_dtype=jnp.bfloat16))
    assert out_bf16.shape == (B, Cout, H // 2, W // 2)
    errbf = float(jnp.max(jnp.abs(out_bf16 - ref)))
    assert jnp.allclose(out_bf16, ref, rtol=1e-1, atol=1e-1), errbf

    print("KERNEL_OK")
</pallas_src>

<mosaic_0001>
module attributes {stable_mosaic.version = 11 : i64} {
  func.func @_conv3x3_act_kernel(%arg0: i32, %arg1: memref<1x342x4xf32, #tpu.memory_space<vmem>>, %arg2: memref<9x4x4xf32, #tpu.memory_space<vmem>>, %arg3: memref<1x4xf32, #tpu.memory_space<vmem>>, %arg4: memref<1x288x4xf32, #tpu.memory_space<vmem>>) attributes {dimension_semantics = [#tpu.dimension_semantics<parallel>], iteration_bounds = array<i64: 2>, scalar_prefetch = 0 : i64, scratch_operands = 0 : i64, tpu.core_type = #tpu.core_type<tc>, window_params = [{transform_indices = @transform_0, window_bounds = array<i64: 1, 342, 4>}, {pipeline_mode = #tpu.pipeline_mode<synchronous>, transform_indices = @transform_1, window_bounds = array<i64: 9, 4, 4>}, {pipeline_mode = #tpu.pipeline_mode<synchronous>, transform_indices = @transform_2, window_bounds = array<i64: 1, 4>}, {transform_indices = @transform_3, window_bounds = array<i64: 1, 288, 4>}]} {
    %cst = arith.constant 0.000000e+00 : f32
    %0 = vector.broadcast %cst : f32 to vector<288x4xf32>
    %c0 = arith.constant 0 : index
    %c0_0 = arith.constant 0 : index
    %c0_1 = arith.constant 0 : index
    %1 = vector.load %arg1[%c0, %c0_0, %c0_1] : memref<1x342x4xf32, #tpu.memory_space<vmem>>, vector<1x288x4xf32>
    %2 = vector.shape_cast %1 : vector<1x288x4xf32> to vector<288x4xf32>
    %c0_2 = arith.constant 0 : index
    %c0_3 = arith.constant 0 : index
    %c0_4 = arith.constant 0 : index
    %3 = vector.load %arg2[%c0_2, %c0_3, %c0_4] : memref<9x4x4xf32, #tpu.memory_space<vmem>>, vector<1x4x4xf32>
    %4 = vector.shape_cast %3 : vector<1x4x4xf32> to vector<4x4xf32>
    %cst_5 = arith.constant dense<0.000000e+00> : vector<288x4xf32>
    %5 = tpu.matmul %2, %4, %cst_5 {dimension_numbers = #tpu.dot_dimension_numbers<[1], [0], [0], [1], [0, 0, 1, 1], [], []>} : vector<288x4xf32>, vector<4x4xf32>, vector<288x4xf32> -> vector<288x4xf32>
    %6 = arith.addf %0, %5 : vector<288x4xf32>
    %c0_6 = arith.constant 0 : index
    %c1 = arith.constant 1 : index
    %c0_7 = arith.constant 0 : index
    %7 = vector.load %arg1[%c0_6, %c1, %c0_7] : memref<1x342x4xf32, #tpu.memory_space<vmem>>, vector<1x288x4xf32>
    %8 = vector.shape_cast %7 : vector<1x288x4xf32> to vector<288x4xf32>
    %c1_8 = arith.constant 1 : index
    %c0_9 = arith.constant 0 : index
    %c0_10 = arith.constant 0 : index
    %9 = vector.load %arg2[%c1_8, %c0_9, %c0_10] : memref<9x4x4xf32, #tpu.memory_space<vmem>>, vector<1x4x4xf32>
    %10 = vector.shape_cast %9 : vector<1x4x4xf32> to vector<4x4xf32>
    %cst_11 = arith.constant dense<0.000000e+00> : vector<288x4xf32>
    %11 = tpu.matmul %8, %10, %cst_11 {dimension_numbers = #tpu.dot_dimension_numbers<[1], [0], [0], [1], [0, 0, 1, 1], [], []>} : vector<288x4xf32>, vector<4x4xf32>, vector<288x4xf32> -> vector<288x4xf32>
    %12 = arith.addf %6, %11 : vector<288x4xf32>
    %c0_12 = arith.constant 0 : index
    %c2 = arith.constant 2 : index
    %c0_13 = arith.constant 0 : index
    %13 = vector.load %arg1[%c0_12, %c2, %c0_13] : memref<1x342x4xf32, #tpu.memory_space<vmem>>, vector<1x288x4xf32>
    %14 = vector.shape_cast %13 : vector<1x288x4xf32> to vector<288x4xf32>
    %c2_14 = arith.constant 2 : index
    %c0_15 = arith.constant 0 : index
    %c0_16 = arith.constant 0 : index
    %15 = vector.load %arg2[%c2_14, %c0_15, %c0_16] : memref<9x4x4xf32, #tpu.memory_space<vmem>>, vector<1x4x4xf32>
    %16 = vector.shape_cast %15 : vector<1x4x4xf32> to vector<4x4xf32>
    %cst_17 = arith.constant dense<0.000000e+00> : vector<288x4xf32>
    %17 = tpu.matmul %14, %16, %cst_17 {dimension_numbers = #tpu.dot_dimension_numbers<[1], [0], [0], [1], [0, 0, 1, 1], [], []>} : vector<288x4xf32>, vector<4x4xf32>, vector<288x4xf32> -> vector<288x4xf32>
    %18 = arith.addf %12, %17 : vector<288x4xf32>
    %c0_18 = arith.constant 0 : index
    %c18 = arith.constant 18 : index
    %c0_19 = arith.constant 0 : index
    %19 = vector.load %arg1[%c0_18, %c18, %c0_19] : memref<1x342x4xf32, #tpu.memory_space<vmem>>, vector<1x288x4xf32>
    %20 = vector.shape_cast %19 : vector<1x288x4xf32> to vector<288x4xf32>
    %c3 = arith.constant 3 : index
    %c0_20 = arith.constant 0 : index
    %c0_21 = arith.constant 0 : index
    %21 = vector.load %arg2[%c3, %c0_20, %c0_21] : memref<9x4x4xf32, #tpu.memory_space<vmem>>, vector<1x4x4xf32>
    %22 = vector.shape_cast %21 : vector<1x4x4xf32> to vector<4x4xf32>
    %cst_22 = arith.constant dense<0.000000e+00> : vector<288x4xf32>
    %23 = tpu.matmul %20, %22, %cst_22 {dimension_numbers = #tpu.dot_dimension_numbers<[1], [0], [0], [1], [0, 0, 1, 1], [], []>} : vector<288x4xf32>, vector<4x4xf32>, vector<288x4xf32> -> vector<288x4xf32>
    %24 = arith.addf %18, %23 : vector<288x4xf32>
    %c0_23 = arith.constant 0 : index
    %c19 = arith.constant 19 : index
    %c0_24 = arith.constant 0 : index
    %25 = vector.load %arg1[%c0_23, %c19, %c0_24] : memref<1x342x4xf32, #tpu.memory_space<vmem>>, vector<1x288x4xf32>
    %26 = vector.shape_cast %25 : vector<1x288x4xf32> to vector<288x4xf32>
    %c4 = arith.constant 4 : index
    %c0_25 = arith.constant 0 : index
    %c0_26 = arith.constant 0 : index
    %27 = vector.load %arg2[%c4, %c0_25, %c0_26] : memref<9x4x4xf32, #tpu.memory_space<vmem>>, vector<1x4x4xf32>
    %28 = vector.shape_cast %27 : vector<1x4x4xf32> to vector<4x4xf32>
    %cst_27 = arith.constant dense<0.000000e+00> : vector<288x4xf32>
    %29 = tpu.matmul %26, %28, %cst_27 {dimension_numbers = #tpu.dot_dimension_numbers<[1], [0], [0], [1], [0, 0, 1, 1], [], []>} : vector<288x4xf32>, vector<4x4xf32>, vector<288x4xf32> -> vector<288x4xf32>
    %30 = arith.addf %24, %29 : vector<288x4xf32>
    %c0_28 = arith.constant 0 : index
    %c20 = arith.constant 20 : index
    %c0_29 = arith.constant 0 : index
    %31 = vector.load %arg1[%c0_28, %c20, %c0_29] : memref<1x342x4xf32, #tpu.memory_space<vmem>>, vector<1x288x4xf32>
    %32 = vector.shape_cast %31 : vector<1x288x4xf32> to vector<288x4xf32>
    %c5 = arith.constant 5 : index
    %c0_30 = arith.constant 0 : index
    %c0_31 = arith.constant 0 : index
    %33 = vector.load %arg2[%c5, %c0_30, %c0_31] : memref<9x4x4xf32, #tpu.memory_space<vmem>>, vector<1x4x4xf32>
    %34 = vector.shape_cast %33 : vector<1x4x4xf32> to vector<4x4xf32>
    %cst_32 = arith.constant dense<0.000000e+00> : vector<288x4xf32>
    %35 = tpu.matmul %32, %34, %cst_32 {dimension_numbers = #tpu.dot_dimension_numbers<[1], [0], [0], [1], [0, 0, 1, 1], [], []>} : vector<288x4xf32>, vector<4x4xf32>, vector<288x4xf32> -> vector<288x4xf32>
    %36 = arith.addf %30, %35 : vector<288x4xf32>
    %c0_33 = arith.constant 0 : index
    %c36 = arith.constant 36 : index
    %c0_34 = arith.constant 0 : index
    %37 = vector.load %arg1[%c0_33, %c36, %c0_34] : memref<1x342x4xf32, #tpu.memory_space<vmem>>, vector<1x288x4xf32>
    %38 = vector.shape_cast %37 : vector<1x288x4xf32> to vector<288x4xf32>
    %c6 = arith.constant 6 : index
    %c0_35 = arith.constant 0 : index
    %c0_36 = arith.constant 0 : index
    %39 = vector.load %arg2[%c6, %c0_35, %c0_36] : memref<9x4x4xf32, #tpu.memory_space<vmem>>, vector<1x4x4xf32>
    %40 = vector.shape_cast %39 : vector<1x4x4xf32> to vector<4x4xf32>
    %cst_37 = arith.constant dense<0.000000e+00> : vector<288x4xf32>
    %41 = tpu.matmul %38, %40, %cst_37 {dimension_numbers = #tpu.dot_dimension_numbers<[1], [0], [0], [1], [0, 0, 1, 1], [], []>} : vector<288x4xf32>, vector<4x4xf32>, vector<288x4xf32> -> vector<288x4xf32>
    %42 = arith.addf %36, %41 : vector<288x4xf32>
    %c0_38 = arith.constant 0 : index
    %c37 = arith.constant 37 : index
    %c0_39 = arith.constant 0 : index
    %43 = vector.load %arg1[%c0_38, %c37, %c0_39] : memref<1x342x4xf32, #tpu.memory_space<vmem>>, vector<1x288x4xf32>
    %44 = vector.shape_cast %43 : vector<1x288x4xf32> to vector<288x4xf32>
    %c7 = arith.constant 7 : index
    %c0_40 = arith.constant 0 : index
    %c0_41 = arith.constant 0 : index
    %45 = vector.load %arg2[%c7, %c0_40, %c0_41] : memref<9x4x4xf32, #tpu.memory_space<vmem>>, vector<1x4x4xf32>
    %46 = vector.shape_cast %45 : vector<1x4x4xf32> to vector<4x4xf32>
    %cst_42 = arith.constant dense<0.000000e+00> : vector<288x4xf32>
    %47 = tpu.matmul %44, %46, %cst_42 {dimension_numbers = #tpu.dot_dimension_numbers<[1], [0], [0], [1], [0, 0, 1, 1], [], []>} : vector<288x4xf32>, vector<4x4xf32>, vector<288x4xf32> -> vector<288x4xf32>
    %48 = arith.addf %42, %47 : vector<288x4xf32>
    %c0_43 = arith.constant 0 : index
    %c38 = arith.constant 38 : index
    %c0_44 = arith.constant 0 : index
    %49 = vector.load %arg1[%c0_43, %c38, %c0_44] : memref<1x342x4xf32, #tpu.memory_space<vmem>>, vector<1x288x4xf32>
    %50 = vector.shape_cast %49 : vector<1x288x4xf32> to vector<288x4xf32>
    %c8 = arith.constant 8 : index
    %c0_45 = arith.constant 0 : index
    %c0_46 = arith.constant 0 : index
    %51 = vector.load %arg2[%c8, %c0_45, %c0_46] : memref<9x4x4xf32, #tpu.memory_space<vmem>>, vector<1x4x4xf32>
    %52 = vector.shape_cast %51 : vector<1x4x4xf32> to vector<4x4xf32>
    %cst_47 = arith.constant dense<0.000000e+00> : vector<288x4xf32>
    %53 = tpu.matmul %50, %52, %cst_47 {dimension_numbers = #tpu.dot_dimension_numbers<[1], [0], [0], [1], [0, 0, 1, 1], [], []>} : vector<288x4xf32>, vector<4x4xf32>, vector<288x4xf32> -> vector<288x4xf32>
    %54 = arith.addf %48, %53 : vector<288x4xf32>
    %c0_48 = arith.constant 0 : index
    %c0_49 = arith.constant 0 : index
    %55 = vector.load %arg3[%c0_48, %c0_49] : memref<1x4xf32, #tpu.memory_space<vmem>>, vector<1x4xf32>
    %56 = vector.broadcast %55 : vector<1x4xf32> to vector<288x4xf32>
    %57 = arith.addf %54, %56 : vector<288x4xf32>
    %cst_50 = arith.constant 0.000000e+00 : f32
    %58 = vector.broadcast %cst_50 : f32 to vector<288x4xf32>
    %59 = arith.cmpf oge, %57, %58 : vector<288x4xf32>
    %cst_51 = arith.constant 2.000000e-01 : f32
    %60 = vector.broadcast %cst_51 : f32 to vector<288x4xf32>
    %61 = arith.mulf %60, %57 : vector<288x4xf32>
    %62 = arith.select %59, %57, %61 : vector<288x4xi1>, vector<288x4xf32>
    %cst_52 = arith.constant 1.41421354 : f32
    %63 = vector.broadcast %cst_52 : f32 to vector<288x4xf32>
    %64 = arith.mulf %62, %63 : vector<288x4xf32>
    %c0_53 = arith.constant 0 : index
    %c0_54 = arith.constant 0 : index
    %c0_55 = arith.constant 0 : index
    %65 = vector.load %arg4[%c0_53, %c0_54, %c0_55] : memref<1x288x4xf32, #tpu.memory_space<vmem>>, vector<1x288x4xf32>
    %66 = vector.shape_cast %65 : vector<1x288x4xf32> to vector<288x4xf32>
    %67 = vector.shape_cast %64 : vector<288x4xf32> to vector<1x288x4xf32>
    tpu.vector_store %arg4[%c0_53, %c0_54, %c0_55], %67 {strides = array<i32>} : memref<1x288x4xf32, #tpu.memory_space<vmem>>, vector<1x288x4xf32>,
    return
  }
  func.func @transform_0(%arg0: i32) -> (i32, i32, i32) {
    %c0_i32 = arith.constant 0 : i32
    %c0_i32_0 = arith.constant 0 : i32
    %c0_i32_1 = arith.constant 0 : i32
    return %arg0, %c0_i32, %c0_i32_0 : i32, i32, i32
  }
  func.func @transform_1(%arg0: i32) -> (i32, i32, i32) {
    %c0_i32 = arith.constant 0 : i32
    %c0_i32_0 = arith.constant 0 : i32
    %c0_i32_1 = arith.constant 0 : i32
    %c0_i32_2 = arith.constant 0 : i32
    return %c0_i32, %c0_i32_0, %c0_i32_1 : i32, i32, i32
  }
  func.func @transform_2(%arg0: i32) -> (i32, i32) {
    %c0_i32 = arith.constant 0 : i32
    %c0_i32_0 = arith.constant 0 : i32
    %c0_i32_1 = arith.constant 0 : i32
    return %c0_i32, %c0_i32_0 : i32, i32
  }
  func.func @transform_3(%arg0: i32) -> (i32, i32, i32) {
    %c0_i32 = arith.constant 0 : i32
    %c0_i32_0 = arith.constant 0 : i32
    %c0_i32_1 = arith.constant 0 : i32
    return %arg0, %c0_i32, %c0_i32_0 : i32, i32, i32
  }
}

module attributes {stable_mosaic.version = 11 : i64} {
  func.func @_down_block_kernel(%arg0: i32, %arg1: memref<1x110x16xf32, #tpu.memory_space<vmem>>, %arg2: memref<1x110x16xf32, #tpu.memory_space<vmem>>, %arg3: memref<9x16x8xf32, #tpu.memory_space<vmem>>, %arg4: memref<9x16x8xf32, #tpu.memory_space<vmem>>, %arg5: memref<1x8xf32, #tpu.memory_space<vmem>>, %arg6: memref<1x80x8xf32, #tpu.memory_space<vmem>>) attributes {dimension_semantics = [#tpu.dimension_semantics<parallel>], iteration_bounds = array<i64: 2>, scalar_prefetch = 0 : i64, scratch_operands = 0 : i64, tpu.core_type = #tpu.core_type<tc>, window_params = [{transform_indices = @transform_0, window_bounds = array<i64: 1, 110, 16>}, {transform_indices = @transform_1, window_bounds = array<i64: 1, 110, 16>}, {pipeline_mode = #tpu.pipeline_mode<synchronous>, transform_indices = @transform_2, window_bounds = array<i64: 9, 16, 8>}, {pipeline_mode = #tpu.pipeline_mode<synchronous>, transform_indices = @transform_3, window_bounds = array<i64: 9, 16, 8>}, {pipeline_mode = #tpu.pipeline_mode<synchronous>, transform_indices = @transform_4, window_bounds = array<i64: 1, 8>}, {transform_indices = @transform_5, window_bounds = array<i64: 1, 80, 8>}]} {
    %cst = arith.constant 0.000000e+00 : f32
    %0 = vector.broadcast %cst : f32 to vector<80x8xf32>
    %cst_0 = arith.constant 0.000000e+00 : f32
    %1 = vector.broadcast %cst_0 : f32 to vector<80x8xf32>
    %c0 = arith.constant 0 : index
    %c0_1 = arith.constant 0 : index
    %c0_2 = arith.constant 0 : index
    %2 = vector.load %arg1[%c0, %c0_1, %c0_2] : memref<1x110x16xf32, #tpu.memory_space<vmem>>, vector<1x80x16xf32>
    %3 = vector.shape_cast %2 : vector<1x80x16xf32> to vector<80x16xf32>
    %c0_3 = arith.constant 0 : index
    %c0_4 = arith.constant 0 : index
    %c0_5 = arith.constant 0 : index
    %4 = vector.load %arg2[%c0_3, %c0_4, %c0_5] : memref<1x110x16xf32, #tpu.memory_space<vmem>>, vector<1x80x16xf32>
    %5 = vector.shape_cast %4 : vector<1x80x16xf32> to vector<80x16xf32>
    %c0_6 = arith.constant 0 : index
    %c0_7 = arith.constant 0 : index
    %c0_8 = arith.constant 0 : index
    %6 = vector.load %arg3[%c0_6, %c0_7, %c0_8] : memref<9x16x8xf32, #tpu.memory_space<vmem>>, vector<1x16x8xf32>
    %7 = vector.shape_cast %6 : vector<1x16x8xf32> to vector<16x8xf32>
    %cst_9 = arith.constant dense<0.000000e+00> : vector<80x8xf32>
    %8 = tpu.matmul %3, %7, %cst_9 {dimension_numbers = #tpu.dot_dimension_numbers<[1], [0], [0], [1], [0, 0, 1, 1], [], []>} : vector<80x16xf32>, vector<16x8xf32>, vector<80x8xf32> -> vector<80x8xf32>
    %9 = arith.addf %0, %8 : vector<80x8xf32>
    %c0_10 = arith.constant 0 : index
    %c0_11 = arith.constant 0 : index
    %c0_12 = arith.constant 0 : index
    %10 = vector.load %arg4[%c0_10, %c0_11, %c0_12] : memref<9x16x8xf32, #tpu.memory_space<vmem>>, vector<1x16x8xf32>
    %11 = vector.shape_cast %10 : vector<1x16x8xf32> to vector<16x8xf32>
    %cst_13 = arith.constant dense<0.000000e+00> : vector<80x8xf32>
    %12 = tpu.matmul %5, %11, %cst_13 {dimension_numbers = #tpu.dot_dimension_numbers<[1], [0], [0], [1], [0, 0, 1, 1], [], []>} : vector<80x16xf32>, vector<16x8xf32>, vector<80x8xf32> -> vector<80x8xf32>
    %13 = arith.addf %1, %12 : vector<80x8xf32>
    %c0_14 = arith.constant 0 : index
    %c1 = arith.constant 1 : index
    %c0_15 = arith.constant 0 : index
    %14 = vector.load %arg1[%c0_14, %c1, %c0_15] : memref<1x110x16xf32, #tpu.memory_space<vmem>>, vector<1x80x16xf32>
    %15 = vector.shape_cast %14 : vector<1x80x16xf32> to vector<80x16xf32>
    %c0_16 = arith.constant 0 : index
    %c1_17 = arith.constant 1 : index
    %c0_18 = arith.constant 0 : index
    %16 = vector.load %arg2[%c0_16, %c1_17, %c0_18] : memref<1x110x16xf32, #tpu.memory_space<vmem>>, vector<1x80x16xf32>
    %17 = vector.shape_cast %16 : vector<1x80x16xf32> to vector<80x16xf32>
    %c1_19 = arith.constant 1 : index
    %c0_20 = arith.constant 0 : index
    %c0_21 = arith.constant 0 : index
    %18 = vector.load %arg3[%c1_19, %c0_20, %c0_21] : memref<9x16x8xf32, #tpu.memory_space<vmem>>, vector<1x16x8xf32>
    %19 = vector.shape_cast %18 : vector<1x16x8xf32> to vector<16x8xf32>
    %cst_22 = arith.constant dense<0.000000e+00> : vector<80x8xf32>
    %20 = tpu.matmul %15, %19, %cst_22 {dimension_numbers = #tpu.dot_dimension_numbers<[1], [0], [0], [1], [0, 0, 1, 1], [], []>} : vector<80x16xf32>, vector<16x8xf32>, vector<80x8xf32> -> vector<80x8xf32>
    %21 = arith.addf %9, %20 : vector<80x8xf32>
    %c1_23 = arith.constant 1 : index
    %c0_24 = arith.constant 0 : index
    %c0_25 = arith.constant 0 : index
    %22 = vector.load %arg4[%c1_23, %c0_24, %c0_25] : memref<9x16x8xf32, #tpu.memory_space<vmem>>, vector<1x16x8xf32>
    %23 = vector.shape_cast %22 : vector<1x16x8xf32> to vector<16x8xf32>
    %cst_26 = arith.constant dense<0.000000e+00> : vector<80x8xf32>
    %24 = tpu.matmul %17, %23, %cst_26 {dimension_numbers = #tpu.dot_dimension_numbers<[1], [0], [0], [1], [0, 0, 1, 1], [], []>} : vector<80x16xf32>, vector<16x8xf32>, vector<80x8xf32> -> vector<80x8xf32>
    %25 = arith.addf %13, %24 : vector<80x8xf32>
    %c0_27 = arith.constant 0 : index
    %c2 = arith.constant 2 : index
    %c0_28 = arith.constant 0 : index
    %26 = vector.load %arg1[%c0_27, %c2, %c0_28] : memref<1x110x16xf32, #tpu.memory_space<vmem>>, vector<1x80x16xf32>
    %27 = vector.shape_cast %26 : vector<1x80x16xf32> to vector<80x16xf32>
    %c0_29 = arith.constant 0 : index
    %c2_30 = arith.constant 2 : index
    %c0_31 = arith.constant 0 : index
    %28 = vector.load %arg2[%c0_29, %c2_30, %c0_31] : memref<1x110x16xf32, #tpu.memory_space<vmem>>, vector<1x80x16xf32>
    %29 = vector.shape_cast %28 : vector<1x80x16xf32> to vector<80x16xf32>
    %c2_32 = arith.constant 2 : index
    %c0_33 = arith.constant 0 : index
    %c0_34 = arith.constant 0 : index
    %30 = vector.load %arg3[%c2_32, %c0_33, %c0_34] : memref<9x16x8xf32, #tpu.memory_space<vmem>>, vector<1x16x8xf32>
    %31 = vector.shape_cast %30 : vector<1x16x8xf32> to vector<16x8xf32>
    %cst_35 = arith.constant dense<0.000000e+00> : vector<80x8xf32>
    %32 = tpu.matmul %27, %31, %cst_35 {dimension_numbers = #tpu.dot_dimension_numbers<[1], [0], [0], [1], [0, 0, 1, 1], [], []>} : vector<80x16xf32>, vector<16x8xf32>, vector<80x8xf32> -> vector<80x8xf32>
    %33 = arith.addf %21, %32 : vector<80x8xf32>
    %c2_36 = arith.constant 2 : index
    %c0_37 = arith.constant 0 : index
    %c0_38 = arith.constant 0 : index
    %34 = vector.load %arg4[%c2_36, %c0_37, %c0_38] : memref<9x16x8xf32, #tpu.memory_space<vmem>>, vector<1x16x8xf32>
    %35 = vector.shape_cast %34 : vector<1x16x8xf32> to vector<16x8xf32>
    %cst_39 = arith.constant dense<0.000000e+00> : vector<80x8xf32>
    %36 = tpu.matmul %29, %35, %cst_39 {dimension_numbers = #tpu.dot_dimension_numbers<[1], [0], [0], [1], [0, 0, 1, 1], [], []>} : vector<80x16xf32>, vector<16x8xf32>, vector<80x8xf32> -> vector<80x8xf32>
    %37 = arith.addf %25, %36 : vector<80x8xf32>
    %c0_40 = arith.constant 0 : index
    %c10 = arith.constant 10 : index
    %c0_41 = arith.constant 0 : index
    %38 = vector.load %arg1[%c0_40, %c10, %c0_41] : memref<1x110x16xf32, #tpu.memory_space<vmem>>, vector<1x80x16xf32>
    %39 = vector.shape_cast %38 : vector<1x80x16xf32> to vector<80x16xf32>
    %c0_42 = arith.constant 0 : index
    %c10_43 = arith.constant 10 : index
    %c0_44 = arith.constant 0 : index
    %40 = vector.load %arg2[%c0_42, %c10_43, %c0_44] : memref<1x110x16xf32, #tpu.memory_space<vmem>>, vector<1x80x16xf32>
    %41 = vector.shape_cast %40 : vector<1x80x16xf32> to vector<80x16xf32>
    %c3 = arith.constant 3 : index
    %c0_45 = arith.constant 0 : index
    %c0_46 = arith.constant 0 : index
    %42 = vector.load %arg3[%c3, %c0_45, %c0_46] : memref<9x16x8xf32, #tpu.memory_space<vmem>>, vector<1x16x8xf32>
    %43 = vector.shape_cast %42 : vector<1x16x8xf32> to vector<16x8xf32>
    %cst_47 = arith.constant dense<0.000000e+00> : vector<80x8xf32>
    %44 = tpu.matmul %39, %43, %cst_47 {dimension_numbers = #tpu.dot_dimension_numbers<[1], [0], [0], [1], [0, 0, 1, 1], [], []>} : vector<80x16xf32>, vector<16x8xf32>, vector<80x8xf32> -> vector<80x8xf32>
    %45 = arith.addf %33, %44 : vector<80x8xf32>
    %c3_48 = arith.constant 3 : index
    %c0_49 = arith.constant 0 : index
    %c0_50 = arith.constant 0 : index
    %46 = vector.load %arg4[%c3_48, %c0_49, %c0_50] : memref<9x16x8xf32, #tpu.memory_space<vmem>>, vector<1x16x8xf32>
    %47 = vector.shape_cast %46 : vector<1x16x8xf32> to vector<16x8xf32>
    %cst_51 = arith.constant dense<0.000000e+00> : vector<80x8xf32>
    %48 = tpu.matmul %41, %47, %cst_51 {dimension_numbers = #tpu.dot_dimension_numbers<[1], [0], [0], [1], [0, 0, 1, 1], [], []>} : vector<80x16xf32>, vector<16x8xf32>, vector<80x8xf32> -> vector<80x8xf32>
    %49 = arith.addf %37, %48 : vector<80x8xf32>
    %c0_52 = arith.constant 0 : index
    %c11 = arith.constant 11 : index
    %c0_53 = arith.constant 0 : index
    %50 = vector.load %arg1[%c0_52, %c11, %c0_53] : memref<1x110x16xf32, #tpu.memory_space<vmem>>, vector<1x80x16xf32>
    %51 = vector.shape_cast %50 : vector<1x80x16xf32> to vector<80x16xf32>
    %c0_54 = arith.constant 0 : index
    %c11_55 = arith.constant 11 : index
    %c0_56 = arith.constant 0 : index
    %52 = vector.load %arg2[%c0_54, %c11_55, %c0_56] : memref<1x110x16xf32, #tpu.memory_space<vmem>>, vector<1x80x16xf32>
    %53 = vector.shape_cast %52 : vector<1x80x16xf32> to vector<80x16xf32>
    %c4 = arith.constant 4 : index
    %c0_57 = arith.constant 0 : index
    %c0_58 = arith.constant 0 : index
    %54 = vector.load %arg3[%c4, %c0_57, %c0_58] : memref<9x16x8xf32, #tpu.memory_space<vmem>>, vector<1x16x8xf32>
    %55 = vector.shape_cast %54 : vector<1x16x8xf32> to vector<16x8xf32>
    %cst_59 = arith.constant dense<0.000000e+00> : vector<80x8xf32>
    %56 = tpu.matmul %51, %55, %cst_59 {dimension_numbers = #tpu.dot_dimension_numbers<[1], [0], [0], [1], [0, 0, 1, 1], [], []>} : vector<80x16xf32>, vector<16x8xf32>, vector<80x8xf32> -> vector<80x8xf32>
    %57 = arith.addf %45, %56 : vector<80x8xf32>
    %c4_60 = arith.constant 4 : index
    %c0_61 = arith.constant 0 : index
    %c0_62 = arith.constant 0 : index
    %58 = vector.load %arg4[%c4_60, %c0_61, %c0_62] : memref<9x16x8xf32, #tpu.memory_space<vmem>>, vector<1x16x8xf32>
    %59 = vector.shape_cast %58 : vector<1x16x8xf32> to vector<16x8xf32>
    %cst_63 = arith.constant dense<0.000000e+00> : vector<80x8xf32>
    %60 = tpu.matmul %53, %59, %cst_63 {dimension_numbers = #tpu.dot_dimension_numbers<[1], [0], [0], [1], [0, 0, 1, 1], [], []>} : vector<80x16xf32>, vector<16x8xf32>, vector<80x8xf32> -> vector<80x8xf32>
    %61 = arith.addf %49, %60 : vector<80x8xf32>
    %c0_64 = arith.constant 0 : index
    %c12 = arith.constant 12 : index
    %c0_65 = arith.constant 0 : index
    %62 = vector.load %arg1[%c0_64, %c12, %c0_65] : memref<1x110x16xf32, #tpu.memory_space<vmem>>, vector<1x80x16xf32>
    %63 = vector.shape_cast %62 : vector<1x80x16xf32> to vector<80x16xf32>
    %c0_66 = arith.constant 0 : index
    %c12_67 = arith.constant 12 : index
    %c0_68 = arith.constant 0 : index
    %64 = vector.load %arg2[%c0_66, %c12_67, %c0_68] : memref<1x110x16xf32, #tpu.memory_space<vmem>>, vector<1x80x16xf32>
    %65 = vector.shape_cast %64 : vector<1x80x16xf32> to vector<80x16xf32>
    %c5 = arith.constant 5 : index
    %c0_69 = arith.constant 0 : index
    %c0_70 = arith.constant 0 : index
    %66 = vector.load %arg3[%c5, %c0_69, %c0_70] : memref<9x16x8xf32, #tpu.memory_space<vmem>>, vector<1x16x8xf32>
    %67 = vector.shape_cast %66 : vector<1x16x8xf32> to vector<16x8xf32>
    %cst_71 = arith.constant dense<0.000000e+00> : vector<80x8xf32>
    %68 = tpu.matmul %63, %67, %cst_71 {dimension_numbers = #tpu.dot_dimension_numbers<[1], [0], [0], [1], [0, 0, 1, 1], [], []>} : vector<80x16xf32>, vector<16x8xf32>, vector<80x8xf32> -> vector<80x8xf32>
    %69 = arith.addf %57, %68 : vector<80x8xf32>
    %c5_72 = arith.constant 5 : index
    %c0_73 = arith.constant 0 : index
    %c0_74 = arith.constant 0 : index
    %70 = vector.load %arg4[%c5_72, %c0_73, %c0_74] : memref<9x16x8xf32, #tpu.memory_space<vmem>>, vector<1x16x8xf32>
    %71 = vector.shape_cast %70 : vector<1x16x8xf32> to vector<16x8xf32>
    %cst_75 = arith.constant dense<0.000000e+00> : vector<80x8xf32>
    %72 = tpu.matmul %65, %71, %cst_75 {dimension_numbers = #tpu.dot_dimension_numbers<[1], [0], [0], [1], [0, 0, 1, 1], [], []>} : vector<80x16xf32>, vector<16x8xf32>, vector<80x8xf32> -> vector<80x8xf32>
    %73 = arith.addf %61, %72 : vector<80x8xf32>
    %c0_76 = arith.constant 0 : index
    %c20 = arith.constant 20 : index
    %c0_77 = arith.constant 0 : index
    %74 = vector.load %arg1[%c0_76, %c20, %c0_77] : memref<1x110x16xf32, #tpu.memory_space<vmem>>, vector<1x80x16xf32>
    %75 = vector.shape_cast %74 : vector<1x80x16xf32> to vector<80x16xf32>
    %c0_78 = arith.constant 0 : index
    %c20_79 = arith.constant 20 : index
    %c0_80 = arith.constant 0 : index
    %76 = vector.load %arg2[%c0_78, %c20_79, %c0_80] : memref<1x110x16xf32, #tpu.memory_space<vmem>>, vector<1x80x16xf32>
    %77 = vector.shape_cast %76 : vector<1x80x16xf32> to vector<80x16xf32>
    %c6 = arith.constant 6 : index
    %c0_81 = arith.constant 0 : index
    %c0_82 = arith.constant 0 : index
    %78 = vector.load %arg3[%c6, %c0_81, %c0_82] : memref<9x16x8xf32, #tpu.memory_space<vmem>>, vector<1x16x8xf32>
    %79 = vector.shape_cast %78 : vector<1x16x8xf32> to vector<16x8xf32>
    %cst_83 = arith.constant dense<0.000000e+00> : vector<80x8xf32>
    %80 = tpu.matmul %75, %79, %cst_83 {dimension_numbers = #tpu.dot_dimension_numbers<[1], [0], [0], [1], [0, 0, 1, 1], [], []>} : vector<80x16xf32>, vector<16x8xf32>, vector<80x8xf32> -> vector<80x8xf32>
    %81 = arith.addf %69, %80 : vector<80x8xf32>
    %c6_84 = arith.constant 6 : index
    %c0_85 = arith.constant 0 : index
    %c0_86 = arith.constant 0 : index
    %82 = vector.load %arg4[%c6_84, %c0_85, %c0_86] : memref<9x16x8xf32, #tpu.memory_space<vmem>>, vector<1x16x8xf32>
    %83 = vector.shape_cast %82 : vector<1x16x8xf32> to vector<16x8xf32>
    %cst_87 = arith.constant dense<0.000000e+00> : vector<80x8xf32>
    %84 = tpu.matmul %77, %83, %cst_87 {dimension_numbers = #tpu.dot_dimension_numbers<[1], [0], [0], [1], [0, 0, 1, 1], [], []>} : vector<80x16xf32>, vector<16x8xf32>, vector<80x8xf32> -> vector<80x8xf32>
    %85 = arith.addf %73, %84 : vector<80x8xf32>
    %c0_88 = arith.constant 0 : index
    %c21 = arith.constant 21 : index
    %c0_89 = arith.constant 0 : index
    %86 = vector.load %arg1[%c0_88, %c21, %c0_89] : memref<1x110x16xf32, #tpu.memory_space<vmem>>, vector<1x80x16xf32>
    %87 = vector.shape_cast %86 : vector<1x80x16xf32> to vector<80x16xf32>
    %c0_90 = arith.constant 0 : index
    %c21_91 = arith.constant 21 : index
    %c0_92 = arith.constant 0 : index
    %88 = vector.load %arg2[%c0_90, %c21_91, %c0_92] : memref<1x110x16xf32, #tpu.memory_space<vmem>>, vector<1x80x16xf32>
    %89 = vector.shape_cast %88 : vector<1x80x16xf32> to vector<80x16xf32>
    %c7 = arith.constant 7 : index
    %c0_93 = arith.constant 0 : index
    %c0_94 = arith.constant 0 : index
    %90 = vector.load %arg3[%c7, %c0_93, %c0_94] : memref<9x16x8xf32, #tpu.memory_space<vmem>>, vector<1x16x8xf32>
    %91 = vector.shape_cast %90 : vector<1x16x8xf32> to vector<16x8xf32>
    %cst_95 = arith.constant dense<0.000000e+00> : vector<80x8xf32>
    %92 = tpu.matmul %87, %91, %cst_95 {dimension_numbers = #tpu.dot_dimension_numbers<[1], [0], [0], [1], [0, 0, 1, 1], [], []>} : vector<80x16xf32>, vector<16x8xf32>, vector<80x8xf32> -> vector<80x8xf32>
    %93 = arith.addf %81, %92 : vector<80x8xf32>
    %c7_96 = arith.constant 7 : index
    %c0_97 = arith.constant 0 : index
    %c0_98 = arith.constant 0 : index
    %94 = vector.load %arg4[%c7_96, %c0_97, %c0_98] : memref<9x16x8xf32, #tpu.memory_space<vmem>>, vector<1x16x8xf32>
    %95 = vector.shape_cast %94 : vector<1x16x8xf32> to vector<16x8xf32>
    %cst_99 = arith.constant dense<0.000000e+00> : vector<80x8xf32>
    %96 = tpu.matmul %89, %95, %cst_99 {dimension_numbers = #tpu.dot_dimension_numbers<[1], [0], [0], [1], [0, 0, 1, 1], [], []>} : vector<80x16xf32>, vector<16x8xf32>, vector<80x8xf32> -> vector<80x8xf32>
    %97 = arith.addf %85, %96 : vector<80x8xf32>
    %c0_100 = arith.constant 0 : index
    %c22 = arith.constant 22 : index
    %c0_101 = arith.constant 0 : index
    %98 = vector.load %arg1[%c0_100, %c22, %c0_101] : memref<1x110x16xf32, #tpu.memory_space<vmem>>, vector<1x80x16xf32>
    %99 = vector.shape_cast %98 : vector<1x80x16xf32> to vector<80x16xf32>
    %c0_102 = arith.constant 0 : index
    %c22_103 = arith.constant 22 : index
    %c0_104 = arith.constant 0 : index
    %100 = vector.load %arg2[%c0_102, %c22_103, %c0_104] : memref<1x110x16xf32, #tpu.memory_space<vmem>>, vector<1x80x16xf32>
    %101 = vector.shape_cast %100 : vector<1x80x16xf32> to vector<80x16xf32>
    %c8 = arith.constant 8 : index
    %c0_105 = arith.constant 0 : index
    %c0_106 = arith.constant 0 : index
    %102 = vector.load %arg3[%c8, %c0_105, %c0_106] : memref<9x16x8xf32, #tpu.memory_space<vmem>>, vector<1x16x8xf32>
    %103 = vector.shape_cast %102 : vector<1x16x8xf32> to vector<16x8xf32>
    %cst_107 = arith.constant dense<0.000000e+00> : vector<80x8xf32>
    %104 = tpu.matmul %99, %103, %cst_107 {dimension_numbers = #tpu.dot_dimension_numbers<[1], [0], [0], [1], [0, 0, 1, 1], [], []>} : vector<80x16xf32>, vector<16x8xf32>, vector<80x8xf32> -> vector<80x8xf32>
    %105 = arith.addf %93, %104 : vector<80x8xf32>
    %c8_108 = arith.constant 8 : index
    %c0_109 = arith.constant 0 : index
    %c0_110 = arith.constant 0 : index
    %106 = vector.load %arg4[%c8_108, %c0_109, %c0_110] : memref<9x16x8xf32, #tpu.memory_space<vmem>>, vector<1x16x8xf32>
    %107 = vector.shape_cast %106 : vector<1x16x8xf32> to vector<16x8xf32>
    %cst_111 = arith.constant dense<0.000000e+00> : vector<80x8xf32>
    %108 = tpu.matmul %101, %107, %cst_111 {dimension_numbers = #tpu.dot_dimension_numbers<[1], [0], [0], [1], [0, 0, 1, 1], [], []>} : vector<80x16xf32>, vector<16x8xf32>, vector<80x8xf32> -> vector<80x8xf32>
    %109 = arith.addf %97, %108 : vector<80x8xf32>
    %c0_112 = arith.constant 0 : index
    %c0_113 = arith.constant 0 : index
    %110 = vector.load %arg5[%c0_112, %c0_113] : memref<1x8xf32, #tpu.memory_space<vmem>>, vector<1x8xf32>
    %111 = vector.broadcast %110 : vector<1x8xf32> to vector<80x8xf32>
    %112 = arith.addf %105, %111 : vector<80x8xf32>
    %cst_114 = arith.constant 0.000000e+00 : f32
    %113 = vector.broadcast %cst_114 : f32 to vector<80x8xf32>
    %114 = arith.cmpf oge, %112, %113 : vector<80x8xf32>
    %cst_115 = arith.constant 2.000000e-01 : f32
    %115 = vector.broadcast %cst_115 : f32 to vector<80x8xf32>
    %116 = arith.mulf %115, %112 : vector<80x8xf32>
    %117 = arith.select %114, %112, %116 : vector<80x8xi1>, vector<80x8xf32>
    %cst_116 = arith.constant 1.41421354 : f32
    %118 = vector.broadcast %cst_116 : f32 to vector<80x8xf32>
    %119 = arith.mulf %117, %118 : vector<80x8xf32>
    %120 = arith.addf %119, %109 : vector<80x8xf32>
    %cst_117 = arith.constant 0.707106769 : f32
    %121 = vector.broadcast %cst_117 : f32 to vector<80x8xf32>
    %122 = arith.mulf %120, %121 : vector<80x8xf32>
    %c0_118 = arith.constant 0 : index
    %c0_119 = arith.constant 0 : index
    %c0_120 = arith.constant 0 : index
    %123 = vector.load %arg6[%c0_118, %c0_119, %c0_120] : memref<1x80x8xf32, #tpu.memory_space<vmem>>, vector<1x80x8xf32>
    %124 = vector.shape_cast %123 : vector<1x80x8xf32> to vector<80x8xf32>
    %125 = vector.shape_cast %122 : vector<80x8xf32> to vector<1x80x8xf32>
    tpu.vector_store %arg6[%c0_118, %c0_119, %c0_120], %125 {strides = array<i32>} : memref<1x80x8xf32, #tpu.memory_space<vmem>>, vector<1x80x8xf32>,
    return
  }
  func.func @transform_0(%arg0: i32) -> (i32, i32, i32) {
    %c0_i32 = arith.constant 0 : i32
    %c0_i32_0 = arith.constant 0 : i32
    %c0_i32_1 = arith.constant 0 : i32
    return %arg0, %c0_i32, %c0_i32_0 : i32, i32, i32
  }
  func.func @transform_1(%arg0: i32) -> (i32, i32, i32) {
    %c0_i32 = arith.constant 0 : i32
    %c0_i32_0 = arith.constant 0 : i32
    %c0_i32_1 = arith.constant 0 : i32
    return %arg0, %c0_i32, %c0_i32_0 : i32, i32, i32
  }
  func.func @transform_2(%arg0: i32) -> (i32, i32, i32) {
    %c0_i32 = arith.constant 0 : i32
    %c0_i32_0 = arith.constant 0 : i32
    %c0_i32_1 = arith.constant 0 : i32
    %c0_i32_2 = arith.constant 0 : i32
    return %c0_i32, %c0_i32_0, %c0_i32_1 : i32, i32, i32
  }
  func.func @transform_3(%arg0: i32) -> (i32, i32, i32) {
    %c0_i32 = arith.constant 0 : i32
    %c0_i32_0 = arith.constant 0 : i32
    %c0_i32_1 = arith.constant 0 : i32
    %c0_i32_2 = arith.constant 0 : i32
    return %c0_i32, %c0_i32_0, %c0_i32_1 : i32, i32, i32
  }
  func.func @transform_4(%arg0: i32) -> (i32, i32) {
    %c0_i32 = arith.constant 0 : i32
    %c0_i32_0 = arith.constant 0 : i32
    %c0_i32_1 = arith.constant 0 : i32
    return %c0_i32, %c0_i32_0 : i32, i32
  }
  func.func @transform_5(%arg0: i32) -> (i32, i32, i32) {
    %c0_i32 = arith.constant 0 : i32
    %c0_i32_0 = arith.constant 0 : i32
    %c0_i32_1 = arith.constant 0 : i32
    return %arg0, %c0_i32, %c0_i32_0 : i32, i32, i32
  }
}

</mosaic_0001>

<bundles_post_ra>
// kernel: resblock_forward.2
= control target key start
LH: loop header
LB: loop body
LE: loop exit
PB: predicated region body
PF: predicated region fallthrough
CT: control target
= control target key end

     0   :  { %s3558_s12 = smov 0   ;;  %s4536_s0 = inlined_call_operand.vmem [shape: f32[2,342,4], index: 0, kind: input, shape index: {}]   ;;  %s4537_s1 = inlined_call_operand.vmem [shape: f32[9,4,4], index: 1, kind: input, shape index: {}]   ;;  %s4538_s2 = inlined_call_operand.vmem [shape: f32[1,4], index: 2, kind: input, shape index: {}]   ;;  %s4539_s3 = inlined_call_operand.vmem [shape: f32[2,288,4], index: 3, kind: output, shape index: {}]  }
   0x1 LB: > { %s3165_s13 = sadd.s32 4294967295, %s3536_s12   ;;  %p3169_p0 = scmp.ge.s32.totalorder %s3536_s12, 1  ;;  %s3536_s12 = sphi %s3558_s12, %s13_s12  }
   0x2   : > { %p137_p1 = scmp.lt.s32.totalorder %s3536_s12, 3 }
   0x4   : > { %p138_p2 = pnand %p3169_p0, %p137_p1 }
   0x5   : > { %p161_p3 = scmp.lt.s32.totalorder (!%p138_p2), %s3165_s13, 1 }
   0x6   : > { %141 = sbr.rel (%p138_p2) target bundleno = 803 (0x323), region = 32 }
   0xb   : > { %v3172_v0 = vld [vmem:[%s4537_s1 + $0x4] sm:$0xf]  ;;  %vm355_vm0 = vcmask 1043456   ;;  %v3247_v1 = vld [vmem:[%s4537_s1 + $0x8] sm:$0xf]  ;;  %s4541_s13 = smov (!%p161_p3, %s3165_s13), 1 }
   0xc   : > { %3515 = vmatpush.msk.msra.mxu1 %vm355_vm0, %v3172_v0  ;;  %3516 = vmatpush.msk.msra.mxu2 %vm355_vm0, %v3172_v0  ;;  %v3285_v2 = vld [vmem:[%s4537_s1 + $0xc] sm:$0xf]  ;;  %v207_v3 = vld [vmem:[%s4537_s1] sm:$0xf]  ;;  %v3323_v4 = vld [vmem:[%s4537_s1 + $0x10] sm:$0xf] }
   0xd   : > { %3517 = vmatpush.msk.msra.mxu3 %vm355_vm0, %v3172_v0  ;;  %s3518_s24 = smul.u32 344, %s4541_s13  ;;  %3173 = vmatpush.msk.msra.mxu0 %vm355_vm0, %v3172_v0  ;;  %vm246_vm1 = vcmask 31744   ;;  %v3399_v29 = vld [vmem:[%s4537_s1 + $0x18] sm:$0xf]  ;;  %v3437_v30 = vld [vmem:[%s4537_s1 + $0x1c] sm:$0xf] }
   0xe   : > { %3248 = vmatpush.msk.msrb.mxu2 %vm355_vm0, %v3247_v1  ;;  %3210 = vmatpush.msk.msrb.mxu1 %vm355_vm0, %v207_v3  ;;  %v3361_v31 = vld [vmem:[%s4537_s1 + $0x14] sm:$0xf]  ;;  %v3475_v36 = vld [vmem:[%s4537_s1 + $0x20] sm:$0xf]  ;;  %s3519_s11 = smul.u32 288, %s4541_s13 }
   0xf   : > { %3286 = vmatpush.msk.msrb.mxu3 %vm355_vm0, %v3285_v2  ;;  %3324 = vmatpush.msk.msrb.mxu0 %vm355_vm0, %v3323_v4  ;;  %s3595_s27 = scalar_lea.vmem %s4536_s0, %s3518_s24 }
  0x10   : > { %v217_v5 = vld [vmem:[%s3595_s27 + $0x49] sm:$0xff]  ;;  %v226_v6 = vld [vmem:[%s3595_s27 + $0x91] sm:$0xff]  ;;  %v235_v7 = vld [vmem:[%s3595_s27 + $0xd9] sm:$0xff]  ;;  %s4260_s16 = scalar_lea.vmem %s4539_s3, %s3519_s11 }
  0x11   : > { %3183 = vmatmul.msk.f32.vlgmr.msra.gmra.mxu1 %vm246_vm1, %v217_v5  ;;  %3192 = vmatmul.msk.f32.vlgmr.msra.gmra.mxu2 %vm246_vm1, %v226_v6  ;;  %v208_v8 = vld [vmem:[%s3595_s27 + $0x1] sm:$0xff]  ;;  %v218_v9 = vld [vmem:[%s3595_s27 + $0x51] sm:$0xff]  ;;  %v227_v10 = vld [vmem:[%s3595_s27 + $0x99] sm:$0xff] }
  0x12   : > { %3201 = vmatmul.msk.f32.vlgmr.msra.gmra.mxu3 %vm246_vm1, %v235_v7  ;;  %3174 = vmatmul.msk.f32.vlgmr.msra.gmra.mxu0 %vm246_vm1, %v208_v8  ;;  %v236_v11 = vld [vmem:[%s3595_s27 + $0xe1] sm:$0xff]  ;;  %v209_v12 = vld [vmem:[%s3595_s27 + $0x9] sm:$0xff]  ;;  %v219_v13 = vld [vmem:[%s3595_s27 + $0x59] sm:$0xff] }
  0x13   : > { %v228_v14 = vld [vmem:[%s3595_s27 + $0xa1] sm:$0xff]  ;;  %v237_v15 = vld [vmem:[%s3595_s27 + $0xe9] sm:$0xff]  ;;  %v210_v16 = vld [vmem:[%s3595_s27 + $0x11] sm:$0xff]  ;;  %3400 = vmatpush.msk.msra.mxu2 %vm355_vm0, %v3399_v29  ;;  %3438 = vmatpush.msk.msra.mxu3 %vm355_vm0, %v3437_v30 }
  0x14   : > { %v220_v17 = vld [vmem:[%s3595_s27 + $0x61] sm:$0xff]  ;;  %v229_v18 = vld [vmem:[%s3595_s27 + $0xa9] sm:$0xff]  ;;  %v238_v19 = vld [vmem:[%s3595_s27 + $0xf1] sm:$0xff]  ;;  %3362 = vmatpush.msk.msra.mxu1 %vm355_vm0, %v3361_v31  ;;  %3476 = vmatpush.msk.msra.mxu0 %vm355_vm0, %v3475_v36 }
  0x15   : > { %v211_v20 = vld [vmem:[%s3595_s27 + $0x19] sm:$0xff]  ;;  %v221_v21 = vld [vmem:[%s3595_s27 + $0x69] sm:$0xff]  ;;  %v230_v22 = vld [vmem:[%s3595_s27 + $0xb1] sm:$0xff] }
  0x16   : > { %v239_v23 = vld [vmem:[%s3595_s27 + $0xf9] sm:$0xff]  ;;  %v212_v24 = vld [vmem:[%s3595_s27 + $0x21] sm:$0xff]  ;;  %v222_v25 = vld [vmem:[%s3595_s27 + $0x71] sm:$0xff] }
  0x17   : > { %v231_v26 = vld [vmem:[%s3595_s27 + $0xb9] sm:$0xff]  ;;  %v240_v27 = vld [vmem:[%s3595_s27 + $0x101] sm:$0xff]  ;;  %v213_v28 = vld [vmem:[%s3595_s27 + $0x29] sm:$0xff] }
  0x18   : > { %v223_v32 = vld [vmem:[%s3595_s27 + $0x79] sm:$0xff]  ;;  %v232_v33 = vld [vmem:[%s3595_s27 + $0xc1] sm:$0xff]  ;;  %v241_v34 = vld [vmem:[%s3595_s27 + $0x109] sm:$0xff] }
  0x19   : > { %3184 = vmatmul.msk.f32.gmra.mxu1 %vm246_vm1, %v218_v9  ;;  %3193 = vmatmul.msk.f32.gmra.mxu2 %vm246_vm1, %v227_v10  ;;  %v214_v35 = vld [vmem:[%s3595_s27 + $0x31] sm:$0xff]  ;;  %v224_v37 = vld [vmem:[%s3595_s27 + $0x81] sm:$0xff]  ;;  %v233_v38 = vld [vmem:[%s3595_s27 + $0xc9] sm:$0xff] }
  0x1a   : > { %3202 = vmatmul.msk.f32.gmra.mxu3 %vm246_vm1, %v236_v11  ;;  %3175 = vmatmul.msk.f32.gmra.mxu0 %vm246_vm1, %v209_v12  ;;  %v242_v39 = vld [vmem:[%s3595_s27 + $0x111] sm:$0xff]  ;;  %v215_v40 = vld [vmem:[%s3595_s27 + $0x39] sm:$0xff]  ;;  %v225_v41 = vld [vmem:[%s3595_s27 + $0x89] sm:$0xff] }
  0x1b   : > { %v234_v42 = vld [vmem:[%s3595_s27 + $0xd1] sm:$0xff]  ;;  %v243_v43 = vld [vmem:[%s3595_s27 + $0x119] sm:$0xff]  ;;  %v216_v44 = vld [vmem:[%s3595_s27 + $0x41] sm:$0xff] }
  0x1c   : > { %v171_v45 = vld [vmem:[%s3595_s27] sm:$0xff]  ;;  %v1030_v47 = vld [vmem:[%s3595_s27 + $0x12] sm:$0xff]  ;;  %v172_v49 = vld [vmem:[%s3595_s27 + $0x8] sm:$0xff] }
  0x1d   : > { %v720_v46 = vld [vmem:[%s3595_s27 + $0x2] sm:$0xff]  ;;  %v1340_v48 = vld [vmem:[%s3595_s27 + $0x13] sm:$0xff]  ;;  %v721_v50 = vld [vmem:[%s3595_s27 + $0xa] sm:$0xff] }
  0x1e   : > { %v1031_v51 = vld [vmem:[%s3595_s27 + $0x1a] sm:$0xff]  ;;  %v173_v53 = vld [vmem:[%s3595_s27 + $0x10] sm:$0xff]  ;;  %v1032_v54 = vld [vmem:[%s3595_s27 + $0x22] sm:$0xff] }
  0x1f   : > { %v1341_v52 = vld [vmem:[%s3595_s27 + $0x1b] sm:$0xff]  ;;  %v1342_v55 = vld [vmem:[%s3595_s27 + $0x23] sm:$0xff]  ;;  %v1343_v58 = vld [vmem:[%s3595_s27 + $0x2b] sm:$0xff] }
  0x20   : > { %v174_v56 = vld [vmem:[%s3595_s27 + $0x18] sm:$0xff]  ;;  %v1033_v57 = vld [vmem:[%s3595_s27 + $0x2a] sm:$0xff]  ;;  %v175_v59 = vld [vmem:[%s3595_s27 + $0x20] sm:$0xff] }
  0x21   : > { %3185 = vmatmul.msk.f32.gmra.mxu1 %vm246_vm1, %v219_v13  ;;  %3194 = vmatmul.msk.f32.gmra.mxu2 %vm246_vm1, %v228_v14  ;;  %v1034_v60 = vld [vmem:[%s3595_s27 + $0x32] sm:$0xff]  ;;  %v176_v62 = vld [vmem:[%s3595_s27 + $0x28] sm:$0xff]  ;;  %v1035_v63 = vld [vmem:[%s3595_s27 + $0x3a] sm:$0xff] }
  0x22   : > { %3203 = vmatmul.msk.f32.gmra.mxu3 %vm246_vm1, %v237_v15  ;;  %3176 = vmatmul.msk.f32.gmra.mxu0 %vm246_vm1, %v210_v16  ;;  %v1344_v61 = vld [vmem:[%s3595_s27 + $0x33] sm:$0xff]  ;;  %v1345_v0 = vld [vmem:[%s3595_s27 + $0x3b] sm:$0xff]  ;;  %v1346_v3 = vld [vmem:[%s3595_s27 + $0x43] sm:$0xff] }
  0x23   : > { %v177_v1 = vld [vmem:[%s3595_s27 + $0x30] sm:$0xff]  ;;  %v1036_v2 = vld [vmem:[%s3595_s27 + $0x42] sm:$0xff]  ;;  %v178_v5 = vld [vmem:[%s3595_s27 + $0x38] sm:$0xff] }
  0x24   : > { %v1037_v6 = vld [vmem:[%s3595_s27 + $0x4a] sm:$0xff]  ;;  %v179_v12 = vld [vmem:[%s3595_s27 + $0x40] sm:$0xff]  ;;  %v1038_v13 = vld [vmem:[%s3595_s27 + $0x52] sm:$0xff] }
  0x25   : > { %v1347_v8 = vld [vmem:[%s3595_s27 + $0x4b] sm:$0xff]  ;;  %v1348_v15 = vld [vmem:[%s3595_s27 + $0x53] sm:$0xff]  ;;  %v1350_v29 = vld [vmem:[%s3595_s27 + $0x63] sm:$0xff] }
  0x26   : > { %v1351_v36 = vld [vmem:[%s3595_s27 + $0x6b] sm:$0xff] }
  0x29   : > { %3186 = vmatmul.msk.f32.gmra.mxu1 %vm246_vm1, %v220_v17  ;;  %3195 = vmatmul.msk.f32.gmra.mxu2 %vm246_vm1, %v229_v18 }
  0x2a   : > { %3204 = vmatmul.msk.f32.gmra.mxu3 %vm246_vm1, %v238_v19  ;;  %3177 = vmatmul.msk.f32.gmra.mxu0 %vm246_vm1, %v211_v20  ;;  %v180_v19 = vld [vmem:[%s3595_s27 + $0x48] sm:$0xff]  ;;  %v1039_v20 = vld [vmem:[%s3595_s27 + $0x5a] sm:$0xff] }
  0x31   : > { %3187 = vmatmul.msk.f32.gmra.mxu1 %vm246_vm1, %v221_v21  ;;  %3196 = vmatmul.msk.f32.gmra.mxu2 %vm246_vm1, %v230_v22  ;;  %v1349_v22 = vld [vmem:[%s3595_s27 + $0x5b] sm:$0xff] }
  0x32   : > { %3205 = vmatmul.msk.f32.gmra.mxu3 %vm246_vm1, %v239_v23  ;;  %3178 = vmatmul.msk.f32.gmra.mxu0 %vm246_vm1, %v212_v24 }
  0x39   : > { %3188 = vmatmul.msk.f32.gmra.mxu1 %vm246_vm1, %v222_v25  ;;  %3197 = vmatmul.msk.f32.gmra.mxu2 %vm246_vm1, %v231_v26  ;;  %v181_v26 = vld [vmem:[%s3595_s27 + $0x50] sm:$0xff] }
  0x3a   : > { %3206 = vmatmul.msk.f32.gmra.mxu3 %vm246_vm1, %v240_v27  ;;  %3179 = vmatmul.msk.f32.gmra.mxu0 %vm246_vm1, %v213_v28  ;;  %v1040_v27 = vld [vmem:[%s3595_s27 + $0x62] sm:$0xff] }
  0x41   : > { %3189 = vmatmul.msk.f32.gmra.mxu1 %vm246_vm1, %v223_v32  ;;  %3198 = vmatmul.msk.f32.gmra.mxu2 %vm246_vm1, %v232_v33  ;;  %v182_v33 = vld [vmem:[%s3595_s27 + $0x58] sm:$0xff] }
  0x42   : > { %3207 = vmatmul.msk.f32.gmra.mxu3 %vm246_vm1, %v241_v34  ;;  %3180 = vmatmul.msk.f32.gmra.mxu0 %vm246_vm1, %v214_v35  ;;  %v1041_v34 = vld [vmem:[%s3595_s27 + $0x6a] sm:$0xff] }
  0x49   : > { %3190 = vmatmul.msk.f32.gmra.mxu1 %vm246_vm1, %v224_v37  ;;  %3199 = vmatmul.msk.f32.gmra.mxu2 %vm246_vm1, %v233_v38 }
  0x4a   : > { %3208 = vmatmul.msk.f32.gmra.mxu3 %vm246_vm1, %v242_v39  ;;  %3181 = vmatmul.msk.f32.gmra.mxu0 %vm246_vm1, %v215_v40  ;;  %v183_v40 = vld [vmem:[%s3595_s27 + $0x60] sm:$0xff] }
  0x51   : > { %3191 = vmatmul.msk.f32.gmra.mxu1 %vm246_vm1, %v225_v41  ;;  %3200 = vmatmul.msk.f32.gmra.mxu2 %vm246_vm1, %v234_v42  ;;  %v1042_v41 = vld [vmem:[%s3595_s27 + $0x72] sm:$0xff] }
  0x52   : > { %3209 = vmatmul.msk.f32.gmra.mxu3 %vm246_vm1, %v243_v43  ;;  %3182 = vmatmul.msk.f32.gmra.mxu0 %vm246_vm1, %v216_v44  ;;  %v1352_v43 = vld [vmem:[%s3595_s27 + $0x73] sm:$0xff] }
  0x59   : > { %3211 = vmatmul.msk.f32.vlgmr.msrb.gmra.mxu1 %vm246_vm1, %v171_v45  ;;  %3249 = vmatmul.msk.f32.vlgmr.msrb.gmra.mxu2 %vm246_vm1, %v720_v46 }
  0x5a   : > { %3287 = vmatmul.msk.f32.vlgmr.msrb.gmra.mxu3 %vm246_vm1, %v1030_v47  ;;  %3325 = vmatmul.msk.f32.vlgmr.msrb.gmra.mxu0 %vm246_vm1, %v1340_v48  ;;  %v1043_v48 = vld [vmem:[%s3595_s27 + $0x7a] sm:$0xff] }
  0x61   : > { %3212 = vmatmul.msk.f32.gmra.mxu1 %vm246_vm1, %v172_v49  ;;  %3250 = vmatmul.msk.f32.gmra.mxu2 %vm246_vm1, %v721_v50  ;;  %v1353_v50 = vld [vmem:[%s3595_s27 + $0x7b] sm:$0xff] }
  0x62   : > { %3288 = vmatmul.msk.f32.gmra.mxu3 %vm246_vm1, %v1031_v51  ;;  %3326 = vmatmul.msk.f32.gmra.mxu0 %vm246_vm1, %v1341_v52 }
  0x69   : > { %3213 = vmatmul.msk.f32.gmra.mxu1 %vm246_vm1, %v173_v53  ;;  %3251 = vmatmul.msk.f32.gmra.mxu2 %vm246_vm1, %v1030_v47  ;;  %v184_v47 = vld [vmem:[%s3595_s27 + $0x68] sm:$0xff] }
  0x6a   : > { %3289 = vmatmul.msk.f32.gmra.mxu3 %vm246_vm1, %v1032_v54  ;;  %3327 = vmatmul.msk.f32.gmra.mxu0 %vm246_vm1, %v1342_v55  ;;  %v1044_v55 = vld [vmem:[%s3595_s27 + $0x82] sm:$0xff] }
  0x71   : > { %3214 = vmatmul.msk.f32.gmra.mxu1 %vm246_vm1, %v174_v56  ;;  %3252 = vmatmul.msk.f32.gmra.mxu2 %vm246_vm1, %v1031_v51 }
  0x72   : > { %3290 = vmatmul.msk.f32.gmra.mxu3 %vm246_vm1, %v1033_v57  ;;  %3328 = vmatmul.msk.f32.gmra.mxu0 %vm246_vm1, %v1343_v58 }
  0x79   : > { %3215 = vmatmul.msk.f32.gmra.mxu1 %vm246_vm1, %v175_v59  ;;  %3253 = vmatmul.msk.f32.gmra.mxu2 %vm246_vm1, %v1032_v54  ;;  %v185_v54 = vld [vmem:[%s3595_s27 + $0x70] sm:$0xff] }
  0x7a   : > { %3291 = vmatmul.msk.f32.gmra.mxu3 %vm246_vm1, %v1034_v60  ;;  %3329 = vmatmul.msk.f32.gmra.mxu0 %vm246_vm1, %v1344_v61  ;;  %v186_v61 = vld [vmem:[%s3595_s27 + $0x78] sm:$0xff] }
  0x81   : > { %3216 = vmatmul.msk.f32.gmra.mxu1 %vm246_vm1, %v176_v62  ;;  %3254 = vmatmul.msk.f32.gmra.mxu2 %vm246_vm1, %v1033_v57  ;;  %v1354_v57 = vld [vmem:[%s3595_s27 + $0x83] sm:$0xff] }
  0x82   : > { %3292 = vmatmul.msk.f32.gmra.mxu3 %vm246_vm1, %v1035_v63  ;;  %3330 = vmatmul.msk.f32.gmra.mxu0 %vm246_vm1, %v1345_v0  ;;  %v1045_v62 = vld [vmem:[%s3595_s27 + $0x8a] sm:$0xff] }
  0x83   : > { %v1355_v0 = vld [vmem:[%s3595_s27 + $0x8b] sm:$0xff] }
  0x89   : > { %3217 = vmatmul.msk.f32.gmra.mxu1 %vm246_vm1, %v177_v1  ;;  %3255 = vmatmul.msk.f32.gmra.mxu2 %vm246_vm1, %v1034_v60 }
  0x8a   : > { %3293 = vmatmul.msk.f32.gmra.mxu3 %vm246_vm1, %v1036_v2  ;;  %3331 = vmatmul.msk.f32.gmra.mxu0 %vm246_vm1, %v1346_v3 }
  0x8e   : > { %v3736_v4 = vpop.f32.mrf.mxu1 }
  0x8f   : > { %v3740_v7 = vpop.f32.mrf.mxu0 }
  0x91   : > { %3218 = vmatmul.msk.f32.gmra.mxu1 %vm246_vm1, %v178_v5  ;;  %3256 = vmatmul.msk.f32.gmra.mxu2 %vm246_vm1, %v1035_v63  ;;  %v187_v5 = vld [vmem:[%s3595_s27 + $0x80] sm:$0xff] }
  0x92   : > { %3294 = vmatmul.msk.f32.gmra.mxu3 %vm246_vm1, %v1037_v6  ;;  %3332 = vmatmul.msk.f32.gmra.mxu0 %vm246_vm1, %v1347_v8 }
  0x94   : > { %v3747_v9 = vpop.f32.mrf.mxu2 }
  0x95   : > { %v3749_v10 = vpop.f32.mrf.mxu3 }
  0x96   : > { %v3751_v11 = vpop.f32.mrf.mxu1 }
  0x97   : > { %v3755_v14 = vpop.f32.mrf.mxu0 }
  0x99   : > { %3219 = vmatmul.msk.f32.gmra.mxu1 %vm246_vm1, %v179_v12  ;;  %3257 = vmatmul.msk.f32.gmra.mxu2 %vm246_vm1, %v1036_v2  ;;  %v1356_v12 = vld [vmem:[%s3595_s27 + $0x93] sm:$0xff] }
  0x9a   : > { %3295 = vmatmul.msk.f32.gmra.mxu3 %vm246_vm1, %v1038_v13  ;;  %3333 = vmatmul.msk.f32.gmra.mxu0 %vm246_vm1, %v1348_v15 }
  0x9c   : > { %v3762_v16 = vpop.f32.mrf.mxu2 }
  0x9d   : > { %v3764_v17 = vpop.f32.mrf.mxu3 }
  0x9e   : > { %v3766_v18 = vpop.f32.mrf.mxu1 }
  0x9f   : > { %v3770_v21 = vpop.f32.mrf.mxu0 }
  0xa1   : > { %3220 = vmatmul.msk.f32.gmra.mxu1 %vm246_vm1, %v180_v19  ;;  %3258 = vmatmul.msk.f32.gmra.mxu2 %vm246_vm1, %v1037_v6  ;;  %v1046_v6 = vld [vmem:[%s3595_s27 + $0x92] sm:$0xff] }
  0xa2   : > { %3296 = vmatmul.msk.f32.gmra.mxu3 %vm246_vm1, %v1039_v20  ;;  %3334 = vmatmul.msk.f32.gmra.mxu0 %vm246_vm1, %v1349_v22 }
  0xa4   : > { %v3777_v23 = vpop.f32.mrf.mxu2 }
  0xa5   : > { %v3779_v24 = vpop.f32.mrf.mxu3 }
  0xa6   : > { %v3781_v25 = vpop.f32.mrf.mxu1 }
  0xa7   : > { %v3785_v28 = vpop.f32.mrf.mxu0 }
  0xa9   : > { %3221 = vmatmul.msk.f32.gmra.mxu1 %vm246_vm1, %v181_v26  ;;  %3259 = vmatmul.msk.f32.gmra.mxu2 %vm246_vm1, %v1038_v13  ;;  %v188_v26 = vld [vmem:[%s3595_s27 + $0x88] sm:$0xff] }
  0xaa   : > { %3297 = vmatmul.msk.f32.gmra.mxu3 %vm246_vm1, %v1040_v27  ;;  %3335 = vmatmul.msk.f32.gmra.mxu0 %vm246_vm1, %v1350_v29  ;;  %v1047_v29 = vld [vmem:[%s3595_s27 + $0x9a] sm:$0xff] }
  0xac   : > { %v3792_v30 = vpop.f32.mrf.mxu2 }
  0xad   : > { %v3794_v31 = vpop.f32.mrf.mxu3 }
  0xae   : > { %v3796_v32 = vpop.f32.mrf.mxu1 }
  0xaf   : > { %v3800_v35 = vpop.f32.mrf.mxu0 }
  0xb1   : > { %3222 = vmatmul.msk.f32.gmra.mxu1 %vm246_vm1, %v182_v33  ;;  %3260 = vmatmul.msk.f32.gmra.mxu2 %vm246_vm1, %v1039_v20 }
  0xb2   : > { %3298 = vmatmul.msk.f32.gmra.mxu3 %vm246_vm1, %v1041_v34  ;;  %3336 = vmatmul.msk.f32.gmra.mxu0 %vm246_vm1, %v1351_v36 }
  0xb4   : > { %v3807_v37 = vpop.f32.mrf.mxu2 }
  0xb5   : > { %v3809_v38 = vpop.f32.mrf.mxu3 }
  0xb6   : > { %v3811_v39 = vpop.f32.mrf.mxu1 }
  0xb7   : > { %v3815_v42 = vpop.f32.mrf.mxu0 }
  0xb9   : > { %3223 = vmatmul.msk.f32.gmra.mxu1 %vm246_vm1, %v183_v40  ;;  %3261 = vmatmul.msk.f32.gmra.mxu2 %vm246_vm1, %v1040_v27 }
  0xba   : > { %3299 = vmatmul.msk.f32.gmra.mxu3 %vm246_vm1, %v1042_v41  ;;  %3337 = vmatmul.msk.f32.gmra.mxu0 %vm246_vm1, %v1352_v43 }
  0xbc   : > { %v3822_v44 = vpop.f32.mrf.mxu2 }
  0xbd   : > { %v3824_v45 = vpop.f32.mrf.mxu3 }
  0xbe   : > { %v3826_v46 = vpop.f32.mrf.mxu1 }
  0xbf   : > { %v3830_v49 = vpop.f32.mrf.mxu0 }
  0xc1   : > { %3224 = vmatmul.msk.f32.gmra.mxu1 %vm246_vm1, %v184_v47  ;;  %3262 = vmatmul.msk.f32.gmra.mxu2 %vm246_vm1, %v1041_v34  ;;  %v1357_v34 = vld [vmem:[%s3595_s27 + $0x9b] sm:$0xff] }
  0xc2   : > { %3300 = vmatmul.msk.f32.gmra.mxu3 %vm246_vm1, %v1043_v48  ;;  %3338 = vmatmul.msk.f32.gmra.mxu0 %vm246_vm1, %v1353_v50 }
  0xc4   : > { %v3837_v51 = vpop.f32.mrf.mxu2 }
  0xc5   : > { %v3839_v52 = vpop.f32.mrf.mxu3 }
  0xc6   : > { %v3841_v53 = vpop.f32.mrf.mxu1 }
  0xc7   : > { %v3845_v56 = vpop.f32.mrf.mxu0 }
  0xc9   : > { %3225 = vmatmul.msk.f32.gmra.mxu1 %vm246_vm1, %v185_v54  ;;  %3263 = vmatmul.msk.f32.gmra.mxu2 %vm246_vm1, %v1042_v41  ;;  %v1048_v54 = vld [vmem:[%s3595_s27 + $0xa2] sm:$0xff] }
  0xca   : > { %3301 = vmatmul.msk.f32.gmra.mxu3 %vm246_vm1, %v1044_v55  ;;  %3339 = vmatmul.msk.f32.gmra.mxu0 %vm246_vm1, %v1354_v57  ;;  %v1358_v57 = vld [vmem:[%s3595_s27 + $0xa3] sm:$0xff] }
  0xcc   : > { %v3852_v58 = vpop.f32.mrf.mxu2 }
  0xcd   : > { %v3854_v59 = vpop.f32.mrf.mxu3 }
  0xce   : > { %v3856_v60 = vpop.f32.mrf.mxu1 }
  0xcf   : > { %v3860_v63 = vpop.f32.mrf.mxu0 }
  0xd1   : > { %3226 = vmatmul.msk.f32.gmra.mxu1 %vm246_vm1, %v186_v61  ;;  %3264 = vmatmul.msk.f32.gmra.mxu2 %vm246_vm1, %v1043_v48  ;;  %v189_v48 = vld [vmem:[%s3595_s27 + $0x90] sm:$0xff] }
  0xd2   : > { %3302 = vmatmul.msk.f32.gmra.mxu3 %vm246_vm1, %v1045_v62  ;;  %3340 = vmatmul.msk.f32.gmra.mxu0 %vm246_vm1, %v1355_v0 }
  0xd4   : > { %v3867_v1 = vpop.f32.mrf.mxu2 }
  0xd5   : > { %v3869_v2 = vpop.f32.mrf.mxu3 }
  0xd6   : > { %v612_v3 = vpop.f32.mrf.mxu1 }
  0xd7   : > { %v1506_v8 = vpop.f32.mrf.mxu0  ;;  %v613_v13 = vadd.f32 %v612_v3, %v3740_v7 }
  0xd9   : > { %3227 = vmatmul.msk.f32.gmra.mxu1 %vm246_vm1, %v187_v5  ;;  %3265 = vmatmul.msk.f32.gmra.mxu2 %vm246_vm1, %v1044_v55 }
  0xda   : > { %3303 = vmatmul.msk.f32.gmra.mxu3 %vm246_vm1, %v1046_v6  ;;  %3341 = vmatmul.msk.f32.gmra.mxu0 %vm246_vm1, %v1356_v12 }
  0xdc   : > { %v886_v15 = vpop.f32.mrf.mxu2 }
  0xdd   : > { %v994_v19 = vadd.f32 %v886_v15, %v613_v13  ;;  %v1196_v20 = vpop.f32.mrf.mxu3  ;;  %v1049_v13 = vld [vmem:[%s3595_s27 + $0xaa] sm:$0xff] }
  0xde   : > { %v615_v22 = vpop.f32.mrf.mxu1 }
  0xdf   : > { %v1304_v27 = vadd.f32 %v1196_v20, %v994_v19  ;;  %v1509_v33 = vpop.f32.mrf.mxu0  ;;  %v616_v7 = vadd.f32 %v615_v22, %v3755_v14  ;;  %v1359_v19 = vld [vmem:[%s3595_s27 + $0xab] sm:$0xff] }
  0xe1   : > { %v3882_v36 = vadd.f32 %v1506_v8, %v1304_v27  ;;  %3228 = vmatmul.msk.f32.gmra.mxu1 %vm246_vm1, %v188_v26  ;;  %3266 = vmatmul.msk.f32.gmra.mxu2 %vm246_vm1, %v1045_v62  ;;  %v190_v8 = vld [vmem:[%s3595_s27 + $0x98] sm:$0xff] }
  0xe2   : > { %3304 = vmatmul.msk.f32.gmra.mxu3 %vm246_vm1, %v1047_v29  ;;  %3342 = vmatmul.msk.f32.gmra.mxu0 %vm246_vm1, %v1357_v34 }
  0xe4   : > { %v889_v40 = vpop.f32.mrf.mxu2 }
  0xe5   : > { %v995_v41 = vadd.f32 %v889_v40, %v616_v7  ;;  %v1199_v43 = vpop.f32.mrf.mxu3  ;;  %v1050_v7 = vld [vmem:[%s3595_s27 + $0xb2] sm:$0xff] }
  0xe6   : > { %v618_v47 = vpop.f32.mrf.mxu1 }
  0xe7   : > { %v1305_v50 = vadd.f32 %v1199_v43, %v995_v41  ;;  %v1512_v55 = vpop.f32.mrf.mxu0  ;;  %v619_v14 = vadd.f32 %v618_v47, %v3770_v21  ;;  %v1360_v41 = vld [vmem:[%s3595_s27 + $0xb3] sm:$0xff] }
  0xe9   : > { %v3892_v61 = vadd.f32 %v1509_v33, %v1305_v50  ;;  %3229 = vmatmul.msk.f32.gmra.mxu1 %vm246_vm1, %v189_v48  ;;  %3267 = vmatmul.msk.f32.gmra.mxu2 %vm246_vm1, %v1046_v6  ;;  %v191_v33 = vld [vmem:[%s3595_s27 + $0xa0] sm:$0xff] }
  0xea   : > { %3305 = vmatmul.msk.f32.gmra.mxu3 %vm246_vm1, %v1048_v54  ;;  %3343 = vmatmul.msk.f32.gmra.mxu0 %vm246_vm1, %v1358_v57 }
  0xec   : > { %v892_v62 = vpop.f32.mrf.mxu2 }
  0xed   : > { %v996_v0 = vadd.f32 %v892_v62, %v619_v14  ;;  %v1202_v3 = vpop.f32.mrf.mxu3  ;;  %v1051_v14 = vld [vmem:[%s3595_s27 + $0xba] sm:$0xff] }
  0xee   : > { %v621_v5 = vpop.f32.mrf.mxu1 }
  0xef   : > { %v1306_v12 = vadd.f32 %v1202_v3, %v996_v0  ;;  %v1515_v15 = vpop.f32.mrf.mxu0  ;;  %v622_v21 = vadd.f32 %v621_v5, %v3785_v28  ;;  %v1361_v0 = vld [vmem:[%s3595_s27 + $0xbb] sm:$0xff] }
  0xf1   : > { %v3902_v20 = vadd.f32 %v1512_v55, %v1306_v12  ;;  %3230 = vmatmul.msk.f32.gmra.mxu1 %vm246_vm1, %v190_v8  ;;  %3268 = vmatmul.msk.f32.gmra.mxu2 %vm246_vm1, %v1047_v29  ;;  %v192_v55 = vld [vmem:[%s3595_s27 + $0xa8] sm:$0xff] }
  0xf2   : > { %3306 = vmatmul.msk.f32.gmra.mxu3 %vm246_vm1, %v1049_v13  ;;  %3344 = vmatmul.msk.f32.gmra.mxu0 %vm246_vm1, %v1359_v19 }
  0xf4   : > { %v895_v6 = vpop.f32.mrf.mxu2 }
  0xf5   : > { %v997_v22 = vadd.f32 %v895_v6, %v622_v21  ;;  %v1205_v26 = vpop.f32.mrf.mxu3  ;;  %v1052_v21 = vld [vmem:[%s3595_s27 + $0xc2] sm:$0xff] }
  0xf6   : > { %v624_v27 = vpop.f32.mrf.mxu1 }
  0xf7   : > { %v1307_v34 = vadd.f32 %v1205_v26, %v997_v22  ;;  %v1518_v40 = vpop.f32.mrf.mxu0  ;;  %v625_v28 = vadd.f32 %v624_v27, %v3800_v35  ;;  %v1362_v22 = vld [vmem:[%s3595_s27 + $0xc3] sm:$0xff] }
  0xf9   : > { %v3912_v43 = vadd.f32 %v1515_v15, %v1307_v34  ;;  %3231 = vmatmul.msk.f32.gmra.mxu1 %vm246_vm1, %v191_v33  ;;  %3269 = vmatmul.msk.f32.gmra.mxu2 %vm246_vm1, %v1048_v54  ;;  %v193_v15 = vld [vmem:[%s3595_s27 + $0xb0] sm:$0xff] }
  0xfa   : > { %3307 = vmatmul.msk.f32.gmra.mxu3 %vm246_vm1, %v1050_v7  ;;  %3345 = vmatmul.msk.f32.gmra.mxu0 %vm246_vm1, %v1360_v41 }
  0xfc   : > { %v898_v29 = vpop.f32.mrf.mxu2 }
  0xfd   : > { %v998_v47 = vadd.f32 %v898_v29, %v625_v28  ;;  %v1208_v48 = vpop.f32.mrf.mxu3  ;;  %v1053_v28 = vld [vmem:[%s3595_s27 + $0xca] sm:$0xff] }
  0xfe   : > { %v627_v50 = vpop.f32.mrf.mxu1 }
  0xff   : > { %v1308_v57 = vadd.f32 %v1208_v48, %v998_v47  ;;  %v1521_v62 = vpop.f32.mrf.mxu0  ;;  %v628_v35 = vadd.f32 %v627_v50, %v3815_v42  ;;  %v1363_v47 = vld [vmem:[%s3595_s27 + $0xcb] sm:$0xff] }
 0x101   : > { %v3922_v3 = vadd.f32 %v1518_v40, %v1308_v57  ;;  %3232 = vmatmul.msk.f32.gmra.mxu1 %vm246_vm1, %v192_v55  ;;  %3270 = vmatmul.msk.f32.gmra.mxu2 %vm246_vm1, %v1049_v13  ;;  %v194_v40 = vld [vmem:[%s3595_s27 + $0xb8] sm:$0xff] }
 0x102   : > { %3308 = vmatmul.msk.f32.gmra.mxu3 %vm246_vm1, %v1051_v14  ;;  %3346 = vmatmul.msk.f32.gmra.mxu0 %vm246_vm1, %v1361_v0 }
 0x104   : > { %v901_v54 = vpop.f32.mrf.mxu2 }
 0x105   : > { %v999_v5 = vadd.f32 %v901_v54, %v628_v35  ;;  %v1211_v8 = vpop.f32.mrf.mxu3  ;;  %v1054_v35 = vld [vmem:[%s3595_s27 + $0xd2] sm:$0xff] }
 0x106   : > { %v630_v12 = vpop.f32.mrf.mxu1 }
 0x107   : > { %v1309_v19 = vadd.f32 %v1211_v8, %v999_v5  ;;  %v1524_v6 = vpop.f32.mrf.mxu0  ;;  %v631_v42 = vadd.f32 %v630_v12, %v3830_v49  ;;  %v1364_v5 = vld [vmem:[%s3595_s27 + $0xd3] sm:$0xff] }
 0x109   : > { %v3932_v26 = vadd.f32 %v1521_v62, %v1309_v19  ;;  %3233 = vmatmul.msk.f32.gmra.mxu1 %vm246_vm1, %v193_v15  ;;  %3271 = vmatmul.msk.f32.gmra.mxu2 %vm246_vm1, %v1050_v7  ;;  %v195_v62 = vld [vmem:[%s3595_s27 + $0xc0] sm:$0xff] }
 0x10a   : > { %3309 = vmatmul.msk.f32.gmra.mxu3 %vm246_vm1, %v1052_v21  ;;  %3347 = vmatmul.msk.f32.gmra.mxu0 %vm246_vm1, %v1362_v22 }
 0x10c   : > { %v904_v13 = vpop.f32.mrf.mxu2 }
 0x10d   : > { %v1000_v27 = vadd.f32 %v904_v13, %v631_v42  ;;  %v1214_v33 = vpop.f32.mrf.mxu3  ;;  %v1055_v42 = vld [vmem:[%s3595_s27 + $0xda] sm:$0xff] }
 0x10e   : > { %v633_v34 = vpop.f32.mrf.mxu1 }
 0x10f   : > { %v1310_v41 = vadd.f32 %v1214_v33, %v1000_v27  ;;  %v1527_v29 = vpop.f32.mrf.mxu0  ;;  %v634_v49 = vadd.f32 %v633_v34, %v3845_v56  ;;  %v1365_v27 = vld [vmem:[%s3595_s27 + $0xdb] sm:$0xff] }
 0x111   : > { %v3942_v48 = vadd.f32 %v1524_v6, %v1310_v41  ;;  %3234 = vmatmul.msk.f32.gmra.mxu1 %vm246_vm1, %v194_v40  ;;  %3272 = vmatmul.msk.f32.gmra.mxu2 %vm246_vm1, %v1051_v14  ;;  %v196_v6 = vld [vmem:[%s3595_s27 + $0xc8] sm:$0xff] }
 0x112   : > { %3310 = vmatmul.msk.f32.gmra.mxu3 %vm246_vm1, %v1053_v28  ;;  %3348 = vmatmul.msk.f32.gmra.mxu0 %vm246_vm1, %v1363_v47 }
 0x114   : > { %v907_v7 = vpop.f32.mrf.mxu2 }
 0x115   : > { %v1001_v50 = vadd.f32 %v907_v7, %v634_v49  ;;  %v1217_v55 = vpop.f32.mrf.mxu3  ;;  %v1056_v49 = vld [vmem:[%s3595_s27 + $0xe2] sm:$0xff] }
 0x116   : > { %v636_v57 = vpop.f32.mrf.mxu1 }
 0x117   : > { %v1311_v0 = vadd.f32 %v1217_v55, %v1001_v50  ;;  %v1530_v54 = vpop.f32.mrf.mxu0  ;;  %v637_v56 = vadd.f32 %v636_v57, %v3860_v63  ;;  %v1366_v50 = vld [vmem:[%s3595_s27 + $0xe3] sm:$0xff] }
 0x119   : > { %v3952_v8 = vadd.f32 %v1527_v29, %v1311_v0  ;;  %3235 = vmatmul.msk.f32.gmra.mxu1 %vm246_vm1, %v195_v62  ;;  %3273 = vmatmul.msk.f32.gmra.mxu2 %vm246_vm1, %v1052_v21  ;;  %v197_v29 = vld [vmem:[%s3595_s27 + $0xd0] sm:$0xff] }
 0x11a   : > { %3311 = vmatmul.msk.f32.gmra.mxu3 %vm246_vm1, %v1054_v35  ;;  %3349 = vmatmul.msk.f32.gmra.mxu0 %vm246_vm1, %v1364_v5 }
 0x11c   : > { %v910_v14 = vpop.f32.mrf.mxu2 }
 0x11d   : > { %v1002_v12 = vadd.f32 %v910_v14, %v637_v56  ;;  %v1220_v15 = vpop.f32.mrf.mxu3  ;;  %v1057_v56 = vld [vmem:[%s3595_s27 + $0xea] sm:$0xff] }
 0x11e   : > { %v639_v19 = vpop.f32.mrf.mxu1 }
 0x11f   : > { %v1312_v22 = vadd.f32 %v1220_v15, %v1002_v12  ;;  %v1533_v13 = vpop.f32.mrf.mxu0  ;;  %v640_v63 = vadd.f32 %v639_v19, %v3736_v4  ;;  %v1367_v12 = vld [vmem:[%s3595_s27 + $0xeb] sm:$0xff] }
 0x121   : > { %v3962_v33 = vadd.f32 %v1530_v54, %v1312_v22  ;;  %3236 = vmatmul.msk.f32.gmra.mxu1 %vm246_vm1, %v196_v6  ;;  %3274 = vmatmul.msk.f32.gmra.mxu2 %vm246_vm1, %v1053_v28  ;;  %v198_v54 = vld [vmem:[%s3595_s27 + $0xd8] sm:$0xff] }
 0x122   : > { %3312 = vmatmul.msk.f32.gmra.mxu3 %vm246_vm1, %v1055_v42  ;;  %3350 = vmatmul.msk.f32.gmra.mxu0 %vm246_vm1, %v1365_v27 }
 0x124   : > { %v913_v21 = vpop.f32.mrf.mxu2 }
 0x125   : > { %v1003_v34 = vadd.f32 %v913_v21, %v640_v63  ;;  %v1223_v40 = vpop.f32.mrf.mxu3  ;;  %v1058_v63 = vld [vmem:[%s3595_s27 + $0xf2] sm:$0xff] }
 0x126   : > { %v642_v41 = vpop.f32.mrf.mxu1 }
 0x127   : > { %v1313_v47 = vadd.f32 %v1223_v40, %v1003_v34  ;;  %v1536_v7 = vpop.f32.mrf.mxu0  ;;  %v643_v4 = vadd.f32 %v642_v41, %v3751_v11  ;;  %v1368_v34 = vld [vmem:[%s3595_s27 + $0xf3] sm:$0xff] }
 0x129   : > { %v3972_v55 = vadd.f32 %v1533_v13, %v1313_v47  ;;  %3237 = vmatmul.msk.f32.gmra.mxu1 %vm246_vm1, %v197_v29  ;;  %3275 = vmatmul.msk.f32.gmra.mxu2 %vm246_vm1, %v1054_v35  ;;  %v199_v13 = vld [vmem:[%s3595_s27 + $0xe0] sm:$0xff] }
 0x12a   : > { %3313 = vmatmul.msk.f32.gmra.mxu3 %vm246_vm1, %v1056_v49  ;;  %3351 = vmatmul.msk.f32.gmra.mxu0 %vm246_vm1, %v1366_v50 }
 0x12c   : > { %v916_v28 = vpop.f32.mrf.mxu2 }
 0x12d   : > { %v1004_v57 = vadd.f32 %v916_v28, %v643_v4  ;;  %v1226_v62 = vpop.f32.mrf.mxu3  ;;  %v1059_v4 = vld [vmem:[%s3595_s27 + $0xfa] sm:$0xff] }
 0x12e   : > { %v645_v0 = vpop.f32.mrf.mxu1 }
 0x12f   : > { %v1314_v5 = vadd.f32 %v1226_v62, %v1004_v57  ;;  %v1539_v14 = vpop.f32.mrf.mxu0  ;;  %v646_v11 = vadd.f32 %v645_v0, %v3766_v18  ;;  %v1369_v57 = vld [vmem:[%s3595_s27 + $0xfb] sm:$0xff] }
 0x131   : > { %v3982_v15 = vadd.f32 %v1536_v7, %v1314_v5  ;;  %3238 = vmatmul.msk.f32.gmra.mxu1 %vm246_vm1, %v198_v54  ;;  %3276 = vmatmul.msk.f32.gmra.mxu2 %vm246_vm1, %v1055_v42  ;;  %v200_v7 = vld [vmem:[%s3595_s27 + $0xe8] sm:$0xff] }
 0x132   : > { %3314 = vmatmul.msk.f32.gmra.mxu3 %vm246_vm1, %v1057_v56  ;;  %3352 = vmatmul.msk.f32.gmra.mxu0 %vm246_vm1, %v1367_v12 }
 0x134   : > { %v919_v35 = vpop.f32.mrf.mxu2 }
 0x135   : > { %v1005_v19 = vadd.f32 %v919_v35, %v646_v11  ;;  %v1229_v6 = vpop.f32.mrf.mxu3  ;;  %v1060_v11 = vld [vmem:[%s3595_s27 + $0x102] sm:$0xff] }
 0x136   : > { %v648_v22 = vpop.f32.mrf.mxu1 }
 0x137   : > { %v1315_v27 = vadd.f32 %v1229_v6, %v1005_v19  ;;  %v1542_v21 = vpop.f32.mrf.mxu0  ;;  %v649_v18 = vadd.f32 %v648_v22, %v3781_v25  ;;  %v1370_v19 = vld [vmem:[%s3595_s27 + $0x103] sm:$0xff] }
 0x139   : > { %v3992_v40 = vadd.f32 %v1539_v14, %v1315_v27  ;;  %3239 = vmatmul.msk.f32.gmra.mxu1 %vm246_vm1, %v199_v13  ;;  %3277 = vmatmul.msk.f32.gmra.mxu2 %vm246_vm1, %v1056_v49  ;;  %v201_v14 = vld [vmem:[%s3595_s27 + $0xf0] sm:$0xff] }
 0x13a   : > { %3315 = vmatmul.msk.f32.gmra.mxu3 %vm246_vm1, %v1058_v63  ;;  %3353 = vmatmul.msk.f32.gmra.mxu0 %vm246_vm1, %v1368_v34 }
 0x13c   : > { %v922_v42 = vpop.f32.mrf.mxu2 }
 0x13d   : > { %v1006_v41 = vadd.f32 %v922_v42, %v649_v18  ;;  %v1232_v29 = vpop.f32.mrf.mxu3  ;;  %v1061_v18 = vld [vmem:[%s3595_s27 + $0x10a] sm:$0xff] }
 0x13e   : > { %v651_v47 = vpop.f32.mrf.mxu1 }
 0x13f   : > { %v1316_v50 = vadd.f32 %v1232_v29, %v1006_v41  ;;  %v1545_v28 = vpop.f32.mrf.mxu0  ;;  %v652_v25 = vadd.f32 %v651_v47, %v3796_v32  ;;  %v1371_v41 = vld [vmem:[%s3595_s27 + $0x10b] sm:$0xff] }
 0x141   : > { %v4002_v62 = vadd.f32 %v1542_v21, %v1316_v50  ;;  %3240 = vmatmul.msk.f32.gmra.mxu1 %vm246_vm1, %v200_v7  ;;  %3278 = vmatmul.msk.f32.gmra.mxu2 %vm246_vm1, %v1057_v56  ;;  %v202_v21 = vld [vmem:[%s3595_s27 + $0xf8] sm:$0xff] }
 0x142   : > { %3316 = vmatmul.msk.f32.gmra.mxu3 %vm246_vm1, %v1059_v4  ;;  %3354 = vmatmul.msk.f32.gmra.mxu0 %vm246_vm1, %v1369_v57 }
 0x144   : > { %v925_v49 = vpop.f32.mrf.mxu2 }
 0x145   : > { %v1007_v0 = vadd.f32 %v925_v49, %v652_v25  ;;  %v1235_v54 = vpop.f32.mrf.mxu3  ;;  %v1062_v25 = vld [vmem:[%s3595_s27 + $0x112] sm:$0xff] }
 0x146   : > { %v654_v5 = vpop.f32.mrf.mxu1 }
 0x147   : > { %v1317_v12 = vadd.f32 %v1235_v54, %v1007_v0  ;;  %v1548_v35 = vpop.f32.mrf.mxu0  ;;  %v655_v32 = vadd.f32 %v654_v5, %v3811_v39  ;;  %v1372_v0 = vld [vmem:[%s3595_s27 + $0x113] sm:$0xff] }
 0x149   : > { %v4012_v6 = vadd.f32 %v1545_v28, %v1317_v12  ;;  %3241 = vmatmul.msk.f32.gmra.mxu1 %vm246_vm1, %v201_v14  ;;  %3279 = vmatmul.msk.f32.gmra.mxu2 %vm246_vm1, %v1058_v63  ;;  %v203_v28 = vld [vmem:[%s3595_s27 + $0x100] sm:$0xff] }
 0x14a   : > { %3317 = vmatmul.msk.f32.gmra.mxu3 %vm246_vm1, %v1060_v11  ;;  %3355 = vmatmul.msk.f32.gmra.mxu0 %vm246_vm1, %v1370_v19 }
 0x14c   : > { %v928_v56 = vpop.f32.mrf.mxu2 }
 0x14d   : > { %v1008_v22 = vadd.f32 %v928_v56, %v655_v32  ;;  %v1238_v13 = vpop.f32.mrf.mxu3  ;;  %v1063_v32 = vld [vmem:[%s3595_s27 + $0x11a] sm:$0xff] }
 0x14e   : > { %v657_v27 = vpop.f32.mrf.mxu1 }
 0x14f   : > { %v1318_v34 = vadd.f32 %v1238_v13, %v1008_v22  ;;  %v1551_v42 = vpop.f32.mrf.mxu0  ;;  %v658_v39 = vadd.f32 %v657_v27, %v3826_v46  ;;  %v1373_v22 = vld [vmem:[%s3595_s27 + $0x11b] sm:$0xff] }
 0x151   : > { %v4022_v29 = vadd.f32 %v1548_v35, %v1318_v34  ;;  %3242 = vmatmul.msk.f32.gmra.mxu1 %vm246_vm1, %v202_v21  ;;  %3280 = vmatmul.msk.f32.gmra.mxu2 %vm246_vm1, %v1059_v4  ;;  %v204_v35 = vld [vmem:[%s3595_s27 + $0x108] sm:$0xff] }
 0x152   : > { %3318 = vmatmul.msk.f32.gmra.mxu3 %vm246_vm1, %v1061_v18  ;;  %3356 = vmatmul.msk.f32.gmra.mxu0 %vm246_vm1, %v1371_v41 }
 0x154   : > { %v931_v63 = vpop.f32.mrf.mxu2 }
 0x155   : > { %v1009_v47 = vadd.f32 %v931_v63, %v658_v39  ;;  %v1241_v7 = vpop.f32.mrf.mxu3  ;;  %v1064_v39 = vld [vmem:[%s3595_s27 + $0x122] sm:$0xff] }
 0x156   : > { %v660_v50 = vpop.f32.mrf.mxu1 }
 0x157   : > { %v1319_v57 = vadd.f32 %v1241_v7, %v1009_v47  ;;  %v1554_v49 = vpop.f32.mrf.mxu0  ;;  %v661_v46 = vadd.f32 %v660_v50, %v3841_v53  ;;  %v1374_v47 = vld [vmem:[%s3595_s27 + $0x123] sm:$0xff] }
 0x159   : > { %v4032_v54 = vadd.f32 %v1551_v42, %v1319_v57  ;;  %3243 = vmatmul.msk.f32.gmra.mxu1 %vm246_vm1, %v203_v28  ;;  %3281 = vmatmul.msk.f32.gmra.mxu2 %vm246_vm1, %v1060_v11  ;;  %v205_v42 = vld [vmem:[%s3595_s27 + $0x110] sm:$0xff] }
 0x15a   : > { %3319 = vmatmul.msk.f32.gmra.mxu3 %vm246_vm1, %v1062_v25  ;;  %3357 = vmatmul.msk.f32.gmra.mxu0 %vm246_vm1, %v1372_v0 }
 0x15c   : > { %v934_v4 = vpop.f32.mrf.mxu2 }
 0x15d   : > { %v1010_v5 = vadd.f32 %v934_v4, %v661_v46  ;;  %v1244_v14 = vpop.f32.mrf.mxu3  ;;  %v1065_v46 = vld [vmem:[%s3595_s27 + $0x12a] sm:$0xff] }
 0x15e   : > { %v663_v12 = vpop.f32.mrf.mxu1 }
 0x15f   : > { %v1320_v19 = vadd.f32 %v1244_v14, %v1010_v5  ;;  %v1557_v56 = vpop.f32.mrf.mxu0  ;;  %v664_v53 = vadd.f32 %v663_v12, %v3856_v60  ;;  %v1375_v5 = vld [vmem:[%s3595_s27 + $0x12b] sm:$0xff] }
 0x161   : > { %v4042_v13 = vadd.f32 %v1554_v49, %v1320_v19  ;;  %3244 = vmatmul.msk.f32.gmra.mxu1 %vm246_vm1, %v204_v35  ;;  %3282 = vmatmul.msk.f32.gmra.mxu2 %vm246_vm1, %v1061_v18  ;;  %v206_v49 = vld [vmem:[%s3595_s27 + $0x118] sm:$0xff] }
 0x162   : > { %3320 = vmatmul.msk.f32.gmra.mxu3 %vm246_vm1, %v1063_v32  ;;  %3358 = vmatmul.msk.f32.gmra.mxu0 %vm246_vm1, %v1373_v22  ;;  %v1960_v22 = vld [vmem:[%s3595_s27 + $0x24] sm:$0xff] }
 0x164   : > { %v937_v11 = vpop.f32.mrf.mxu2 }
 0x165   : > { %v1011_v27 = vadd.f32 %v937_v11, %v664_v53  ;;  %v1247_v21 = vpop.f32.mrf.mxu3  ;;  %v2270_v11 = vld [vmem:[%s3595_s27 + $0x25] sm:$0xff] }
 0x166   : > { %v666_v34 = vpop.f32.mrf.mxu1 }
 0x167   : > { %v1321_v41 = vadd.f32 %v1247_v21, %v1011_v27  ;;  %v1560_v63 = vpop.f32.mrf.mxu0  ;;  %v667_v60 = vadd.f32 %v666_v34, %v3747_v9  ;;  %v2580_v21 = vld [vmem:[%s3595_s27 + $0x26] sm:$0xff] }
 0x169   : > { %v4052_v7 = vadd.f32 %v1557_v56, %v1321_v41  ;;  %3245 = vmatmul.msk.f32.gmra.mxu1 %vm246_vm1, %v205_v42  ;;  %3283 = vmatmul.msk.f32.gmra.mxu2 %vm246_vm1, %v1062_v25  ;;  %v1650_v56 = vld [vmem:[%s3595_s27 + $0x14] sm:$0xff] }
 0x16a   : > { %3321 = vmatmul.msk.f32.gmra.mxu3 %vm246_vm1, %v1064_v39  ;;  %3359 = vmatmul.msk.f32.gmra.mxu0 %vm246_vm1, %v1374_v47  ;;  %v1961_v47 = vld [vmem:[%s3595_s27 + $0x2c] sm:$0xff] }
 0x16c   : > { %v940_v18 = vpop.f32.mrf.mxu2 }
 0x16d   : > { %v1012_v50 = vadd.f32 %v940_v18, %v667_v60  ;;  %v1250_v28 = vpop.f32.mrf.mxu3  ;;  %v2271_v18 = vld [vmem:[%s3595_s27 + $0x2d] sm:$0xff] }
 0x16e   : > { %v669_v57 = vpop.f32.mrf.mxu1 }
 0x16f   : > { %v1322_v0 = vadd.f32 %v1250_v28, %v1012_v50  ;;  %v1563_v4 = vpop.f32.mrf.mxu0  ;;  %v670_v9 = vadd.f32 %v669_v57, %v3762_v16  ;;  %v2581_v28 = vld [vmem:[%s3595_s27 + $0x2e] sm:$0xff] }
 0x171   : > { %v4062_v25 = vadd.f32 %v1560_v63, %v1322_v0  ;;  %3246 = vmatmul.msk.f32.gmra.mxu1 %vm246_vm1, %v206_v49  ;;  %3284 = vmatmul.msk.f32.gmra.mxu2 %vm246_vm1, %v1063_v32  ;;  %v1651_v63 = vld [vmem:[%s3595_s27 + $0x1c] sm:$0xff] }
 0x172   : > { %3322 = vmatmul.msk.f32.gmra.mxu3 %vm246_vm1, %v1065_v46  ;;  %3360 = vmatmul.msk.f32.gmra.mxu0 %vm246_vm1, %v1375_v5  ;;  %v1962_v5 = vld [vmem:[%s3595_s27 + $0x34] sm:$0xff] }
 0x174   : > { %v943_v14 = vpop.f32.mrf.mxu2 }
 0x175   : > { %v1013_v12 = vadd.f32 %v943_v14, %v670_v9  ;;  %v1253_v35 = vpop.f32.mrf.mxu3  ;;  %v2272_v14 = vld [vmem:[%s3595_s27 + $0x35] sm:$0xff] }
 0x176   : > { %v672_v19 = vpop.f32.mrf.mxu1 }
 0x177   : > { %v1323_v53 = vadd.f32 %v1253_v35, %v1013_v12  ;;  %v1566_v27 = vpop.f32.mrf.mxu0  ;;  %v673_v16 = vadd.f32 %v672_v19, %v3777_v23  ;;  %v2582_v35 = vld [vmem:[%s3595_s27 + $0x36] sm:$0xff] }
 0x179   : > { %v4073_v32 = vadd.f32 %v1563_v4, %v1323_v53  ;;  %3363 = vmatmul.msk.f32.vlgmr.msra.gmra.mxu1 %vm246_vm1, %v1650_v56  ;;  %3401 = vmatmul.msk.f32.vlgmr.msra.gmra.mxu2 %vm246_vm1, %v1960_v22 }
 0x17a   : > { %3439 = vmatmul.msk.f32.vlgmr.msra.gmra.mxu3 %vm246_vm1, %v2270_v11  ;;  %3477 = vmatmul.msk.f32.vlgmr.msra.gmra.mxu0 %vm246_vm1, %v2580_v21  ;;  %v1963_v21 = vld [vmem:[%s3595_s27 + $0x3c] sm:$0xff] }
 0x17c   : > { %v946_v34 = vpop.f32.mrf.mxu2 }
 0x17d   : > { %v1014_v42 = vadd.f32 %v946_v34, %v673_v16  ;;  %v1256_v41 = vpop.f32.mrf.mxu3  ;;  %v2273_v34 = vld [vmem:[%s3595_s27 + $0x3d] sm:$0xff] }
 0x17e   : > { %v675_v39 = vpop.f32.mrf.mxu1 }
 0x17f   : > { %v1324_v60 = vadd.f32 %v1256_v41, %v1014_v42  ;;  %v1569_v50 = vpop.f32.mrf.mxu0  ;;  %v676_v23 = vadd.f32 %v675_v39, %v3792_v30 }
 0x181   : > { %v4084_v57 = vadd.f32 %v1566_v27, %v1324_v60  ;;  %3364 = vmatmul.msk.f32.gmra.mxu1 %vm246_vm1, %v1651_v63  ;;  %3402 = vmatmul.msk.f32.gmra.mxu2 %vm246_vm1, %v1961_v47 }
 0x182   : > { %3440 = vmatmul.msk.f32.gmra.mxu3 %vm246_vm1, %v2271_v18  ;;  %3478 = vmatmul.msk.f32.gmra.mxu0 %vm246_vm1, %v2581_v28 }
 0x184   : > { %v949_v49 = vpop.f32.mrf.mxu2 }
 0x185   : > { %v1015_v0 = vadd.f32 %v949_v49, %v676_v23  ;;  %v1259_v46 = vpop.f32.mrf.mxu3  ;;  %v2274_v23 = vld [vmem:[%s3595_s27 + $0x45] sm:$0xff] }
 0x186   : > { %v678_v4 = vpop.f32.mrf.mxu1 }
 0x187   : > { %v1325_v9 = vadd.f32 %v1259_v46, %v1015_v0  ;;  %v1572_v12 = vpop.f32.mrf.mxu0  ;;  %v679_v30 = vadd.f32 %v678_v4, %v3807_v37 }
 0x189   : > { %v4094_v19 = vadd.f32 %v1569_v50, %v1325_v9  ;;  %3365 = vmatmul.msk.f32.gmra.mxu1 %vm246_vm1, %v1960_v22  ;;  %3403 = vmatmul.msk.f32.gmra.mxu2 %vm246_vm1, %v1962_v5  ;;  %v2583_v22 = vld [vmem:[%s3595_s27 + $0x3e] sm:$0xff] }
 0x18a   : > { %3441 = vmatmul.msk.f32.gmra.mxu3 %vm246_vm1, %v2272_v14  ;;  %3479 = vmatmul.msk.f32.gmra.mxu0 %vm246_vm1, %v2582_v35  ;;  %v1964_v50 = vld [vmem:[%s3595_s27 + $0x44] sm:$0xff] }
 0x18c   : > { %v952_v56 = vpop.f32.mrf.mxu2 }
 0x18d   : > { %v1016_v53 = vadd.f32 %v952_v56, %v679_v30  ;;  %v1262_v11 = vpop.f32.mrf.mxu3  ;;  %v2275_v30 = vld [vmem:[%s3595_s27 + $0x4d] sm:$0xff] }
 0x18e   : > { %v681_v27 = vpop.f32.mrf.mxu1 }
 0x18f   : > { %v1326_v16 = vadd.f32 %v1262_v11, %v1016_v53  ;;  %v1575_v42 = vpop.f32.mrf.mxu0  ;;  %v682_v37 = vadd.f32 %v681_v27, %v3822_v44 }
 0x191   : > { %v4104_v41 = vadd.f32 %v1572_v12, %v1326_v16  ;;  %3366 = vmatmul.msk.f32.gmra.mxu1 %vm246_vm1, %v1961_v47  ;;  %3404 = vmatmul.msk.f32.gmra.mxu2 %vm246_vm1, %v1963_v21  ;;  %v2584_v47 = vld [vmem:[%s3595_s27 + $0x46] sm:$0xff] }
 0x192   : > { %3442 = vmatmul.msk.f32.gmra.mxu3 %vm246_vm1, %v2273_v34  ;;  %3480 = vmatmul.msk.f32.gmra.mxu0 %vm246_vm1, %v2583_v22  ;;  %v1965_v12 = vld [vmem:[%s3595_s27 + $0x4c] sm:$0xff] }
 0x194   : > { %v955_v39 = vpop.f32.mrf.mxu2 }
 0x195   : > { %v1017_v63 = vadd.f32 %v955_v39, %v682_v37  ;;  %v1265_v60 = vpop.f32.mrf.mxu3  ;;  %v2276_v37 = vld [vmem:[%s3595_s27 + $0x55] sm:$0xff] }
 0x196   : > { %v684_v18 = vpop.f32.mrf.mxu1 }
 0x197   : > { %v1327_v28 = vadd.f32 %v1265_v60, %v1017_v63  ;;  %v1578_v49 = vpop.f32.mrf.mxu0  ;;  %v685_v44 = vadd.f32 %v684_v18, %v3837_v51 }
 0x199   : > { %v4114_v0 = vadd.f32 %v1575_v42, %v1327_v28  ;;  %3367 = vmatmul.msk.f32.gmra.mxu1 %vm246_vm1, %v1962_v5  ;;  %3405 = vmatmul.msk.f32.gmra.mxu2 %vm246_vm1, %v1964_v50  ;;  %v2585_v5 = vld [vmem:[%s3595_s27 + $0x4e] sm:$0xff] }
 0x19a   : > { %3443 = vmatmul.msk.f32.gmra.mxu3 %vm246_vm1, %v2274_v23  ;;  %3481 = vmatmul.msk.f32.gmra.mxu0 %vm246_vm1, %v2584_v47  ;;  %v1966_v42 = vld [vmem:[%s3595_s27 + $0x54] sm:$0xff] }
 0x19c   : > { %v958_v46 = vpop.f32.mrf.mxu2 }
 0x19d   : > { %v1018_v4 = vadd.f32 %v958_v46, %v685_v44  ;;  %v1268_v9 = vpop.f32.mrf.mxu3  ;;  %v2277_v44 = vld [vmem:[%s3595_s27 + $0x5d] sm:$0xff] }
 0x19e   : > { %v687_v14 = vpop.f32.mrf.mxu1 }
 0x19f   : > { %v1328_v35 = vadd.f32 %v1268_v9, %v1018_v4  ;;  %v1581_v56 = vpop.f32.mrf.mxu0  ;;  %v688_v51 = vadd.f32 %v687_v14, %v3852_v58 }
 0x1a1   : > { %v4124_v53 = vadd.f32 %v1578_v49, %v1328_v35  ;;  %3368 = vmatmul.msk.f32.gmra.mxu1 %vm246_vm1, %v1963_v21  ;;  %3406 = vmatmul.msk.f32.gmra.mxu2 %vm246_vm1, %v1965_v12  ;;  %v2586_v21 = vld [vmem:[%s3595_s27 + $0x56] sm:$0xff] }
 0x1a2   : > { %3444 = vmatmul.msk.f32.gmra.mxu3 %vm246_vm1, %v2275_v30  ;;  %3482 = vmatmul.msk.f32.gmra.mxu0 %vm246_vm1, %v2585_v5  ;;  %v1967_v49 = vld [vmem:[%s3595_s27 + $0x5c] sm:$0xff] }
 0x1a4   : > { %v961_v11 = vpop.f32.mrf.mxu2 }
 0x1a5   : > { %v1019_v27 = vadd.f32 %v961_v11, %v688_v51  ;;  %v1271_v16 = vpop.f32.mrf.mxu3  ;;  %v2278_v51 = vld [vmem:[%s3595_s27 + $0x65] sm:$0xff] }
 0x1a6   : > { %v690_v34 = vpop.f32.mrf.mxu1 }
 0x1a7   : > { %v1329_v22 = vadd.f32 %v1271_v16, %v1019_v27  ;;  %v1584_v39 = vpop.f32.mrf.mxu0  ;;  %v691_v58 = vadd.f32 %v690_v34, %v3867_v1 }
 0x1a9   : > { %v4134_v63 = vadd.f32 %v1581_v56, %v1329_v22  ;;  %3369 = vmatmul.msk.f32.gmra.mxu1 %vm246_vm1, %v1964_v50  ;;  %3407 = vmatmul.msk.f32.gmra.mxu2 %vm246_vm1, %v1966_v42  ;;  %v2587_v50 = vld [vmem:[%s3595_s27 + $0x5e] sm:$0xff] }
 0x1aa   : > { %3445 = vmatmul.msk.f32.gmra.mxu3 %vm246_vm1, %v2276_v37  ;;  %3483 = vmatmul.msk.f32.gmra.mxu0 %vm246_vm1, %v2586_v21  ;;  %v1968_v56 = vld [vmem:[%s3595_s27 + $0x64] sm:$0xff] }
 0x1ac   : > { %v964_v60 = vpop.f32.mrf.mxu2 }
 0x1ad   : > { %v1020_v18 = vadd.f32 %v964_v60, %v691_v58  ;;  %v1274_v28 = vpop.f32.mrf.mxu3  ;;  %v2279_v58 = vld [vmem:[%s3595_s27 + $0x6d] sm:$0xff] }
 0x1ae   : > { %v693_v23 = vpop.f32.mrf.mxu1 }
 0x1af   : > { %v1330_v47 = vadd.f32 %v1274_v28, %v1020_v18  ;;  %v1587_v46 = vpop.f32.mrf.mxu0  ;;  %v694_v1 = vadd.f32 %v693_v23, %v3749_v10 }
 0x1b1   : > { %v4144_v4 = vadd.f32 %v1584_v39, %v1330_v47  ;;  %3370 = vmatmul.msk.f32.gmra.mxu1 %vm246_vm1, %v1965_v12  ;;  %3408 = vmatmul.msk.f32.gmra.mxu2 %vm246_vm1, %v1967_v49  ;;  %v2588_v12 = vld [vmem:[%s3595_s27 + $0x66] sm:$0xff] }
 0x1b2   : > { %3446 = vmatmul.msk.f32.gmra.mxu3 %vm246_vm1, %v2277_v44  ;;  %3484 = vmatmul.msk.f32.gmra.mxu0 %vm246_vm1, %v2587_v50  ;;  %v1969_v39 = vld [vmem:[%s3595_s27 + $0x6c] sm:$0xff] }
 0x1b4   : > { %v967_v9 = vpop.f32.mrf.mxu2 }
 0x1b5   : > { %v1021_v14 = vadd.f32 %v967_v9, %v694_v1  ;;  %v1277_v35 = vpop.f32.mrf.mxu3  ;;  %v2280_v1 = vld [vmem:[%s3595_s27 + $0x75] sm:$0xff] }
 0x1b6   : > { %v696_v30 = vpop.f32.mrf.mxu1 }
 0x1b7   : > { %v1331_v5 = vadd.f32 %v1277_v35, %v1021_v14  ;;  %v1590_v11 = vpop.f32.mrf.mxu0  ;;  %v697_v10 = vadd.f32 %v696_v30, %v3764_v17 }
 0x1b9   : > { %v4154_v27 = vadd.f32 %v1587_v46, %v1331_v5  ;;  %3371 = vmatmul.msk.f32.gmra.mxu1 %vm246_vm1, %v1966_v42  ;;  %3409 = vmatmul.msk.f32.gmra.mxu2 %vm246_vm1, %v1968_v56  ;;  %v2589_v42 = vld [vmem:[%s3595_s27 + $0x6e] sm:$0xff] }
 0x1ba   : > { %3447 = vmatmul.msk.f32.gmra.mxu3 %vm246_vm1, %v2278_v51  ;;  %3485 = vmatmul.msk.f32.gmra.mxu0 %vm246_vm1, %v2588_v12  ;;  %v1970_v46 = vld [vmem:[%s3595_s27 + $0x74] sm:$0xff] }
 0x1bc   : > { %v970_v16 = vpop.f32.mrf.mxu2 }
 0x1bd   : > { %v1022_v34 = vadd.f32 %v970_v16, %v697_v10  ;;  %v1280_v22 = vpop.f32.mrf.mxu3  ;;  %v2281_v10 = vld [vmem:[%s3595_s27 + $0x7d] sm:$0xff] }
 0x1be   : > { %v699_v37 = vpop.f32.mrf.mxu1 }
 0x1bf   : > { %v1332_v21 = vadd.f32 %v1280_v22, %v1022_v34  ;;  %v1593_v60 = vpop.f32.mrf.mxu0  ;;  %v700_v17 = vadd.f32 %v699_v37, %v3779_v24 }
 0x1c1   : > { %v4164_v18 = vadd.f32 %v1590_v11, %v1332_v21  ;;  %3372 = vmatmul.msk.f32.gmra.mxu1 %vm246_vm1, %v1967_v49  ;;  %3410 = vmatmul.msk.f32.gmra.mxu2 %vm246_vm1, %v1969_v39  ;;  %v2590_v49 = vld [vmem:[%s3595_s27 + $0x76] sm:$0xff] }
 0x1c2   : > { %3448 = vmatmul.msk.f32.gmra.mxu3 %vm246_vm1, %v2279_v58  ;;  %3486 = vmatmul.msk.f32.gmra.mxu0 %vm246_vm1, %v2589_v42  ;;  %v1971_v11 = vld [vmem:[%s3595_s27 + $0x7c] sm:$0xff] }
 0x1c4   : > { %v973_v28 = vpop.f32.mrf.mxu2 }
 0x1c5   : > { %v1023_v23 = vadd.f32 %v973_v28, %v700_v17  ;;  %v1283_v47 = vpop.f32.mrf.mxu3  ;;  %v2282_v17 = vld [vmem:[%s3595_s27 + $0x85] sm:$0xff] }
 0x1c6   : > { %v702_v44 = vpop.f32.mrf.mxu1 }
 0x1c7   : > { %v1333_v50 = vadd.f32 %v1283_v47, %v1023_v23  ;;  %v1596_v9 = vpop.f32.mrf.mxu0  ;;  %v703_v24 = vadd.f32 %v702_v44, %v3794_v31 }
 0x1c9   : > { %v4174_v14 = vadd.f32 %v1593_v60, %v1333_v50  ;;  %3373 = vmatmul.msk.f32.gmra.mxu1 %vm246_vm1, %v1968_v56  ;;  %3411 = vmatmul.msk.f32.gmra.mxu2 %vm246_vm1, %v1970_v46  ;;  %v2591_v56 = vld [vmem:[%s3595_s27 + $0x7e] sm:$0xff] }
 0x1ca   : > { %3449 = vmatmul.msk.f32.gmra.mxu3 %vm246_vm1, %v2280_v1  ;;  %3487 = vmatmul.msk.f32.gmra.mxu0 %vm246_vm1, %v2590_v49  ;;  %v1972_v60 = vld [vmem:[%s3595_s27 + $0x84] sm:$0xff] }
 0x1cc   : > { %v976_v35 = vpop.f32.mrf.mxu2 }
 0x1cd   : > { %v1024_v30 = vadd.f32 %v976_v35, %v703_v24  ;;  %v1286_v5 = vpop.f32.mrf.mxu3  ;;  %v2283_v24 = vld [vmem:[%s3595_s27 + $0x8d] sm:$0xff] }
 0x1ce   : > { %v705_v51 = vpop.f32.mrf.mxu1 }
 0x1cf   : > { %v1334_v12 = vadd.f32 %v1286_v5, %v1024_v30  ;;  %v1599_v16 = vpop.f32.mrf.mxu0  ;;  %v706_v31 = vadd.f32 %v705_v51, %v3809_v38 }
 0x1d1   : > { %v4184_v34 = vadd.f32 %v1596_v9, %v1334_v12  ;;  %3374 = vmatmul.msk.f32.gmra.mxu1 %vm246_vm1, %v1969_v39  ;;  %3412 = vmatmul.msk.f32.gmra.mxu2 %vm246_vm1, %v1971_v11  ;;  %v2592_v39 = vld [vmem:[%s3595_s27 + $0x86] sm:$0xff] }
 0x1d2   : > { %3450 = vmatmul.msk.f32.gmra.mxu3 %vm246_vm1, %v2281_v10  ;;  %3488 = vmatmul.msk.f32.gmra.mxu0 %vm246_vm1, %v2591_v56  ;;  %v1973_v9 = vld [vmem:[%s3595_s27 + $0x8c] sm:$0xff] }
 0x1d4   : > { %v979_v22 = vpop.f32.mrf.mxu2 }
 0x1d5   : > { %v1025_v37 = vadd.f32 %v979_v22, %v706_v31  ;;  %v1289_v21 = vpop.f32.mrf.mxu3  ;;  %v2284_v31 = vld [vmem:[%s3595_s27 + $0x95] sm:$0xff] }
 0x1d6   : > { %v708_v58 = vpop.f32.mrf.mxu1 }
 0x1d7   : > { %v1335_v42 = vadd.f32 %v1289_v21, %v1025_v37  ;;  %v1602_v28 = vpop.f32.mrf.mxu0  ;;  %v709_v38 = vadd.f32 %v708_v58, %v3824_v45 }
 0x1d9   : > { %v4194_v23 = vadd.f32 %v1599_v16, %v1335_v42  ;;  %3375 = vmatmul.msk.f32.gmra.mxu1 %vm246_vm1, %v1970_v46  ;;  %3413 = vmatmul.msk.f32.gmra.mxu2 %vm246_vm1, %v1972_v60  ;;  %v2593_v46 = vld [vmem:[%s3595_s27 + $0x8e] sm:$0xff] }
 0x1da   : > { %3451 = vmatmul.msk.f32.gmra.mxu3 %vm246_vm1, %v2282_v17  ;;  %3489 = vmatmul.msk.f32.gmra.mxu0 %vm246_vm1, %v2592_v39  ;;  %v1974_v16 = vld [vmem:[%s3595_s27 + $0x94] sm:$0xff] }
 0x1dc   : > { %v982_v47 = vpop.f32.mrf.mxu2 }
 0x1dd   : > { %v1026_v44 = vadd.f32 %v982_v47, %v709_v38  ;;  %v1292_v50 = vpop.f32.mrf.mxu3  ;;  %v2285_v38 = vld [vmem:[%s3595_s27 + $0x9d] sm:$0xff] }
 0x1de   : > { %v711_v1 = vpop.f32.mrf.mxu1 }
 0x1df   : > { %v1336_v49 = vadd.f32 %v1292_v50, %v1026_v44  ;;  %v1605_v35 = vpop.f32.mrf.mxu0  ;;  %v712_v45 = vadd.f32 %v711_v1, %v3839_v52 }
 0x1e1   : > { %v4204_v30 = vadd.f32 %v1602_v28, %v1336_v49  ;;  %3376 = vmatmul.msk.f32.gmra.mxu1 %vm246_vm1, %v1971_v11  ;;  %3414 = vmatmul.msk.f32.gmra.mxu2 %vm246_vm1, %v1973_v9  ;;  %v2594_v11 = vld [vmem:[%s3595_s27 + $0x96] sm:$0xff] }
 0x1e2   : > { %3452 = vmatmul.msk.f32.gmra.mxu3 %vm246_vm1, %v2283_v24  ;;  %3490 = vmatmul.msk.f32.gmra.mxu0 %vm246_vm1, %v2593_v46  ;;  %v1975_v28 = vld [vmem:[%s3595_s27 + $0x9c] sm:$0xff] }
 0x1e4   : > { %v985_v5 = vpop.f32.mrf.mxu2 }
 0x1e5   : > { %v1027_v51 = vadd.f32 %v985_v5, %v712_v45  ;;  %v1295_v12 = vpop.f32.mrf.mxu3  ;;  %v2286_v45 = vld [vmem:[%s3595_s27 + $0xa5] sm:$0xff] }
 0x1e6   : > { %v714_v10 = vpop.f32.mrf.mxu1 }
 0x1e7   : > { %v1337_v56 = vadd.f32 %v1295_v12, %v1027_v51  ;;  %v1608_v22 = vpop.f32.mrf.mxu0  ;;  %v715_v52 = vadd.f32 %v714_v10, %v3854_v59  ;;  %v2596_v51 = vld [vmem:[%s3595_s27 + $0xa6] sm:$0xff] }
 0x1e9   : > { %v4214_v37 = vadd.f32 %v1605_v35, %v1337_v56  ;;  %3377 = vmatmul.msk.f32.gmra.mxu1 %vm246_vm1, %v1972_v60  ;;  %3415 = vmatmul.msk.f32.gmra.mxu2 %vm246_vm1, %v1974_v16  ;;  %v2595_v60 = vld [vmem:[%s3595_s27 + $0x9e] sm:$0xff] }
 0x1ea   : > { %3453 = vmatmul.msk.f32.gmra.mxu3 %vm246_vm1, %v2284_v31  ;;  %3491 = vmatmul.msk.f32.gmra.mxu0 %vm246_vm1, %v2594_v11  ;;  %v1976_v35 = vld [vmem:[%s3595_s27 + $0xa4] sm:$0xff] }
 0x1ec   : > { %v988_v21 = vpop.f32.mrf.mxu2 }
 0x1ed   : > { %v1028_v58 = vadd.f32 %v988_v21, %v715_v52  ;;  %v1298_v42 = vpop.f32.mrf.mxu3  ;;  %v4245_v52 = vld [vmem:[%s4538_s2] ss:$0 sm:$0xff] }
 0x1ee   : > { %v717_v17 = vpop.f32.mrf.mxu1 }
 0x1ef   : > { %v1338_v39 = vadd.f32 %v1298_v42, %v1028_v58  ;;  %v1611_v47 = vpop.f32.mrf.mxu0  ;;  %v718_v59 = vadd.f32 %v717_v17, %v3869_v2  ;;  %v2597_v58 = vld [vmem:[%s3595_s27 + $0xae] sm:$0xff] }
 0x1f1   : > { %v4224_v44 = vadd.f32 %v1608_v22, %v1338_v39  ;;  %3378 = vmatmul.msk.f32.gmra.mxu1 %vm246_vm1, %v1973_v9  ;;  %3416 = vmatmul.msk.f32.gmra.mxu2 %vm246_vm1, %v1975_v28  ;;  %v1977_v22 = vld [vmem:[%s3595_s27 + $0xac] sm:$0xff] }
 0x1f2   : > { %3454 = vmatmul.msk.f32.gmra.mxu3 %vm246_vm1, %v2285_v38  ;;  %3492 = vmatmul.msk.f32.gmra.mxu0 %vm246_vm1, %v2595_v60 }
 0x1f4   : > { %v991_v50 = vpop.f32.mrf.mxu2 }
 0x1f5   : > { %v1029_v1 = vadd.f32 %v991_v50, %v718_v59  ;;  %v1301_v49 = vpop.f32.mrf.mxu3 }
 0x1f6   : > { %v1816_v24 = vpop.f32.mrf.mxu1 }
 0x1f7   : > { %v1339_v46 = vadd.f32 %v1301_v49, %v1029_v1  ;;  %v2746_v5 = vpop.f32.mrf.mxu0  ;;  %v1924_v2 = vadd.f32 %v1816_v24, %v3882_v36  ;;  %v2288_v49 = vld [vmem:[%s3595_s27 + $0xb5] sm:$0xff] }
 0x1f8   : > { %v2598_v24 = vld [vmem:[%s3595_s27 + $0xb6] sm:$0xff] }
 0x1f9   : > { %v4234_v9 = vadd.f32 %v1611_v47, %v1339_v46  ;;  %3379 = vmatmul.msk.f32.gmra.mxu1 %vm246_vm1, %v1974_v16  ;;  %3417 = vmatmul.msk.f32.gmra.mxu2 %vm246_vm1, %v1976_v35  ;;  %v2287_v16 = vld [vmem:[%s3595_s27 + $0xad] sm:$0xff] }
 0x1fa   : > { %3455 = vmatmul.msk.f32.gmra.mxu3 %vm246_vm1, %v2286_v45  ;;  %3493 = vmatmul.msk.f32.gmra.mxu0 %vm246_vm1, %v2596_v51 }
 0x1fc   : > { %v2126_v12 = vpop.f32.mrf.mxu2 }
 0x1fd   : > { %v2234_v10 = vadd.f32 %v2126_v12, %v1924_v2  ;;  %v2436_v56 = vpop.f32.mrf.mxu3 }
 0x1fe   : > { %v1819_v31 = vpop.f32.mrf.mxu1 }
 0x1ff   : > { %v2544_v11 = vadd.f32 %v2436_v56, %v2234_v10  ;;  %v2749_v21 = vpop.f32.mrf.mxu0  ;;  %v1925_v36 = vadd.f32 %v1819_v31, %v3892_v61  ;;  %v1979_v31 = vld [vmem:[%s3595_s27 + $0xbc] sm:$0xff] }
 0x201   : > { %v2854_v42 = vadd.f32 %v2746_v5, %v2544_v11  ;;  %3380 = vmatmul.msk.f32.gmra.mxu1 %vm246_vm1, %v1975_v28  ;;  %3418 = vmatmul.msk.f32.gmra.mxu2 %vm246_vm1, %v1977_v22  ;;  %v1978_v28 = vld [vmem:[%s3595_s27 + $0xb4] sm:$0xff] }
 0x202   : > { %3456 = vmatmul.msk.f32.gmra.mxu3 %vm246_vm1, %v2287_v16  ;;  %3494 = vmatmul.msk.f32.gmra.mxu0 %vm246_vm1, %v2597_v58 }
 0x203   : > { %v2894_v17 = vadd.f32 %v4245_v52, %v2854_v42  ;;  %v2599_v42 = vld [vmem:[%s3595_s27 + $0xbe] sm:$0xff] }
 0x204   : > { %v2129_v39 = vpop.f32.mrf.mxu2 }
 0x205   : > { %vm2930_vm2 = vcmp.ge.f32.partialorder %v2894_v17, 0.0  ;;  %v2966_v38 = vmul.f32 0.2, %v2894_v17  ;;  %v2235_v47 = vadd.f32 %v2129_v39, %v1925_v36  ;;  %v2439_v60 = vpop.f32.mrf.mxu3 }
 0x206   : > { %v1822_v59 = vpop.f32.mrf.mxu1 }
 0x207   : > { %v3002_v50 = vsel %vm2930_vm2, %v2894_v17, %v2966_v38  ;;  %v2545_v1 = vadd.f32 %v2439_v60, %v2235_v47  ;;  %v2752_v61 = vpop.f32.mrf.mxu0  ;;  %v1926_v5 = vadd.f32 %v1822_v59, %v3902_v20 }
 0x208   : > { %v3038_v46 = vmul.f32 1.4142135, %v3002_v50  ;;  %v1980_v50 = vld [vmem:[%s3595_s27 + $0xc4] sm:$0xff] }
 0x209   : > { %v2855_v45 = vadd.f32 %v2749_v21, %v2545_v1  ;;  %3381 = vmatmul.msk.f32.gmra.mxu1 %vm246_vm1, %v1976_v35  ;;  %3419 = vmatmul.msk.f32.gmra.mxu2 %vm246_vm1, %v1978_v28  ;;  %v2289_v21 = vld [vmem:[%s3595_s27 + $0xbd] sm:$0xff] }
 0x20a   : > { %3074 = vst.msk [vmem:[%s4260_s16] sm:$0xff] %vm246_vm1, %v3038_v46  ;;  %3457 = vmatmul.msk.f32.gmra.mxu3 %vm246_vm1, %v2288_v49  ;;  %3495 = vmatmul.msk.f32.gmra.mxu0 %vm246_vm1, %v2598_v24  ;;  %v2600_v46 = vld [vmem:[%s3595_s27 + $0xc6] sm:$0xff] }
 0x20b   : > { %v2895_v51 = vadd.f32 %v4245_v52, %v2855_v45 }
 0x20c   : > { %v2132_v2 = vpop.f32.mrf.mxu2 }
 0x20d   : > { %vm2931_vm3 = vcmp.ge.f32.partialorder %v2895_v51, 0.0  ;;  %v2967_v12 = vmul.f32 0.2, %v2895_v51  ;;  %v2236_v10 = vadd.f32 %v2132_v2, %v1926_v5  ;;  %v2442_v35 = vpop.f32.mrf.mxu3 }
 0x20e   : > { %v1825_v56 = vpop.f32.mrf.mxu1 }
 0x20f   : > { %v3003_v11 = vsel %vm2931_vm3, %v2895_v51, %v2967_v12  ;;  %v2546_v16 = vadd.f32 %v2442_v35, %v2236_v10  ;;  %v2755_v58 = vpop.f32.mrf.mxu0  ;;  %v1927_v20 = vadd.f32 %v1825_v56, %v3912_v43  ;;  %v1981_v56 = vld [vmem:[%s3595_s27 + $0xcc] sm:$0xff] }
 0x210   : > { %v3039_v36 = vmul.f32 1.4142135, %v3003_v11 }
 0x211   : > { %v2856_v17 = vadd.f32 %v2752_v61, %v2546_v16  ;;  %3382 = vmatmul.msk.f32.gmra.mxu1 %vm246_vm1, %v1977_v22  ;;  %3420 = vmatmul.msk.f32.gmra.mxu2 %vm246_vm1, %v1979_v31  ;;  %v2290_v61 = vld [vmem:[%s3595_s27 + $0xc5] sm:$0xff] }
 0x212   : > { %3075 = vst.msk [vmem:[%s4260_s16 + $0x8] sm:$0xff] %vm246_vm1, %v3039_v36  ;;  %3458 = vmatmul.msk.f32.gmra.mxu3 %vm246_vm1, %v2289_v21  ;;  %3496 = vmatmul.msk.f32.gmra.mxu0 %vm246_vm1, %v2599_v42  ;;  %v2291_v21 = vld [vmem:[%s3595_s27 + $0xcd] sm:$0xff] }
 0x213   : > { %v2896_v39 = vadd.f32 %v4245_v52, %v2856_v17  ;;  %v2601_v42 = vld [vmem:[%s3595_s27 + $0xce] sm:$0xff] }
 0x214   : > { %v2135_v38 = vpop.f32.mrf.mxu2 }
 0x215   : > { %vm2932_vm4 = vcmp.ge.f32.partialorder %v2896_v39, 0.0  ;;  %v2968_v47 = vmul.f32 0.2, %v2896_v39  ;;  %v2237_v60 = vadd.f32 %v2135_v38, %v1927_v20  ;;  %v2445_v22 = vpop.f32.mrf.mxu3 }
 0x216   : > { %v1828_v59 = vpop.f32.mrf.mxu1 }
 0x217   : > { %v3004_v1 = vsel %vm2932_vm4, %v2896_v39, %v2968_v47  ;;  %v2547_v49 = vadd.f32 %v2445_v22, %v2237_v60  ;;  %v2758_v24 = vpop.f32.mrf.mxu0  ;;  %v1928_v43 = vadd.f32 %v1828_v59, %v3922_v3  ;;  %v1982_v22 = vld [vmem:[%s3595_s27 + $0xd4] sm:$0xff] }
 0x218   : > { %v3040_v45 = vmul.f32 1.4142135, %v3004_v1 }
 0x219   : > { %v2857_v5 = vadd.f32 %v2755_v58, %v2547_v49  ;;  %3383 = vmatmul.msk.f32.gmra.mxu1 %vm246_vm1, %v1978_v28  ;;  %3421 = vmatmul.msk.f32.gmra.mxu2 %vm246_vm1, %v1980_v50  ;;  %v2292_v49 = vld [vmem:[%s3595_s27 + $0xd5] sm:$0xff] }
 0x21a   : > { %3076 = vst.msk [vmem:[%s4260_s16 + $0x10] sm:$0xff] %vm246_vm1, %v3040_v45  ;;  %3459 = vmatmul.msk.f32.gmra.mxu3 %vm246_vm1, %v2290_v61  ;;  %3497 = vmatmul.msk.f32.gmra.mxu0 %vm246_vm1, %v2600_v46 }
 0x21b   : > { %v2897_v51 = vadd.f32 %v4245_v52, %v2857_v5 }
 0x21c   : > { %v2138_v2 = vpop.f32.mrf.mxu2 }
 0x21d   : > { %vm2933_vm5 = vcmp.ge.f32.partialorder %v2897_v51, 0.0  ;;  %v2969_v12 = vmul.f32 0.2, %v2897_v51  ;;  %v2238_v10 = vadd.f32 %v2138_v2, %v1928_v43  ;;  %v2448_v28 = vpop.f32.mrf.mxu3 }
 0x21e   : > { %v1831_v35 = vpop.f32.mrf.mxu1 }
 0x21f   : > { %v3005_v11 = vsel %vm2933_vm5, %v2897_v51, %v2969_v12  ;;  %v2548_v16 = vadd.f32 %v2448_v28, %v2238_v10  ;;  %v2761_v58 = vpop.f32.mrf.mxu0  ;;  %v1929_v3 = vadd.f32 %v1831_v35, %v3932_v26  ;;  %v1983_v10 = vld [vmem:[%s3595_s27 + $0xdc] sm:$0xff] }
 0x220   : > { %v3041_v36 = vmul.f32 1.4142135, %v3005_v11  ;;  %v2293_v11 = vld [vmem:[%s3595_s27 + $0xdd] sm:$0xff] }
 0x221   : > { %v2858_v17 = vadd.f32 %v2758_v24, %v2548_v16  ;;  %3384 = vmatmul.msk.f32.gmra.mxu1 %vm246_vm1, %v1979_v31  ;;  %3422 = vmatmul.msk.f32.gmra.mxu2 %vm246_vm1, %v1981_v56  ;;  %v2602_v24 = vld [vmem:[%s3595_s27 + $0xd6] sm:$0xff] }
 0x222   : > { %3077 = vst.msk [vmem:[%s4260_s16 + $0x18] sm:$0xff] %vm246_vm1, %v3041_v36  ;;  %3460 = vmatmul.msk.f32.gmra.mxu3 %vm246_vm1, %v2291_v21  ;;  %3498 = vmatmul.msk.f32.gmra.mxu0 %vm246_vm1, %v2601_v42  ;;  %v2603_v21 = vld [vmem:[%s3595_s27 + $0xde] sm:$0xff] }
 0x223   : > { %v2898_v20 = vadd.f32 %v4245_v52, %v2858_v17 }
 0x224   : > { %v2141_v39 = vpop.f32.mrf.mxu2 }
 0x225   : > { %vm2934_vm6 = vcmp.ge.f32.partialorder %v2898_v20, 0.0  ;;  %v2970_v38 = vmul.f32 0.2, %v2898_v20  ;;  %v2239_v47 = vadd.f32 %v2141_v39, %v1929_v3  ;;  %v2451_v31 = vpop.f32.mrf.mxu3 }
 0x226   : > { %v1834_v60 = vpop.f32.mrf.mxu1 }
 0x227   : > { %v3006_v59 = vsel %vm2934_vm6, %v2898_v20, %v2970_v38  ;;  %v2549_v1 = vadd.f32 %v2451_v31, %v2239_v47  ;;  %v2764_v61 = vpop.f32.mrf.mxu0  ;;  %v1930_v26 = vadd.f32 %v1834_v60, %v3942_v48  ;;  %v1984_v38 = vld [vmem:[%s3595_s27 + $0xe4] sm:$0xff] }
 0x228   : > { %v3042_v46 = vmul.f32 1.4142135, %v3006_v59  ;;  %v2294_v60 = vld [vmem:[%s3595_s27 + $0xe5] sm:$0xff] }
 0x229   : > { %v2859_v45 = vadd.f32 %v2761_v58, %v2549_v1  ;;  %3385 = vmatmul.msk.f32.gmra.mxu1 %vm246_vm1, %v1980_v50  ;;  %3423 = vmatmul.msk.f32.gmra.mxu2 %vm246_vm1, %v1982_v22  ;;  %v2604_v1 = vld [vmem:[%s3595_s27 + $0xe6] sm:$0xff] }
 0x22a   : > { %3078 = vst.msk [vmem:[%s4260_s16 + $0x20] sm:$0xff] %vm246_vm1, %v3042_v46  ;;  %3461 = vmatmul.msk.f32.gmra.mxu3 %vm246_vm1, %v2292_v49  ;;  %3499 = vmatmul.msk.f32.gmra.mxu0 %vm246_vm1, %v2602_v24 }
 0x22b   : > { %v2899_v5 = vadd.f32 %v4245_v52, %v2859_v45 }
 0x22c   : > { %v2144_v43 = vpop.f32.mrf.mxu2 }
 0x22d   : > { %vm2935_vm7 = vcmp.ge.f32.partialorder %v2899_v5, 0.0  ;;  %v2971_v51 = vmul.f32 0.2, %v2899_v5  ;;  %v2240_v2 = vadd.f32 %v2144_v43, %v1930_v26  ;;  %v2454_v50 = vpop.f32.mrf.mxu3  ;;  %v1985_v43 = vld [vmem:[%s3595_s27 + $0xec] sm:$0xff] }
 0x22e   : > { %v1837_v12 = vpop.f32.mrf.mxu1 }
 0x22f   : > { %v3007_v28 = vsel %vm2935_vm7, %v2899_v5, %v2971_v51  ;;  %v2550_v35 = vadd.f32 %v2454_v50, %v2240_v2  ;;  %v2767_v16 = vpop.f32.mrf.mxu0  ;;  %v1931_v48 = vadd.f32 %v1837_v12, %v3952_v8  ;;  %v2295_v50 = vld [vmem:[%s3595_s27 + $0xed] sm:$0xff] }
 0x230   : > { %v3043_v58 = vmul.f32 1.4142135, %v3007_v28  ;;  %v2605_v28 = vld [vmem:[%s3595_s27 + $0xee] sm:$0xff] }
 0x231   : > { %v2860_v42 = vadd.f32 %v2764_v61, %v2550_v35  ;;  %3386 = vmatmul.msk.f32.gmra.mxu1 %vm246_vm1, %v1981_v56  ;;  %3424 = vmatmul.msk.f32.gmra.mxu2 %vm246_vm1, %v1983_v10 }
 0x232   : > { %3079 = vst.msk [vmem:[%s4260_s16 + $0x28] sm:$0xff] %vm246_vm1, %v3043_v58  ;;  %3462 = vmatmul.msk.f32.gmra.mxu3 %vm246_vm1, %v2293_v11  ;;  %3500 = vmatmul.msk.f32.gmra.mxu0 %vm246_vm1, %v2603_v21 }
 0x233   : > { %v2900_v36 = vadd.f32 %v4245_v52, %v2860_v42 }
 0x234   : > { %v2147_v17 = vpop.f32.mrf.mxu2 }
 0x235   : > { %vm2936_vm8 = vcmp.ge.f32.partialorder %v2900_v36, 0.0  ;;  %v2972_v3 = vmul.f32 0.2, %v2900_v36  ;;  %v2241_v20 = vadd.f32 %v2147_v17, %v1931_v48  ;;  %v2457_v56 = vpop.f32.mrf.mxu3 }
 0x236   : > { %v1840_v39 = vpop.f32.mrf.mxu1 }
 0x237   : > { %v3008_v47 = vsel %vm2936_vm8, %v2900_v36, %v2972_v3  ;;  %v2551_v31 = vadd.f32 %v2457_v56, %v2241_v20  ;;  %v2770_v59 = vpop.f32.mrf.mxu0  ;;  %v1932_v8 = vadd.f32 %v1840_v39, %v3962_v33  ;;  %v1986_v36 = vld [vmem:[%s3595_s27 + $0xf4] sm:$0xff] }
 0x238   : > { %v3044_v49 = vmul.f32 1.4142135, %v3008_v47  ;;  %v2296_v20 = vld [vmem:[%s3595_s27 + $0xf5] sm:$0xff] }
 0x239   : > { %v2861_v61 = vadd.f32 %v2767_v16, %v2551_v31  ;;  %3387 = vmatmul.msk.f32.gmra.mxu1 %vm246_vm1, %v1982_v22  ;;  %3425 = vmatmul.msk.f32.gmra.mxu2 %vm246_vm1, %v1984_v38  ;;  %v2606_v39 = vld [vmem:[%s3595_s27 + $0xf6] sm:$0xff] }
 0x23a   : > { %3080 = vst.msk [vmem:[%s4260_s16 + $0x30] sm:$0xff] %vm246_vm1, %v3044_v49  ;;  %3463 = vmatmul.msk.f32.gmra.mxu3 %vm246_vm1, %v2294_v60  ;;  %3501 = vmatmul.msk.f32.gmra.mxu0 %vm246_vm1, %v2604_v1 }
 0x23b   : > { %v2901_v24 = vadd.f32 %v4245_v52, %v2861_v61 }
 0x23c   : > { %v2150_v46 = vpop.f32.mrf.mxu2 }
 0x23d   : > { %vm2937_vm9 = vcmp.ge.f32.partialorder %v2901_v24, 0.0  ;;  %v2973_v45 = vmul.f32 0.2, %v2901_v24  ;;  %v2242_v26 = vadd.f32 %v2150_v46, %v1932_v8  ;;  %v2460_v22 = vpop.f32.mrf.mxu3  ;;  %v1987_v8 = vld [vmem:[%s3595_s27 + $0xfc] sm:$0xff] }
 0x23e   : > { %v1843_v5 = vpop.f32.mrf.mxu1 }
 0x23f   : > { %v3009_v51 = vsel %vm2937_vm9, %v2901_v24, %v2973_v45  ;;  %v2552_v2 = vadd.f32 %v2460_v22, %v2242_v26  ;;  %v2773_v12 = vpop.f32.mrf.mxu0  ;;  %v1933_v33 = vadd.f32 %v1843_v5, %v3972_v55  ;;  %v2297_v45 = vld [vmem:[%s3595_s27 + $0xfd] sm:$0xff] }
 0x240   : > { %v3045_v35 = vmul.f32 1.4142135, %v3009_v51  ;;  %v2607_v22 = vld [vmem:[%s3595_s27 + $0xfe] sm:$0xff] }
 0x241   : > { %v2862_v11 = vadd.f32 %v2770_v59, %v2552_v2  ;;  %3388 = vmatmul.msk.f32.gmra.mxu1 %vm246_vm1, %v1983_v10  ;;  %3426 = vmatmul.msk.f32.gmra.mxu2 %vm246_vm1, %v1985_v43 }
 0x242   : > { %3081 = vst.msk [vmem:[%s4260_s16 + $0x38] sm:$0xff] %vm246_vm1, %v3045_v35  ;;  %3464 = vmatmul.msk.f32.gmra.mxu3 %vm246_vm1, %v2295_v50  ;;  %3502 = vmatmul.msk.f32.gmra.mxu0 %vm246_vm1, %v2605_v28 }
 0x243   : > { %v2902_v16 = vadd.f32 %v4245_v52, %v2862_v11  ;;  %v1988_v11 = vld [vmem:[%s3595_s27 + $0x104] sm:$0xff] }
 0x244   : > { %v2153_v21 = vpop.f32.mrf.mxu2 }
 0x245   : > { %vm2938_vm10 = vcmp.ge.f32.partialorder %v2902_v16, 0.0  ;;  %v2974_v58 = vmul.f32 0.2, %v2902_v16  ;;  %v2243_v42 = vadd.f32 %v2153_v21, %v1933_v33  ;;  %v2463_v10 = vpop.f32.mrf.mxu3  ;;  %v2298_v21 = vld [vmem:[%s3595_s27 + $0x105] sm:$0xff] }
 0x246   : > { %v1846_v48 = vpop.f32.mrf.mxu1 }
 0x247   : > { %v3010_v17 = vsel %vm2938_vm10, %v2902_v16, %v2974_v58  ;;  %v2553_v3 = vadd.f32 %v2463_v10, %v2243_v42  ;;  %v2776_v56 = vpop.f32.mrf.mxu0  ;;  %v1934_v55 = vadd.f32 %v1846_v48, %v3982_v15  ;;  %v2608_v42 = vld [vmem:[%s3595_s27 + $0x106] sm:$0xff] }
 0x248   : > { %v3046_v47 = vmul.f32 1.4142135, %v3010_v17 }
 0x249   : > { %v2863_v31 = vadd.f32 %v2773_v12, %v2553_v3  ;;  %3389 = vmatmul.msk.f32.gmra.mxu1 %vm246_vm1, %v1984_v38  ;;  %3427 = vmatmul.msk.f32.gmra.mxu2 %vm246_vm1, %v1986_v36 }
 0x24a   : > { %3082 = vst.msk [vmem:[%s4260_s16 + $0x40] sm:$0xff] %vm246_vm1, %v3046_v47  ;;  %3465 = vmatmul.msk.f32.gmra.mxu3 %vm246_vm1, %v2296_v20  ;;  %3503 = vmatmul.msk.f32.gmra.mxu0 %vm246_vm1, %v2606_v39  ;;  %v1989_v47 = vld [vmem:[%s3595_s27 + $0x10c] sm:$0xff] }
 0x24b   : > { %v2903_v60 = vadd.f32 %v4245_v52, %v2863_v31 }
 0x24c   : > { %v2156_v59 = vpop.f32.mrf.mxu2 }
 0x24d   : > { %vm2939_vm11 = vcmp.ge.f32.partialorder %v2903_v60, 0.0  ;;  %v2975_v1 = vmul.f32 0.2, %v2903_v60  ;;  %v2244_v49 = vadd.f32 %v2156_v59, %v1934_v55  ;;  %v2466_v38 = vpop.f32.mrf.mxu3 }
 0x24e   : > { %v1849_v61 = vpop.f32.mrf.mxu1 }
 0x24f   : > { %v3011_v24 = vsel %vm2939_vm11, %v2903_v60, %v2975_v1  ;;  %v2554_v46 = vadd.f32 %v2466_v38, %v2244_v49  ;;  %v2779_v26 = vpop.f32.mrf.mxu0  ;;  %v1935_v15 = vadd.f32 %v1849_v61, %v3992_v40  ;;  %v2299_v60 = vld [vmem:[%s3595_s27 + $0x10d] sm:$0xff] }
 0x250   : > { %v3047_v5 = vmul.f32 1.4142135, %v3011_v24  ;;  %v2609_v1 = vld [vmem:[%s3595_s27 + $0x10e] sm:$0xff] }
 0x251   : > { %v2864_v51 = vadd.f32 %v2776_v56, %v2554_v46  ;;  %3390 = vmatmul.msk.f32.gmra.mxu1 %vm246_vm1, %v1985_v43  ;;  %3428 = vmatmul.msk.f32.gmra.mxu2 %vm246_vm1, %v1987_v8 }
 0x252   : > { %3083 = vst.msk [vmem:[%s4260_s16 + $0x48] sm:$0xff] %vm246_vm1, %v3047_v5  ;;  %3466 = vmatmul.msk.f32.gmra.mxu3 %vm246_vm1, %v2297_v45  ;;  %3504 = vmatmul.msk.f32.gmra.mxu0 %vm246_vm1, %v2607_v22  ;;  %v1990_v22 = vld [vmem:[%s3595_s27 + $0x114] sm:$0xff] }
 0x253   : > { %v2904_v2 = vadd.f32 %v4245_v52, %v2864_v51 }
 0x254   : > { %v2159_v50 = vpop.f32.mrf.mxu2 }
 0x255   : > { %vm2940_vm12 = vcmp.ge.f32.partialorder %v2904_v2, 0.0  ;;  %v2976_v12 = vmul.f32 0.2, %v2904_v2  ;;  %v2245_v28 = vadd.f32 %v2159_v50, %v1935_v15  ;;  %v2469_v43 = vpop.f32.mrf.mxu3  ;;  %v2300_v15 = vld [vmem:[%s3595_s27 + $0x115] sm:$0xff] }
 0x256   : > { %v1852_v35 = vpop.f32.mrf.mxu1  ;;  %v2610_v50 = vld [vmem:[%s3595_s27 + $0x116] sm:$0xff] }
 0x257   : > { %v3012_v33 = vsel %vm2940_vm12, %v2904_v2, %v2976_v12  ;;  %v2555_v16 = vadd.f32 %v2469_v43, %v2245_v28  ;;  %v2782_v58 = vpop.f32.mrf.mxu0  ;;  %v1936_v40 = vadd.f32 %v1852_v35, %v4002_v62 }
 0x258   : > { %v3048_v10 = vmul.f32 1.4142135, %v3012_v33 }
 0x259   : > { %v2865_v48 = vadd.f32 %v2779_v26, %v2555_v16  ;;  %3391 = vmatmul.msk.f32.gmra.mxu1 %vm246_vm1, %v1986_v36  ;;  %3429 = vmatmul.msk.f32.gmra.mxu2 %vm246_vm1, %v1988_v11 }
 0x25a   : > { %3084 = vst.msk [vmem:[%s4260_s16 + $0x50] sm:$0xff] %vm246_vm1, %v3048_v10  ;;  %3467 = vmatmul.msk.f32.gmra.mxu3 %vm246_vm1, %v2298_v21  ;;  %3505 = vmatmul.msk.f32.gmra.mxu0 %vm246_vm1, %v2608_v42 }
 0x25b   : > { %v2905_v17 = vadd.f32 %v4245_v52, %v2865_v48  ;;  %v2301_v48 = vld [vmem:[%s3595_s27 + $0x11d] sm:$0xff] }
 0x25c   : > { %v2162_v3 = vpop.f32.mrf.mxu2 }
 0x25d   : > { %vm2941_vm13 = vcmp.ge.f32.partialorder %v2905_v17, 0.0  ;;  %v2977_v20 = vmul.f32 0.2, %v2905_v17  ;;  %v2246_v56 = vadd.f32 %v2162_v3, %v1936_v40  ;;  %v2472_v36 = vpop.f32.mrf.mxu3 }
 0x25e   : > { %v1855_v39 = vpop.f32.mrf.mxu1 }
 0x25f   : > { %v3013_v31 = vsel %vm2941_vm13, %v2905_v17, %v2977_v20  ;;  %v2556_v55 = vadd.f32 %v2472_v36, %v2246_v56  ;;  %v2785_v59 = vpop.f32.mrf.mxu0  ;;  %v1937_v62 = vadd.f32 %v1855_v39, %v4012_v6  ;;  %v2611_v17 = vld [vmem:[%s3595_s27 + $0x11e] sm:$0xff] }
 0x260   : > { %v3049_v49 = vmul.f32 1.4142135, %v3013_v31 }
 0x261   : > { %v2866_v38 = vadd.f32 %v2782_v58, %v2556_v55  ;;  %3392 = vmatmul.msk.f32.gmra.mxu1 %vm246_vm1, %v1987_v8  ;;  %3430 = vmatmul.msk.f32.gmra.mxu2 %vm246_vm1, %v1989_v47  ;;  %v1991_v58 = vld [vmem:[%s3595_s27 + $0x11c] sm:$0xff] }
 0x262   : > { %3085 = vst.msk [vmem:[%s4260_s16 + $0x58] sm:$0xff] %vm246_vm1, %v3049_v49  ;;  %3468 = vmatmul.msk.f32.gmra.mxu3 %vm246_vm1, %v2299_v60  ;;  %3506 = vmatmul.msk.f32.gmra.mxu0 %vm246_vm1, %v2609_v1  ;;  %v1992_v60 = vld [vmem:[%s3595_s27 + $0x124] sm:$0xff] }
 0x263   : > { %v2906_v61 = vadd.f32 %v4245_v52, %v2866_v38  ;;  %v2302_v49 = vld [vmem:[%s3595_s27 + $0x125] sm:$0xff] }
 0x264   : > { %v2165_v24 = vpop.f32.mrf.mxu2 }
 0x265   : > { %vm2942_vm14 = vcmp.ge.f32.partialorder %v2906_v61, 0.0  ;;  %v2978_v46 = vmul.f32 0.2, %v2906_v61  ;;  %v2247_v45 = vadd.f32 %v2165_v24, %v1937_v62  ;;  %v2475_v8 = vpop.f32.mrf.mxu3  ;;  %v2612_v62 = vld [vmem:[%s3595_s27 + $0x126] sm:$0xff] }
 0x266   : > { %v1858_v26 = vpop.f32.mrf.mxu1 }
 0x267   : > { %v3014_v5 = vsel %vm2942_vm14, %v2906_v61, %v2978_v46  ;;  %v2557_v51 = vadd.f32 %v2475_v8, %v2247_v45  ;;  %v2788_v2 = vpop.f32.mrf.mxu0  ;;  %v1938_v6 = vadd.f32 %v1858_v26, %v4022_v29 }
 0x268   : > { %v3050_v12 = vmul.f32 1.4142135, %v3014_v5 }
 0x269   : > { %v2867_v28 = vadd.f32 %v2785_v59, %v2557_v51  ;;  %3393 = vmatmul.msk.f32.gmra.mxu1 %vm246_vm1, %v1988_v11  ;;  %3431 = vmatmul.msk.f32.gmra.mxu2 %vm246_vm1, %v1990_v22  ;;  %v1993_v51 = vld [vmem:[%s3595_s27 + $0x12c] sm:$0xff] }
 0x26a   : > { %3086 = vst.msk [vmem:[%s4260_s16 + $0x60] sm:$0xff] %vm246_vm1, %v3050_v12  ;;  %3469 = vmatmul.msk.f32.gmra.mxu3 %vm246_vm1, %v2300_v15  ;;  %3507 = vmatmul.msk.f32.gmra.mxu0 %vm246_vm1, %v2610_v50  ;;  %v2303_v50 = vld [vmem:[%s3595_s27 + $0x12d] sm:$0xff] }
 0x26b   : > { %v2907_v43 = vadd.f32 %v4245_v52, %v2867_v28  ;;  %v2613_v28 = vld [vmem:[%s3595_s27 + $0x12e] sm:$0xff] }
 0x26c   : > { %v2168_v35 = vpop.f32.mrf.mxu2 }
 0x26d   : > { %vm2943_vm15 = vcmp.ge.f32.partialorder %v2907_v43, 0.0  ;;  %v2979_v33 = vmul.f32 0.2, %v2907_v43  ;;  %v2248_v16 = vadd.f32 %v2168_v35, %v1938_v6  ;;  %v2478_v11 = vpop.f32.mrf.mxu3 }
 0x26e   : > { %v1861_v21 = vpop.f32.mrf.mxu1 }
 0x26f   : > { %v3015_v42 = vsel %vm2943_vm15, %v2907_v43, %v2979_v33  ;;  %v2558_v10 = vadd.f32 %v2478_v11, %v2248_v16  ;;  %v2791_v40 = vpop.f32.mrf.mxu0  ;;  %v1939_v29 = vadd.f32 %v1861_v21, %v4032_v54 }
 0x270   : > { %v3051_v3 = vmul.f32 1.4142135, %v3015_v42  ;;  %v1994_v42 = vld [vmem:[%s3595_s27 + $0x134] sm:$0xff] }
 0x271   : > { %v2868_v20 = vadd.f32 %v2788_v2, %v2558_v10  ;;  %3394 = vmatmul.msk.f32.gmra.mxu1 %vm246_vm1, %v1989_v47  ;;  %3432 = vmatmul.msk.f32.gmra.mxu2 %vm246_vm1, %v1991_v58 }
 0x272   : > { %3087 = vst.msk [vmem:[%s4260_s16 + $0x68] sm:$0xff] %vm246_vm1, %v3051_v3  ;;  %3470 = vmatmul.msk.f32.gmra.mxu3 %vm246_vm1, %v2301_v48  ;;  %3508 = vmatmul.msk.f32.gmra.mxu0 %vm246_vm1, %v2611_v17  ;;  %v2614_v3 = vld [vmem:[%s3595_s27 + $0x136] sm:$0xff] }
 0x273   : > { %v2908_v56 = vadd.f32 %v4245_v52, %v2868_v20 }
 0x274   : > { %v2171_v36 = vpop.f32.mrf.mxu2 }
 0x275   : > { %vm2944_vm0 = vcmp.ge.f32.partialorder %v2908_v56, 0.0  ;;  %v2980_v39 = vmul.f32 0.2, %v2908_v56  ;;  %v2249_v31 = vadd.f32 %v2171_v36, %v1939_v29  ;;  %v2481_v47 = vpop.f32.mrf.mxu3 }
 0x276   : > { %v1864_v55 = vpop.f32.mrf.mxu1 }
 0x277   : > { %v3016_v59 = vsel %vm2944_vm0, %v2908_v56, %v2980_v39  ;;  %v2559_v1 = vadd.f32 %v2481_v47, %v2249_v31  ;;  %v2794_v38 = vpop.f32.mrf.mxu0  ;;  %v1940_v54 = vadd.f32 %v1864_v55, %v4042_v13 }
 0x278   : > { %v3052_v61 = vmul.f32 1.4142135, %v3016_v59 }
 0x279   : > { %v2869_v24 = vadd.f32 %v2791_v40, %v2559_v1  ;;  %3395 = vmatmul.msk.f32.gmra.mxu1 %vm246_vm1, %v1990_v22  ;;  %3433 = vmatmul.msk.f32.gmra.mxu2 %vm246_vm1, %v1992_v60  ;;  %v2304_v40 = vld [vmem:[%s3595_s27 + $0x135] sm:$0xff] }
 0x27a   : > { %3088 = vst.msk [vmem:[%s4260_s16 + $0x70] sm:$0xff] %vm246_vm1, %v3052_v61  ;;  %3471 = vmatmul.msk.f32.gmra.mxu3 %vm246_vm1, %v2302_v49  ;;  %3509 = vmatmul.msk.f32.gmra.mxu0 %vm246_vm1, %v2612_v62  ;;  %v2305_v49 = vld [vmem:[%s3595_s27 + $0x13d] sm:$0xff] }
 0x27b   : > { %v2909_v46 = vadd.f32 %v4245_v52, %v2869_v24  ;;  %v2615_v62 = vld [vmem:[%s3595_s27 + $0x13e] sm:$0xff] }
 0x27c   : > { %v2174_v45 = vpop.f32.mrf.mxu2 }
 0x27d   : > { %vm2945_vm2 = vcmp.ge.f32.partialorder %v2909_v46, 0.0  ;;  %v2981_v8 = vmul.f32 0.2, %v2909_v46  ;;  %v2250_v26 = vadd.f32 %v2174_v45, %v1940_v54  ;;  %v2484_v22 = vpop.f32.mrf.mxu3 }
 0x27e   : > { %v1867_v5 = vpop.f32.mrf.mxu1 }
 0x27f   : > { %v3017_v15 = vsel %vm2945_vm2, %v2909_v46, %v2981_v8  ;;  %v2560_v2 = vadd.f32 %v2484_v22, %v2250_v26  ;;  %v2797_v12 = vpop.f32.mrf.mxu0  ;;  %v1941_v13 = vadd.f32 %v1867_v5, %v4052_v7 }
 0x280   : > { %v3053_v6 = vmul.f32 1.4142135, %v3017_v15 }
 0x281   : > { %v2870_v43 = vadd.f32 %v2794_v38, %v2560_v2  ;;  %3396 = vmatmul.msk.f32.gmra.mxu1 %vm246_vm1, %v1991_v58  ;;  %3434 = vmatmul.msk.f32.gmra.mxu2 %vm246_vm1, %v1993_v51 }
 0x282   : > { %3089 = vst.msk [vmem:[%s4260_s16 + $0x78] sm:$0xff] %vm246_vm1, %v3053_v6  ;;  %3472 = vmatmul.msk.f32.gmra.mxu3 %vm246_vm1, %v2303_v50  ;;  %3510 = vmatmul.msk.f32.gmra.mxu0 %vm246_vm1, %v2613_v28 }
 0x283   : > { %v2910_v35 = vadd.f32 %v4245_v52, %v2870_v43 }
 0x284   : > { %v2177_v33 = vpop.f32.mrf.mxu2 }
 0x285   : > { %vm2946_vm3 = vcmp.ge.f32.partialorder %v2910_v35, 0.0  ;;  %v2982_v16 = vmul.f32 0.2, %v2910_v35  ;;  %v2251_v11 = vadd.f32 %v2177_v33, %v1941_v13  ;;  %v2487_v21 = vpop.f32.mrf.mxu3 }
 0x286   : > { %v1870_v58 = vpop.f32.mrf.mxu1 }
 0x287   : > { %v3018_v10 = vsel %vm2946_vm3, %v2910_v35, %v2982_v16  ;;  %v2561_v48 = vadd.f32 %v2487_v21, %v2251_v11  ;;  %v2800_v17 = vpop.f32.mrf.mxu0  ;;  %v1942_v7 = vadd.f32 %v1870_v58, %v4062_v25 }
 0x288   : > { %v3054_v20 = vmul.f32 1.4142135, %v3018_v10 }
 0x289   : > { %v2871_v29 = vadd.f32 %v2797_v12, %v2561_v48  ;;  %3397 = vmatmul.msk.f32.gmra.mxu1 %vm246_vm1, %v1992_v60  ;;  %3435 = vmatmul.msk.f32.gmra.mxu2 %vm246_vm1, %v1994_v42  ;;  %v1995_v60 = vld [vmem:[%s3595_s27 + $0x13c] sm:$0xff] }
 0x28a   : > { %3090 = vst.msk [vmem:[%s4260_s16 + $0x80] sm:$0xff] %vm246_vm1, %v3054_v20  ;;  %3473 = vmatmul.msk.f32.gmra.mxu3 %vm246_vm1, %v2304_v40  ;;  %3511 = vmatmul.msk.f32.gmra.mxu0 %vm246_vm1, %v2614_v3 }
 0x28b   : > { %v2911_v56 = vadd.f32 %v4245_v52, %v2871_v29 }
 0x28c   : > { %v2180_v36 = vpop.f32.mrf.mxu2 }
 0x28d   : > { %vm2947_vm4 = vcmp.ge.f32.partialorder %v2911_v56, 0.0  ;;  %v2983_v39 = vmul.f32 0.2, %v2911_v56  ;;  %v2252_v31 = vadd.f32 %v2180_v36, %v1942_v7  ;;  %v2490_v47 = vpop.f32.mrf.mxu3 }
 0x28e   : > { %v1873_v55 = vpop.f32.mrf.mxu1 }
 0x28f   : > { %v3019_v59 = vsel %vm2947_vm4, %v2911_v56, %v2983_v39  ;;  %v2562_v1 = vadd.f32 %v2490_v47, %v2252_v31  ;;  %v2803_v38 = vpop.f32.mrf.mxu0  ;;  %v1943_v25 = vadd.f32 %v1873_v55, %v4073_v32 }
 0x290   : > { %v3055_v61 = vmul.f32 1.4142135, %v3019_v59 }
 0x291   : > { %v2872_v24 = vadd.f32 %v2800_v17, %v2562_v1  ;;  %3398 = vmatmul.msk.f32.gmra.mxu1 %vm246_vm1, %v1993_v51  ;;  %3436 = vmatmul.msk.f32.gmra.mxu2 %vm246_vm1, %v1995_v60 }
 0x292   : > { %3091 = vst.msk [vmem:[%s4260_s16 + $0x88] sm:$0xff] %vm246_vm1, %v3055_v61  ;;  %3474 = vmatmul.msk.f32.gmra.mxu3 %vm246_vm1, %v2305_v49  ;;  %3512 = vmatmul.msk.f32.gmra.mxu0 %vm246_vm1, %v2615_v62 }
 0x293   : > { %v2912_v54 = vadd.f32 %v4245_v52, %v2872_v24 }
 0x294   : > { %v2183_v46 = vpop.f32.mrf.mxu2 }
 0x295   : > { %vm2948_vm5 = vcmp.ge.f32.partialorder %v2912_v54, 0.0  ;;  %v2984_v45 = vmul.f32 0.2, %v2912_v54  ;;  %v2253_v8 = vadd.f32 %v2183_v46, %v1943_v25  ;;  %v2493_v26 = vpop.f32.mrf.mxu3 }
 0x296   : > { %v1876_v22 = vpop.f32.mrf.mxu1 }
 0x297   : > { %v3020_v5 = vsel %vm2948_vm5, %v2912_v54, %v2984_v45  ;;  %v2563_v51 = vadd.f32 %v2493_v26, %v2253_v8  ;;  %v2806_v15 = vpop.f32.mrf.mxu0  ;;  %v1944_v12 = vadd.f32 %v1876_v22, %v4084_v57 }
 0x298   : > { %v3056_v2 = vmul.f32 1.4142135, %v3020_v5 }
 0x299   : > { %v2873_v50 = vadd.f32 %v2803_v38, %v2563_v51 }
 0x29a   : > { %3092 = vst.msk [vmem:[%s4260_s16 + $0x90] sm:$0xff] %vm246_vm1, %v3056_v2 }
 0x29b   : > { %v2913_v32 = vadd.f32 %v4245_v52, %v2873_v50 }
 0x29c   : > { %v2186_v28 = vpop.f32.mrf.mxu2 }
 0x29d   : > { %vm2949_vm6 = vcmp.ge.f32.partialorder %v2913_v32, 0.0  ;;  %v2985_v6 = vmul.f32 0.2, %v2913_v32  ;;  %v2254_v43 = vadd.f32 %v2186_v28, %v1944_v12  ;;  %v2496_v13 = vpop.f32.mrf.mxu3 }
 0x29e   : > { %v1879_v35 = vpop.f32.mrf.mxu1 }
 0x29f   : > { %v3021_v33 = vsel %vm2949_vm6, %v2913_v32, %v2985_v6  ;;  %v2564_v16 = vadd.f32 %v2496_v13, %v2254_v43  ;;  %v2809_v11 = vpop.f32.mrf.mxu0  ;;  %v1945_v42 = vadd.f32 %v1879_v35, %v4094_v19 }
 0x2a0   : > { %v3057_v21 = vmul.f32 1.4142135, %v3021_v33 }
 0x2a1   : > { %v2874_v58 = vadd.f32 %v2806_v15, %v2564_v16 }
 0x2a2   : > { %3093 = vst.msk [vmem:[%s4260_s16 + $0x98] sm:$0xff] %vm246_vm1, %v3057_v21 }
 0x2a3   : > { %v2914_v57 = vadd.f32 %v4245_v52, %v2874_v58 }
 0x2a4   : > { %v2189_v10 = vpop.f32.mrf.mxu2 }
 0x2a5   : > { %vm2950_vm7 = vcmp.ge.f32.partialorder %v2914_v57, 0.0  ;;  %v2986_v48 = vmul.f32 0.2, %v2914_v57  ;;  %v2255_v40 = vadd.f32 %v2189_v10, %v1945_v42  ;;  %v2499_v17 = vpop.f32.mrf.mxu3 }
 0x2a6   : > { %v1882_v3 = vpop.f32.mrf.mxu1 }
 0x2a7   : > { %v3022_v20 = vsel %vm2950_vm7, %v2914_v57, %v2986_v48  ;;  %v2565_v29 = vadd.f32 %v2499_v17, %v2255_v40  ;;  %v2812_v7 = vpop.f32.mrf.mxu0  ;;  %v1946_v39 = vadd.f32 %v1882_v3, %v4104_v41 }
 0x2a8   : > { %v3058_v56 = vmul.f32 1.4142135, %v3022_v20 }
 0x2a9   : > { %v2875_v36 = vadd.f32 %v2809_v11, %v2565_v29 }
 0x2aa   : > { %3094 = vst.msk [vmem:[%s4260_s16 + $0xa0] sm:$0xff] %vm246_vm1, %v3058_v56 }
 0x2ab   : > { %v2915_v19 = vadd.f32 %v4245_v52, %v2875_v36 }
 0x2ac   : > { %v2192_v31 = vpop.f32.mrf.mxu2 }
 0x2ad   : > { %vm2951_vm8 = vcmp.ge.f32.partialorder %v2915_v19, 0.0  ;;  %v2987_v47 = vmul.f32 0.2, %v2915_v19  ;;  %v2256_v55 = vadd.f32 %v2192_v31, %v1946_v39  ;;  %v2502_v60 = vpop.f32.mrf.mxu3 }
 0x2ae   : > { %v1885_v59 = vpop.f32.mrf.mxu1 }
 0x2af   : > { %v3023_v1 = vsel %vm2951_vm8, %v2915_v19, %v2987_v47  ;;  %v2566_v49 = vadd.f32 %v2502_v60, %v2256_v55  ;;  %v2815_v38 = vpop.f32.mrf.mxu0  ;;  %v1947_v24 = vadd.f32 %v1885_v59, %v4114_v0 }
 0x2b0   : > { %v3059_v62 = vmul.f32 1.4142135, %v3023_v1 }
 0x2b1   : > { %v2876_v61 = vadd.f32 %v2812_v7, %v2566_v49 }
 0x2b2   : > { %3095 = vst.msk [vmem:[%s4260_s16 + $0xa8] sm:$0xff] %vm246_vm1, %v3059_v62 }
 0x2b3   : > { %v2916_v41 = vadd.f32 %v4245_v52, %v2876_v61 }
 0x2b4   : > { %v2195_v25 = vpop.f32.mrf.mxu2 }
 0x2b5   : > { %vm2952_vm9 = vcmp.ge.f32.partialorder %v2916_v41, 0.0  ;;  %v2988_v54 = vmul.f32 0.2, %v2916_v41  ;;  %v2257_v46 = vadd.f32 %v2195_v25, %v1947_v24  ;;  %v2505_v45 = vpop.f32.mrf.mxu3 }
 0x2b6   : > { %v1888_v8 = vpop.f32.mrf.mxu1 }
 0x2b7   : > { %v3024_v26 = vsel %vm2952_vm9, %v2916_v41, %v2988_v54  ;;  %v2567_v22 = vadd.f32 %v2505_v45, %v2257_v46  ;;  %v2818_v5 = vpop.f32.mrf.mxu0  ;;  %v1948_v2 = vadd.f32 %v1888_v8, %v4124_v53 }
 0x2b8   : > { %v3060_v51 = vmul.f32 1.4142135, %v3024_v26 }
 0x2b9   : > { %v2877_v15 = vadd.f32 %v2815_v38, %v2567_v22 }
 0x2ba   : > { %3096 = vst.msk [vmem:[%s4260_s16 + $0xb0] sm:$0xff] %vm246_vm1, %v3060_v51 }
 0x2bb   : > { %v2917_v0 = vadd.f32 %v4245_v52, %v2877_v15 }
 0x2bc   : > { %v2198_v50 = vpop.f32.mrf.mxu2 }
 0x2bd   : > { %vm2953_vm10 = vcmp.ge.f32.partialorder %v2917_v0, 0.0  ;;  %v2989_v12 = vmul.f32 0.2, %v2917_v0  ;;  %v2258_v32 = vadd.f32 %v2198_v50, %v1948_v2  ;;  %v2508_v28 = vpop.f32.mrf.mxu3 }
 0x2be   : > { %v1891_v6 = vpop.f32.mrf.mxu1 }
 0x2bf   : > { %v3025_v43 = vsel %vm2953_vm10, %v2917_v0, %v2989_v12  ;;  %v2568_v13 = vadd.f32 %v2508_v28, %v2258_v32  ;;  %v2821_v35 = vpop.f32.mrf.mxu0  ;;  %v1949_v11 = vadd.f32 %v1891_v6, %v4134_v63 }
 0x2c0   : > { %v3061_v33 = vmul.f32 1.4142135, %v3025_v43 }
 0x2c1   : > { %v2878_v16 = vadd.f32 %v2818_v5, %v2568_v13 }
 0x2c2   : > { %3097 = vst.msk [vmem:[%s4260_s16 + $0xb8] sm:$0xff] %vm246_vm1, %v3061_v33 }
 0x2c3   : > { %v2918_v53 = vadd.f32 %v4245_v52, %v2878_v16 }
 0x2c4   : > { %v2201_v21 = vpop.f32.mrf.mxu2 }
 0x2c5   : > { %vm2954_vm11 = vcmp.ge.f32.partialorder %v2918_v53, 0.0  ;;  %v2990_v58 = vmul.f32 0.2, %v2918_v53  ;;  %v2259_v42 = vadd.f32 %v2201_v21, %v1949_v11  ;;  %v2511_v57 = vpop.f32.mrf.mxu3 }
 0x2c6   : > { %v1894_v10 = vpop.f32.mrf.mxu1 }
 0x2c7   : > { %v3026_v48 = vsel %vm2954_vm11, %v2918_v53, %v2990_v58  ;;  %v2569_v40 = vadd.f32 %v2511_v57, %v2259_v42  ;;  %v2824_v17 = vpop.f32.mrf.mxu0  ;;  %v1950_v29 = vadd.f32 %v1894_v10, %v4144_v4 }
 0x2c8   : > { %v3062_v3 = vmul.f32 1.4142135, %v3026_v48 }
 0x2c9   : > { %v2879_v20 = vadd.f32 %v2821_v35, %v2569_v40 }
 0x2ca   : > { %3098 = vst.msk [vmem:[%s4260_s16 + $0xc0] sm:$0xff] %vm246_vm1, %v3062_v3 }
 0x2cb   : > { %v2919_v63 = vadd.f32 %v4245_v52, %v2879_v20 }
 0x2cc   : > { %v2204_v7 = vpop.f32.mrf.mxu2 }
 0x2cd   : > { %vm2955_vm12 = vcmp.ge.f32.partialorder %v2919_v63, 0.0  ;;  %v2991_v56 = vmul.f32 0.2, %v2919_v63  ;;  %v2260_v36 = vadd.f32 %v2204_v7, %v1950_v29  ;;  %v2514_v39 = vpop.f32.mrf.mxu3 }
 0x2ce   : > { %v1897_v19 = vpop.f32.mrf.mxu1 }
 0x2cf   : > { %v3027_v31 = vsel %vm2955_vm12, %v2919_v63, %v2991_v56  ;;  %v2570_v47 = vadd.f32 %v2514_v39, %v2260_v36  ;;  %v2827_v55 = vpop.f32.mrf.mxu0  ;;  %v1951_v1 = vadd.f32 %v1897_v19, %v4154_v27  ;;  %v4497_v27 = vld [vmem:[%s4538_s2] ss:$0 sm:$0xff] }
 0x2d0   : > { %v3063_v60 = vmul.f32 1.4142135, %v3027_v31 }
 0x2d1   : > { %v2880_v59 = vadd.f32 %v2824_v17, %v2570_v47 }
 0x2d2   : > { %3099 = vst.msk [vmem:[%s4260_s16 + $0xc8] sm:$0xff] %vm246_vm1, %v3063_v60 }
 0x2d3   : > { %v2920_v4 = vadd.f32 %v4245_v52, %v2880_v59 }
 0x2d4   : > { %v2207_v49 = vpop.f32.mrf.mxu2 }
 0x2d5   : > { %vm2956_vm13 = vcmp.ge.f32.partialorder %v2920_v4, 0.0  ;;  %v2992_v38 = vmul.f32 0.2, %v2920_v4  ;;  %v2261_v62 = vadd.f32 %v2207_v49, %v1951_v1  ;;  %v2517_v61 = vpop.f32.mrf.mxu3 }
 0x2d6   : > { %v1900_v24 = vpop.f32.mrf.mxu1 }
 0x2d7   : > { %v3028_v41 = vsel %vm2956_vm13, %v2920_v4, %v2992_v38  ;;  %v2571_v25 = vadd.f32 %v2517_v61, %v2261_v62  ;;  %v2830_v54 = vpop.f32.mrf.mxu0  ;;  %v1952_v8 = vadd.f32 %v1900_v24, %v4164_v18 }
 0x2d8   : > { %v3064_v46 = vmul.f32 1.4142135, %v3028_v41 }
 0x2d9   : > { %v2881_v45 = vadd.f32 %v2827_v55, %v2571_v25 }
 0x2da   : > { %3100 = vst.msk [vmem:[%s4260_s16 + $0xd0] sm:$0xff] %vm246_vm1, %v3064_v46 }
 0x2db   : > { %v2921_v52 = vadd.f32 %v4497_v27, %v2881_v45 }
 0x2dc   : > { %v2210_v26 = vpop.f32.mrf.mxu2 }
 0x2dd   : > { %vm2957_vm14 = vcmp.ge.f32.partialorder %v2921_v52, 0.0  ;;  %v2993_v22 = vmul.f32 0.2, %v2921_v52  ;;  %v2262_v5 = vadd.f32 %v2210_v26, %v1952_v8  ;;  %v2520_v51 = vpop.f32.mrf.mxu3 }
 0x2de   : > { %v1903_v15 = vpop.f32.mrf.mxu1 }
 0x2df   : > { %v3029_v2 = vsel %vm2957_vm14, %v2921_v52, %v2993_v22  ;;  %v2572_v0 = vadd.f32 %v2520_v51, %v2262_v5  ;;  %v2833_v50 = vpop.f32.mrf.mxu0  ;;  %v1953_v18 = vadd.f32 %v1903_v15, %v4174_v14 }
 0x2e0   : > { %v3065_v12 = vmul.f32 1.4142135, %v3029_v2 }
 0x2e1   : > { %v2882_v32 = vadd.f32 %v2830_v54, %v2572_v0 }
 0x2e2   : > { %3101 = vst.msk [vmem:[%s4260_s16 + $0xd8] sm:$0xff] %vm246_vm1, %v3065_v12 }
 0x2e3   : > { %v2922_v28 = vadd.f32 %v4497_v27, %v2882_v32 }
 0x2e4   : > { %v2213_v6 = vpop.f32.mrf.mxu2 }
 0x2e5   : > { %vm2958_vm15 = vcmp.ge.f32.partialorder %v2922_v28, 0.0  ;;  %v2994_v43 = vmul.f32 0.2, %v2922_v28  ;;  %v2263_v13 = vadd.f32 %v2213_v6, %v1953_v18  ;;  %v2523_v35 = vpop.f32.mrf.mxu3 }
 0x2e6   : > { %v1906_v33 = vpop.f32.mrf.mxu1 }
 0x2e7   : > { %v3030_v16 = vsel %vm2958_vm15, %v2922_v28, %v2994_v43  ;;  %v2573_v11 = vadd.f32 %v2523_v35, %v2263_v13  ;;  %v2836_v53 = vpop.f32.mrf.mxu0  ;;  %v1954_v42 = vadd.f32 %v1906_v33, %v4184_v34 }
 0x2e8   : > { %v3066_v21 = vmul.f32 1.4142135, %v3030_v16 }
 0x2e9   : > { %v2883_v58 = vadd.f32 %v2833_v50, %v2573_v11 }
 0x2ea   : > { %3102 = vst.msk [vmem:[%s4260_s16 + $0xe0] sm:$0xff] %vm246_vm1, %v3066_v21 }
 0x2eb   : > { %v2923_v14 = vadd.f32 %v4497_v27, %v2883_v58 }
 0x2ec   : > { %v2216_v57 = vpop.f32.mrf.mxu2 }
 0x2ed   : > { %vm2959_vm0 = vcmp.ge.f32.partialorder %v2923_v14, 0.0  ;;  %v2995_v10 = vmul.f32 0.2, %v2923_v14  ;;  %v2264_v48 = vadd.f32 %v2216_v57, %v1954_v42  ;;  %v2526_v40 = vpop.f32.mrf.mxu3 }
 0x2ee   : > { %v1909_v17 = vpop.f32.mrf.mxu1 }
 0x2ef   : > { %v3031_v3 = vsel %vm2959_vm0, %v2923_v14, %v2995_v10  ;;  %v2574_v20 = vadd.f32 %v2526_v40, %v2264_v48  ;;  %v2839_v29 = vpop.f32.mrf.mxu0  ;;  %v1955_v56 = vadd.f32 %v1909_v17, %v4194_v23 }
 0x2f0   : > { %v3067_v63 = vmul.f32 1.4142135, %v3031_v3 }
 0x2f1   : > { %v2884_v7 = vadd.f32 %v2836_v53, %v2574_v20 }
 0x2f2   : > { %3103 = vst.msk [vmem:[%s4260_s16 + $0xe8] sm:$0xff] %vm246_vm1, %v3067_v63 }
 0x2f3   : > { %v2924_v34 = vadd.f32 %v4497_v27, %v2884_v7 }
 0x2f4   : > { %v2219_v36 = vpop.f32.mrf.mxu2 }
 0x2f5   : > { %vm2960_vm2 = vcmp.ge.f32.partialorder %v2924_v34, 0.0  ;;  %v2996_v39 = vmul.f32 0.2, %v2924_v34  ;;  %v2265_v19 = vadd.f32 %v2219_v36, %v1955_v56  ;;  %v2529_v31 = vpop.f32.mrf.mxu3 }
 0x2f6   : > { %v1912_v47 = vpop.f32.mrf.mxu1 }
 0x2f7   : > { %v3032_v55 = vsel %vm2960_vm2, %v2924_v34, %v2996_v39  ;;  %v2575_v60 = vadd.f32 %v2529_v31, %v2265_v19  ;;  %v2842_v1 = vpop.f32.mrf.mxu0  ;;  %v1956_v49 = vadd.f32 %v1912_v47, %v4204_v30 }
 0x2f8   : > { %v3068_v59 = vmul.f32 1.4142135, %v3032_v55 }
 0x2f9   : > { %v2885_v4 = vadd.f32 %v2839_v29, %v2575_v60 }
 0x2fa   : > { %3104 = vst.msk [vmem:[%s4260_s16 + $0xf0] sm:$0xff] %vm246_vm1, %v3068_v59 }
 0x2fb   : > { %v2925_v23 = vadd.f32 %v4497_v27, %v2885_v4 }
 0x2fc   : > { %v2222_v38 = vpop.f32.mrf.mxu2 }
 0x2fd   : > { %vm2961_vm3 = vcmp.ge.f32.partialorder %v2925_v23, 0.0  ;;  %v2997_v62 = vmul.f32 0.2, %v2925_v23  ;;  %v2266_v61 = vadd.f32 %v2222_v38, %v1956_v49  ;;  %v2532_v24 = vpop.f32.mrf.mxu3 }
 0x2fe   : > { %v1915_v41 = vpop.f32.mrf.mxu1 }
 0x2ff   : > { %v3033_v25 = vsel %vm2961_vm3, %v2925_v23, %v2997_v62  ;;  %v2576_v54 = vadd.f32 %v2532_v24, %v2266_v61  ;;  %v2845_v8 = vpop.f32.mrf.mxu0  ;;  %v1957_v52 = vadd.f32 %v1915_v41, %v4214_v37 }
 0x300   : > { %v3069_v46 = vmul.f32 1.4142135, %v3033_v25 }
 0x301   : > { %v2886_v45 = vadd.f32 %v2842_v1, %v2576_v54 }
 0x302   : > { %3105 = vst.msk [vmem:[%s4260_s16 + $0xf8] sm:$0xff] %vm246_vm1, %v3069_v46 }
 0x303   : > { %v2926_v30 = vadd.f32 %v4497_v27, %v2886_v45 }
 0x304   : > { %v2225_v26 = vpop.f32.mrf.mxu2 }
 0x305   : > { %vm2962_vm4 = vcmp.ge.f32.partialorder %v2926_v30, 0.0  ;;  %v2998_v22 = vmul.f32 0.2, %v2926_v30  ;;  %v2267_v5 = vadd.f32 %v2225_v26, %v1957_v52  ;;  %v2535_v51 = vpop.f32.mrf.mxu3 }
 0x306   : > { %v1918_v15 = vpop.f32.mrf.mxu1 }
 0x307   : > { %v3034_v2 = vsel %vm2962_vm4, %v2926_v30, %v2998_v22  ;;  %v2577_v0 = vadd.f32 %v2535_v51, %v2267_v5  ;;  %v1958_v32 = vadd.f32 %v1918_v15, %v4224_v44  ;;  %v2848_v28 = vpop.f32.mrf.mxu0 }
 0x308   : > { %v3070_v50 = vmul.f32 1.4142135, %v3034_v2 }
 0x309   : > { %v2887_v12 = vadd.f32 %v2845_v8, %v2577_v0 }
 0x30a   : > { %3106 = vst.msk [vmem:[%s4260_s16 + $0x100] sm:$0xff] %vm246_vm1, %v3070_v50 }
 0x30b   : > { %v2927_v18 = vadd.f32 %v4497_v27, %v2887_v12 }
 0x30c   : > { %v2228_v37 = vpop.f32.mrf.mxu2 }
 0x30d   : > { %vm2963_vm5 = vcmp.ge.f32.partialorder %v2927_v18, 0.0  ;;  %v2999_v6 = vmul.f32 0.2, %v2927_v18  ;;  %v2268_v43 = vadd.f32 %v2228_v37, %v1958_v32  ;;  %v2538_v13 = vpop.f32.mrf.mxu3 }
 0x30e   : > { %v1921_v11 = vpop.f32.mrf.mxu1 }
 0x30f   : > { %v3035_v35 = vsel %vm2963_vm5, %v2927_v18, %v2999_v6  ;;  %v2578_v33 = vadd.f32 %v2538_v13, %v2268_v43  ;;  %v1959_v21 = vadd.f32 %v1921_v11, %v4234_v9  ;;  %v2851_v10 = vpop.f32.mrf.mxu0 }
 0x310   : > { %v3071_v16 = vmul.f32 1.4142135, %v3035_v35 }
 0x311   : > { %v2888_v53 = vadd.f32 %v2848_v28, %v2578_v33 }
 0x312   : > { %3107 = vst.msk [vmem:[%s4260_s16 + $0x108] sm:$0xff] %vm246_vm1, %v3071_v16 }
 0x313   : > { %v2928_v44 = vadd.f32 %v4497_v27, %v2888_v53 }
 0x314   : > { %v2231_v58 = vpop.f32.mrf.mxu2 }
 0x315   : > { %vm2964_vm6 = vcmp.ge.f32.partialorder %v2928_v44, 0.0  ;;  %v3000_v42 = vmul.f32 0.2, %v2928_v44  ;;  %v2269_v14 = vadd.f32 %v2231_v58, %v1959_v21  ;;  %v2541_v57 = vpop.f32.mrf.mxu3 }
 0x317   : > { %v3036_v48 = vsel %vm2964_vm6, %v2928_v44, %v3000_v42  ;;  %v2579_v40 = vadd.f32 %v2541_v57, %v2269_v14 }
 0x318   : > { %v3072_v17 = vmul.f32 1.4142135, %v3036_v48 }
 0x319   : > { %v2889_v3 = vadd.f32 %v2851_v10, %v2579_v40 }
 0x31a   : > { %3108 = vst.msk [vmem:[%s4260_s16 + $0x110] sm:$0xff] %vm246_vm1, %v3072_v17 }
 0x31b   : > { %v2929_v20 = vadd.f32 %v4497_v27, %v2889_v3 }
 0x31d   : > { %vm2965_vm7 = vcmp.ge.f32.partialorder %v2929_v20, 0.0  ;;  %v3001_v29 = vmul.f32 0.2, %v2929_v20 }
 0x31f   : > { %v3037_v9 = vsel %vm2965_vm7, %v2929_v20, %v3001_v29 }
 0x320   : > { %v3073_v63 = vmul.f32 1.4142135, %v3037_v9 }
 0x322   : > { %3109 = vst.msk [vmem:[%s4260_s16 + $0x118] sm:$0xff] %vm246_vm1, %v3073_v63 }
 0x323 PF: > { %s13_s12 = sadd.s32 1, %s3536_s12  }
 0x324   : > { %p10_p4 = scmp.ge.s32.totalorder %s13_s12, 4  }
 0x326   :  { %12 = sbr.rel (!%p10_p4) target bundleno = 1 (0x1), region = 70 }

// kernel: resblock_forward.3
= control target key start
LH: loop header
LB: loop body
LE: loop exit
PB: predicated region body
PF: predicated region fallthrough
CT: control target
= control target key end

     0   :  { %s2431_s18 = smov 0   ;;  %s3229_s0 = inlined_call_operand.vmem [shape: f32[2,110,16], index: 0, kind: input, shape index: {}]   ;;  %s3230_s1 = inlined_call_operand.vmem [shape: f32[2,110,16], index: 1, kind: input, shape index: {}]   ;;  %s3231_s2 = inlined_call_operand.vmem [shape: f32[9,16,8], index: 2, kind: input, shape index: {}]   ;;  %s3232_s3 = inlined_call_operand.vmem [shape: f32[9,16,8], index: 3, kind: input, shape index: {}]   ;;  %s3233_s4 = inlined_call_operand.vmem [shape: f32[1,8], index: 4, kind: input, shape index: {}]   ;;  %s3234_s5 = inlined_call_operand.vmem [shape: f32[2,80,8], index: 5, kind: output, shape index: {}]  }
   0x1 LB: > { %s2156_s19 = sadd.s32 4294967295, %s2399_s18   ;;  %p2160_p0 = scmp.ge.s32.totalorder %s2399_s18, 1  ;;  %s2399_s18 = sphi %s2431_s18, %s15_s18  }
   0x2   : > { %p197_p1 = scmp.lt.s32.totalorder %s2399_s18, 3 }
   0x4   : > { %p198_p2 = pnand %p2160_p0, %p197_p1 }
   0x5   : > { %p230_p3 = scmp.lt.s32.totalorder (!%p198_p2), %s2156_s19, 1 }
   0x6   : > { %201 = sbr.rel (%p198_p2) target bundleno = 519 (0x207), region = 40 }
   0xb   : > { %v2165_v0 = vld [vmem:[%s3231_s2 + $0x18] sm:$0xff]  ;;  %v266_v1 = vld [vmem:[%s3231_s2 + $0x8] sm:$0xff]  ;;  %v2164_v2 = vld [vmem:[%s3231_s2 + $0x10] sm:$0xff]  ;;  %s3236_s19 = smov (!%p230_p3, %s2156_s19), 1  ;;  %vm292_vm0 = vcmask 130048   ;;  %vm2078_vm2 = vcmask 64512  }
   0xc   : > { %337 = vmatpush.msra.mxu0 %v2165_v0  ;;  %2378 = vmatpush.msra.mxu2 %v2165_v0  ;;  %v265_v3 = vld [vmem:[%s3231_s2] sm:$0xff]  ;;  %v2187_v4 = vld [vmem:[%s3232_s3 + $0x18] sm:$0xff]  ;;  %v268_v5 = vld [vmem:[%s3232_s3 + $0x8] sm:$0xff]  ;;  %s2382_s11 = smul.u32 112, %s3236_s19 }
   0xd   : > { %2380 = vmatpush.msra.mxu3 %v266_v1  ;;  %414 = vmatpush.msra.mxu1 %v266_v1  ;;  %v2209_v6 = vld [vmem:[%s3231_s2 + $0x28] sm:$0xff]  ;;  %v2186_v8 = vld [vmem:[%s3232_s3 + $0x10] sm:$0xff]  ;;  %v267_v9 = vld [vmem:[%s3232_s3] sm:$0xff]  ;;  %s2383_s8 = smul.u32 80, %s3236_s19 }
   0xe   : > { %338 = vmatpush.msra.mxu0 %v2164_v2  ;;  %2379 = vmatpush.msra.mxu2 %v2164_v2  ;;  %v2221_v7 = vld [vmem:[%s3232_s3 + $0x28] sm:$0xff]  ;;  %s2477_s20 = scalar_lea.vmem %s3229_s0, %s2382_s11  ;;  %v2208_v10 = vld [vmem:[%s3231_s2 + $0x20] sm:$0xff]  ;;  %v2233_v20 = vld [vmem:[%s3231_s2 + $0x38] sm:$0xff]  ;;  %s2542_s10 = scalar_lea.vmem %s3230_s1, %s2382_s11 }
   0xf   : > { %2381 = vmatpush.msra.mxu3 %v265_v3  ;;  %415 = vmatpush.msra.mxu1 %v265_v3  ;;  %v269_v11 = vld [vmem:[%s2477_s20 + $0x1] sm:$0xff]  ;;  %v274_v12 = vld [vmem:[%s2477_s20 + $0x29] sm:$0xff]  ;;  %v275_v16 = vld [vmem:[%s2477_s20 + $0x31] sm:$0xff]  ;;  %s3178_s12 = scalar_lea.vmem %s3234_s5, %s2383_s8 }
  0x10   : > { %494 = vmatpush.msrb.mxu2 %v2187_v4  ;;  %671 = vmatpush.msrb.mxu0 %v2209_v6  ;;  %v250_v13 = vld [vmem:[%s2477_s20 + $0x28] sm:$0xff]  ;;  %v245_v14 = vld [vmem:[%s2477_s20] sm:$0xff]  ;;  %v251_v18 = vld [vmem:[%s2477_s20 + $0x30] sm:$0xff] }
  0x11   : > { %571 = vmatpush.msrb.mxu3 %v268_v5  ;;  %761 = vmatpush.msrb.mxu1 %v2221_v7  ;;  %v270_v15 = vld [vmem:[%s2477_s20 + $0x9] sm:$0xff]  ;;  %v2220_v17 = vld [vmem:[%s3232_s3 + $0x20] sm:$0xff]  ;;  %v2245_v21 = vld [vmem:[%s3232_s3 + $0x38] sm:$0xff] }
  0x12   : > { %495 = vmatpush.msrb.mxu2 %v2186_v8  ;;  %2166 = vmatmul.msk.f32.vlgmr.msra.gmra.mxu0 %vm292_vm0, %v269_v11  ;;  %v246_v19 = vld [vmem:[%s2477_s20 + $0x8] sm:$0xff]  ;;  %v271_v22 = vld [vmem:[%s2477_s20 + $0x11] sm:$0xff]  ;;  %v276_v23 = vld [vmem:[%s2477_s20 + $0x39] sm:$0xff] }
  0x13   : > { %572 = vmatpush.msrb.mxu3 %v267_v9  ;;  %2171 = vmatmul.msk.f32.vlgmr.msra.gmra.mxu2 %vm292_vm0, %v274_v12  ;;  %v252_v24 = vld [vmem:[%s2477_s20 + $0x38] sm:$0xff]  ;;  %v247_v25 = vld [vmem:[%s2477_s20 + $0x10] sm:$0xff]  ;;  %v2257_v26 = vld [vmem:[%s3231_s2 + $0x48] sm:$0xff] }
  0x14   : > { %2181 = vmatmul.msk.f32.vlgmr.msra.gmra.mxu3 %vm292_vm0, %v250_v13  ;;  %2176 = vmatmul.msk.f32.vlgmr.msra.gmra.mxu1 %vm292_vm0, %v245_v14  ;;  %v2269_v27 = vld [vmem:[%s3232_s3 + $0x48] sm:$0xff]  ;;  %v272_v28 = vld [vmem:[%s2477_s20 + $0x19] sm:$0xff]  ;;  %v2232_v44 = vld [vmem:[%s3231_s2 + $0x30] sm:$0xff] }
  0x15   : > { %672 = vmatpush.msrb.mxu0 %v2208_v10  ;;  %762 = vmatpush.msrb.mxu1 %v2220_v17  ;;  %v277_v29 = vld [vmem:[%s2477_s20 + $0x41] sm:$0xff]  ;;  %v248_v31 = vld [vmem:[%s2477_s20 + $0x18] sm:$0xff]  ;;  %v278_v33 = vld [vmem:[%s2477_s20 + $0x49] sm:$0xff] }
  0x16   : > { %871 = vmatpush.msra.mxu2 %v2233_v20  ;;  %961 = vmatpush.msra.mxu3 %v2245_v21  ;;  %v253_v30 = vld [vmem:[%s2477_s20 + $0x40] sm:$0xff]  ;;  %v254_v34 = vld [vmem:[%s2477_s20 + $0x48] sm:$0xff]  ;;  %v2244_v45 = vld [vmem:[%s3232_s3 + $0x30] sm:$0xff] }
  0x17   : > { %1071 = vmatpush.msra.mxu0 %v2257_v26  ;;  %1161 = vmatpush.msra.mxu1 %v2269_v27  ;;  %v273_v32 = vld [vmem:[%s2477_s20 + $0x21] sm:$0xff]  ;;  %v280_v40 = vld [vmem:[%s2542_s10 + $0x9] sm:$0xff]  ;;  %v281_v46 = vld [vmem:[%s2542_s10 + $0x11] sm:$0xff] }
  0x18   : > { %v249_v35 = vld [vmem:[%s2477_s20 + $0x20] sm:$0xff]  ;;  %v2554_v41 = vld [vmem:[%s2477_s20 + $0xa] sm:$0xff]  ;;  %872 = vmatpush.msra.mxu2 %v2232_v44  ;;  %962 = vmatpush.msra.mxu3 %v2244_v45  ;;  %v2574_v47 = vld [vmem:[%s2477_s20 + $0x12] sm:$0xff] }
  0x19   : > { %v279_v36 = vld [vmem:[%s2542_s10 + $0x1] sm:$0xff]  ;;  %v2558_v43 = vld [vmem:[%s2542_s10 + $0xa] sm:$0xff]  ;;  %v2578_v49 = vld [vmem:[%s2542_s10 + $0x12] sm:$0xff] }
  0x1a   : > { %2167 = vmatmul.msk.f32.gmra.mxu0 %vm292_vm0, %v270_v15  ;;  %v604_v37 = vld [vmem:[%s2477_s20 + $0x2] sm:$0xff]  ;;  %v257_v48 = vld [vmem:[%s2542_s10 + $0x10] sm:$0xff]  ;;  %v282_v52 = vld [vmem:[%s2542_s10 + $0x19] sm:$0xff] }
  0x1b   : > { %2172 = vmatmul.msk.f32.gmra.mxu2 %vm292_vm0, %v275_v16  ;;  %v255_v38 = vld [vmem:[%s2542_s10] sm:$0xff]  ;;  %v256_v42 = vld [vmem:[%s2542_s10 + $0x8] sm:$0xff]  ;;  %v258_v54 = vld [vmem:[%s2542_s10 + $0x18] sm:$0xff] }
  0x1c   : > { %2182 = vmatmul.msk.f32.gmra.mxu3 %vm292_vm0, %v251_v18  ;;  %2177 = vmatmul.msk.f32.gmra.mxu1 %vm292_vm0, %v246_v19  ;;  %v614_v39 = vld [vmem:[%s2542_s10 + $0x2] sm:$0xff]  ;;  %v2594_v53 = vld [vmem:[%s2477_s20 + $0x1a] sm:$0xff]  ;;  %v2622_v61 = vld [vmem:[%s2477_s20 + $0x2a] sm:$0xff] }
  0x1d   : > { %v2256_v50 = vld [vmem:[%s3231_s2 + $0x40] sm:$0xff]  ;;  %v284_v60 = vld [vmem:[%s2542_s10 + $0x29] sm:$0xff]  ;;  %v285_v0 = vld [vmem:[%s2542_s10 + $0x31] sm:$0xff] }
  0x1e   : > { %v2268_v51 = vld [vmem:[%s3232_s3 + $0x40] sm:$0xff]  ;;  %1072 = vmatpush.msra.mxu0 %v2256_v50  ;;  %v260_v62 = vld [vmem:[%s2542_s10 + $0x28] sm:$0xff]  ;;  %v2636_v1 = vld [vmem:[%s2477_s20 + $0x32] sm:$0xff] }
  0x1f   : > { %1162 = vmatpush.msra.mxu1 %v2268_v51  ;;  %v2598_v55 = vld [vmem:[%s2542_s10 + $0x1a] sm:$0xff]  ;;  %v2608_v57 = vld [vmem:[%s2477_s20 + $0x22] sm:$0xff]  ;;  %v2626_v63 = vld [vmem:[%s2542_s10 + $0x2a] sm:$0xff] }
  0x20   : > { %v283_v56 = vld [vmem:[%s2542_s10 + $0x21] sm:$0xff]  ;;  %v261_v2 = vld [vmem:[%s2542_s10 + $0x30] sm:$0xff]  ;;  %v2281_v4 = vld [vmem:[%s3231_s2 + $0x58] sm:$0xff] }
  0x21   : > { %v259_v58 = vld [vmem:[%s2542_s10 + $0x20] sm:$0xff]  ;;  %v2640_v3 = vld [vmem:[%s2542_s10 + $0x32] sm:$0xff]  ;;  %v2305_v10 = vld [vmem:[%s3231_s2 + $0x68] sm:$0xff] }
  0x22   : > { %2168 = vmatmul.msk.f32.gmra.mxu0 %vm292_vm0, %v271_v22  ;;  %v2612_v59 = vld [vmem:[%s2542_s10 + $0x22] sm:$0xff]  ;;  %v286_v5 = vld [vmem:[%s2542_s10 + $0x39] sm:$0xff]  ;;  %v2690_v17 = vld [vmem:[%s2477_s20 + $0x4a] sm:$0xff] }
  0x23   : > { %2173 = vmatmul.msk.f32.gmra.mxu2 %vm292_vm0, %v276_v23  ;;  %v2653_v6 = vld [vmem:[%s2477_s20 + $0x3a] sm:$0xff]  ;;  %v2673_v12 = vld [vmem:[%s2477_s20 + $0x42] sm:$0xff]  ;;  %v2694_v19 = vld [vmem:[%s2542_s10 + $0x4a] sm:$0xff] }
  0x24   : > { %2183 = vmatmul.msk.f32.gmra.mxu3 %vm292_vm0, %v252_v24  ;;  %2178 = vmatmul.msk.f32.gmra.mxu1 %vm292_vm0, %v247_v25  ;;  %v2293_v7 = vld [vmem:[%s3232_s3 + $0x58] sm:$0xff]  ;;  %v287_v11 = vld [vmem:[%s2542_s10 + $0x41] sm:$0xff]  ;;  %v288_v16 = vld [vmem:[%s2542_s10 + $0x49] sm:$0xff] }
  0x25   : > { %v262_v8 = vld [vmem:[%s2542_s10 + $0x38] sm:$0xff]  ;;  %v2317_v13 = vld [vmem:[%s3232_s3 + $0x68] sm:$0xff]  ;;  %v263_v14 = vld [vmem:[%s2542_s10 + $0x40] sm:$0xff] }
  0x26   : > { %v2660_v9 = vld [vmem:[%s2542_s10 + $0x3a] sm:$0xff]  ;;  %v2680_v15 = vld [vmem:[%s2542_s10 + $0x42] sm:$0xff]  ;;  %v1004_v20 = vld [vmem:[%s2477_s20 + $0xb] sm:$0xff] }
  0x27   : > { %v264_v18 = vld [vmem:[%s2542_s10 + $0x48] sm:$0xff]  ;;  %v1005_v23 = vld [vmem:[%s2477_s20 + $0x13] sm:$0xff] }
  0x28   : > { %v1014_v21 = vld [vmem:[%s2542_s10 + $0xb] sm:$0xff]  ;;  %v1015_v25 = vld [vmem:[%s2542_s10 + $0x13] sm:$0xff] }
  0x29   : > { %v2280_v26 = vld [vmem:[%s3231_s2 + $0x50] sm:$0xff] }
  0x2a   : > { %2169 = vmatmul.msk.f32.gmra.mxu0 %vm292_vm0, %v272_v28  ;;  %v1018_v50 = vld [vmem:[%s2542_s10 + $0x2b] sm:$0xff] }
  0x2b   : > { %2174 = vmatmul.msk.f32.gmra.mxu2 %vm292_vm0, %v277_v29 }
  0x2c   : > { %2184 = vmatmul.msk.f32.gmra.mxu3 %vm292_vm0, %v253_v30  ;;  %2179 = vmatmul.msk.f32.gmra.mxu1 %vm292_vm0, %v248_v31  ;;  %v1006_v31 = vld [vmem:[%s2477_s20 + $0x1b] sm:$0xff] }
  0x32   : > { %2170 = vmatmul.msk.f32.gmra.mxu0 %vm292_vm0, %v273_v32 }
  0x33   : > { %2175 = vmatmul.msk.f32.gmra.mxu2 %vm292_vm0, %v278_v33  ;;  %v1016_v33 = vld [vmem:[%s2542_s10 + $0x1b] sm:$0xff] }
  0x34   : > { %2185 = vmatmul.msk.f32.gmra.mxu3 %vm292_vm0, %v254_v34  ;;  %2180 = vmatmul.msk.f32.gmra.mxu1 %vm292_vm0, %v249_v35  ;;  %v2292_v34 = vld [vmem:[%s3232_s3 + $0x50] sm:$0xff]  ;;  %v2304_v35 = vld [vmem:[%s3231_s2 + $0x60] sm:$0xff] }
  0x3a   : > { %2210 = vmatmul.msk.f32.vlgmr.msrb.gmra.mxu0 %vm292_vm0, %v604_v37 }
  0x3b   : > { %2188 = vmatmul.msk.f32.vlgmr.msrb.gmra.mxu2 %vm292_vm0, %v279_v36  ;;  %1471 = vmatpush.msrb.mxu0 %v2305_v10 }
  0x3c   : > { %2198 = vmatmul.msk.f32.vlgmr.msrb.gmra.mxu3 %vm292_vm0, %v255_v38  ;;  %2222 = vmatmul.msk.f32.vlgmr.msrb.gmra.mxu1 %vm292_vm0, %v614_v39 }
  0x3d   : > { %1271 = vmatpush.msrb.mxu2 %v2281_v4  ;;  %1361 = vmatpush.msrb.mxu3 %v2293_v7  ;;  %v1011_v7 = vld [vmem:[%s2477_s20 + $0x43] sm:$0xff] }
  0x3e   : > { %1561 = vmatpush.msrb.mxu1 %v2317_v13  ;;  %1472 = vmatpush.msrb.mxu0 %v2304_v35  ;;  %v1023_v35 = vld [vmem:[%s2542_s10 + $0x53] sm:$0xff] }
  0x3f   : > { %1272 = vmatpush.msrb.mxu2 %v2280_v26  ;;  %1362 = vmatpush.msrb.mxu3 %v2292_v34  ;;  %v823_v34 = vld [vmem:[%s2542_s10 + $0x52] sm:$0xff] }
  0x42   : > { %2211 = vmatmul.msk.f32.gmra.mxu0 %vm292_vm0, %v2554_v41 }
  0x43   : > { %2189 = vmatmul.msk.f32.gmra.mxu2 %vm292_vm0, %v280_v40  ;;  %v1007_v40 = vld [vmem:[%s2477_s20 + $0x23] sm:$0xff] }
  0x44   : > { %2199 = vmatmul.msk.f32.gmra.mxu3 %vm292_vm0, %v256_v42  ;;  %2223 = vmatmul.msk.f32.gmra.mxu1 %vm292_vm0, %v2558_v43  ;;  %v1017_v42 = vld [vmem:[%s2542_s10 + $0x23] sm:$0xff] }
  0x4a   : > { %2212 = vmatmul.msk.f32.gmra.mxu0 %vm292_vm0, %v2574_v47 }
  0x4b   : > { %2190 = vmatmul.msk.f32.gmra.mxu2 %vm292_vm0, %v281_v46 }
  0x4c   : > { %2200 = vmatmul.msk.f32.gmra.mxu3 %vm292_vm0, %v257_v48  ;;  %2224 = vmatmul.msk.f32.gmra.mxu1 %vm292_vm0, %v2578_v49  ;;  %v1008_v48 = vld [vmem:[%s2477_s20 + $0x2b] sm:$0xff] }
  0x52   : > { %2213 = vmatmul.msk.f32.gmra.mxu0 %vm292_vm0, %v2594_v53 }
  0x53   : > { %2191 = vmatmul.msk.f32.gmra.mxu2 %vm292_vm0, %v282_v52 }
  0x54   : > { %2201 = vmatmul.msk.f32.gmra.mxu3 %vm292_vm0, %v258_v54  ;;  %2225 = vmatmul.msk.f32.gmra.mxu1 %vm292_vm0, %v2598_v55 }
  0x5a   : > { %2214 = vmatmul.msk.f32.gmra.mxu0 %vm292_vm0, %v2608_v57 }
  0x5b   : > { %2192 = vmatmul.msk.f32.gmra.mxu2 %vm292_vm0, %v283_v56 }
  0x5c   : > { %2202 = vmatmul.msk.f32.gmra.mxu3 %vm292_vm0, %v259_v58  ;;  %2226 = vmatmul.msk.f32.gmra.mxu1 %vm292_vm0, %v2612_v59 }
  0x62   : > { %2215 = vmatmul.msk.f32.gmra.mxu0 %vm292_vm0, %v2622_v61 }
  0x63   : > { %2193 = vmatmul.msk.f32.gmra.mxu2 %vm292_vm0, %v284_v60 }
  0x64   : > { %2203 = vmatmul.msk.f32.gmra.mxu3 %vm292_vm0, %v260_v62  ;;  %2227 = vmatmul.msk.f32.gmra.mxu1 %vm292_vm0, %v2626_v63  ;;  %v1010_v62 = vld [vmem:[%s2477_s20 + $0x3b] sm:$0xff] }
  0x6a   : > { %2216 = vmatmul.msk.f32.gmra.mxu0 %vm292_vm0, %v2636_v1 }
  0x6b   : > { %2194 = vmatmul.msk.f32.gmra.mxu2 %vm292_vm0, %v285_v0  ;;  %v1020_v0 = vld [vmem:[%s2542_s10 + $0x3b] sm:$0xff] }
  0x6c   : > { %2204 = vmatmul.msk.f32.gmra.mxu3 %vm292_vm0, %v261_v2  ;;  %2228 = vmatmul.msk.f32.gmra.mxu1 %vm292_vm0, %v2640_v3 }
  0x72   : > { %2217 = vmatmul.msk.f32.gmra.mxu0 %vm292_vm0, %v2653_v6 }
  0x73   : > { %2195 = vmatmul.msk.f32.gmra.mxu2 %vm292_vm0, %v286_v5 }
  0x74   : > { %2205 = vmatmul.msk.f32.gmra.mxu3 %vm292_vm0, %v262_v8  ;;  %2229 = vmatmul.msk.f32.gmra.mxu1 %vm292_vm0, %v2660_v9  ;;  %v1021_v8 = vld [vmem:[%s2542_s10 + $0x43] sm:$0xff] }
  0x7a   : > { %2218 = vmatmul.msk.f32.gmra.mxu0 %vm292_vm0, %v2673_v12 }
  0x7b   : > { %2196 = vmatmul.msk.f32.gmra.mxu2 %vm292_vm0, %v287_v11  ;;  %v2353_v11 = vld [vmem:[%s3231_s2 + $0x88] sm:$0xff] }
  0x7c   : > { %2206 = vmatmul.msk.f32.gmra.mxu3 %vm292_vm0, %v263_v14  ;;  %2230 = vmatmul.msk.f32.gmra.mxu1 %vm292_vm0, %v2680_v15 }
  0x82   : > { %2219 = vmatmul.msk.f32.gmra.mxu0 %vm292_vm0, %v2690_v17 }
  0x83   : > { %2197 = vmatmul.msk.f32.gmra.mxu2 %vm292_vm0, %v288_v16 }
  0x84   : > { %2207 = vmatmul.msk.f32.gmra.mxu3 %vm292_vm0, %v264_v18  ;;  %2231 = vmatmul.msk.f32.gmra.mxu1 %vm292_vm0, %v2694_v19 }
  0x8a   : > { %2258 = vmatmul.msk.f32.vlgmr.msra.gmra.mxu0 %vm292_vm0, %v1004_v20 }
  0x8b   : > { %2234 = vmatmul.msk.f32.vlgmr.msra.gmra.mxu2 %vm292_vm0, %v2554_v41  ;;  %1871 = vmatpush.msra.mxu0 %v2353_v11 }
  0x8c   : > { %2246 = vmatmul.msk.f32.vlgmr.msra.gmra.mxu3 %vm292_vm0, %v2558_v43  ;;  %2270 = vmatmul.msk.f32.vlgmr.msra.gmra.mxu1 %vm292_vm0, %v1014_v21  ;;  %v2316_v43 = vld [vmem:[%s3232_s3 + $0x60] sm:$0xff]  ;;  %v1022_v21 = vld [vmem:[%s2542_s10 + $0x4b] sm:$0xff] }
  0x8d   : > { %1562 = vmatpush.msrb.mxu1 %v2316_v43  ;;  %v1204_v43 = vld [vmem:[%s2477_s20 + $0xc] sm:$0xff] }
  0x8f   : > { %v2710_v22 = vpop.f32.mrf.mxu0 }
  0x91   : > { %v2713_v24 = vpop.f32.mrf.mxu1 }
  0x92   : > { %2259 = vmatmul.msk.f32.gmra.mxu0 %vm292_vm0, %v1005_v23  ;;  %v2365_v23 = vld [vmem:[%s3232_s3 + $0x88] sm:$0xff] }
  0x93   : > { %2235 = vmatmul.msk.f32.gmra.mxu2 %vm292_vm0, %v2574_v47  ;;  %1961 = vmatpush.msra.mxu1 %v2365_v23  ;;  %v1208_v23 = vld [vmem:[%s2477_s20 + $0x2c] sm:$0xff] }
  0x94   : > { %2247 = vmatmul.msk.f32.gmra.mxu3 %vm292_vm0, %v2578_v49  ;;  %2271 = vmatmul.msk.f32.gmra.mxu1 %vm292_vm0, %v1015_v25 }
  0x96   : > { %v355_v27 = vpop.f32.mrf.mxu2 }
  0x97   : > { %v432_v28 = vpop.f32.mrf.mxu3  ;;  %v2727_v30 = vpop.f32.mrf.mxu0 }
  0x98   : > { %v2725_v29 = vadd.f32 %v432_v28, %v355_v27 }
  0x99   : > { %v2730_v32 = vpop.f32.mrf.mxu1 }
  0x9a   : > { %2260 = vmatmul.msk.f32.gmra.mxu0 %vm292_vm0, %v1006_v31  ;;  %v813_v31 = vld [vmem:[%s2477_s20 + $0x52] sm:$0xff] }
  0x9b   : > { %2236 = vmatmul.msk.f32.gmra.mxu2 %vm292_vm0, %v2594_v53 }
  0x9c   : > { %2248 = vmatmul.msk.f32.gmra.mxu3 %vm292_vm0, %v2598_v55  ;;  %2272 = vmatmul.msk.f32.gmra.mxu1 %vm292_vm0, %v1016_v33  ;;  %v1009_v55 = vld [vmem:[%s2477_s20 + $0x33] sm:$0xff] }
  0x9d   : > { %v1013_v33 = vld [vmem:[%s2477_s20 + $0x53] sm:$0xff] }
  0x9e   : > { %v358_v36 = vpop.f32.mrf.mxu2 }
  0x9f   : > { %v435_v37 = vpop.f32.mrf.mxu3  ;;  %v2747_v39 = vpop.f32.mrf.mxu0 }
  0xa0   : > { %v2745_v38 = vadd.f32 %v435_v37, %v358_v36 }
  0xa1   : > { %v2750_v41 = vpop.f32.mrf.mxu1 }
  0xa2   : > { %2261 = vmatmul.msk.f32.gmra.mxu0 %vm292_vm0, %v1007_v40 }
  0xa3   : > { %2237 = vmatmul.msk.f32.gmra.mxu2 %vm292_vm0, %v2608_v57  ;;  %v1019_v57 = vld [vmem:[%s2542_s10 + $0x33] sm:$0xff] }
  0xa4   : > { %2249 = vmatmul.msk.f32.gmra.mxu3 %vm292_vm0, %v2612_v59  ;;  %2273 = vmatmul.msk.f32.gmra.mxu1 %vm292_vm0, %v1017_v42 }
  0xa6   : > { %v361_v44 = vpop.f32.mrf.mxu2 }
  0xa7   : > { %v438_v45 = vpop.f32.mrf.mxu3  ;;  %v2764_v47 = vpop.f32.mrf.mxu0 }
  0xa8   : > { %v2762_v46 = vadd.f32 %v438_v45, %v361_v44  ;;  %v1205_v44 = vld [vmem:[%s2477_s20 + $0x14] sm:$0xff]  ;;  %v1214_v45 = vld [vmem:[%s2542_s10 + $0xc] sm:$0xff] }
  0xa9   : > { %v2767_v49 = vpop.f32.mrf.mxu1 }
  0xaa   : > { %2262 = vmatmul.msk.f32.gmra.mxu0 %vm292_vm0, %v1008_v48 }
  0xab   : > { %2238 = vmatmul.msk.f32.gmra.mxu2 %vm292_vm0, %v2622_v61 }
  0xac   : > { %2250 = vmatmul.msk.f32.gmra.mxu3 %vm292_vm0, %v2626_v63  ;;  %2274 = vmatmul.msk.f32.gmra.mxu1 %vm292_vm0, %v1018_v50  ;;  %v1215_v50 = vld [vmem:[%s2542_s10 + $0x14] sm:$0xff] }
  0xae   : > { %v364_v51 = vpop.f32.mrf.mxu2 }
  0xaf   : > { %v441_v52 = vpop.f32.mrf.mxu3  ;;  %v2778_v54 = vpop.f32.mrf.mxu0 }
  0xb0   : > { %v2776_v53 = vadd.f32 %v441_v52, %v364_v51 }
  0xb1   : > { %v2781_v56 = vpop.f32.mrf.mxu1 }
  0xb2   : > { %2263 = vmatmul.msk.f32.gmra.mxu0 %vm292_vm0, %v1009_v55 }
  0xb3   : > { %2239 = vmatmul.msk.f32.gmra.mxu2 %vm292_vm0, %v2636_v1  ;;  %v2329_v1 = vld [vmem:[%s3231_s2 + $0x78] sm:$0xff] }
  0xb4   : > { %2251 = vmatmul.msk.f32.gmra.mxu3 %vm292_vm0, %v2640_v3  ;;  %2275 = vmatmul.msk.f32.gmra.mxu1 %vm292_vm0, %v1019_v57 }
  0xb5   : > { %1671 = vmatpush.msra.mxu2 %v2329_v1  ;;  %v2328_v1 = vld [vmem:[%s3231_s2 + $0x70] sm:$0xff] }
  0xb6   : > { %v367_v58 = vpop.f32.mrf.mxu2 }
  0xb7   : > { %v444_v59 = vpop.f32.mrf.mxu3  ;;  %v2792_v61 = vpop.f32.mrf.mxu0  ;;  %1672 = vmatpush.msra.mxu2 %v2328_v1 }
  0xb8   : > { %v2790_v60 = vadd.f32 %v444_v59, %v367_v58  ;;  %v1206_v59 = vld [vmem:[%s2477_s20 + $0x1c] sm:$0xff] }
  0xb9   : > { %v764_v63 = vpop.f32.mrf.mxu1 }
  0xba   : > { %2264 = vmatmul.msk.f32.gmra.mxu0 %vm292_vm0, %v1010_v62 }
  0xbb   : > { %2240 = vmatmul.msk.f32.gmra.mxu2 %vm292_vm0, %v2653_v6 }
  0xbc   : > { %2252 = vmatmul.msk.f32.gmra.mxu3 %vm292_vm0, %v2660_v9  ;;  %2276 = vmatmul.msk.f32.gmra.mxu1 %vm292_vm0, %v1020_v0  ;;  %v2341_v9 = vld [vmem:[%s3232_s3 + $0x78] sm:$0xff] }
  0xbd   : > { %1761 = vmatpush.msra.mxu3 %v2341_v9  ;;  %v1217_v9 = vld [vmem:[%s2542_s10 + $0x24] sm:$0xff] }
  0xbe   : > { %v497_v2 = vpop.f32.mrf.mxu2 }
  0xbf   : > { %v574_v3 = vpop.f32.mrf.mxu3  ;;  %v2805_v5 = vpop.f32.mrf.mxu0 }
  0xc0   : > { %v575_v4 = vadd.f32 %v574_v3, %v497_v2 }
  0xc1   : > { %v767_v6 = vpop.f32.mrf.mxu1 }
  0xc2   : > { %v2809_v10 = vadd.f32 %v764_v63, %v575_v4  ;;  %2265 = vmatmul.msk.f32.gmra.mxu0 %vm292_vm0, %v1011_v7  ;;  %v1216_v63 = vld [vmem:[%s2542_s10 + $0x1c] sm:$0xff] }
  0xc3   : > { %2241 = vmatmul.msk.f32.gmra.mxu2 %vm292_vm0, %v2673_v12  ;;  %v1012_v12 = vld [vmem:[%s2477_s20 + $0x4b] sm:$0xff] }
  0xc4   : > { %2253 = vmatmul.msk.f32.gmra.mxu3 %vm292_vm0, %v2680_v15  ;;  %2277 = vmatmul.msk.f32.gmra.mxu1 %vm292_vm0, %v1021_v8 }
  0xc6   : > { %v500_v13 = vpop.f32.mrf.mxu2 }
  0xc7   : > { %v577_v14 = vpop.f32.mrf.mxu3  ;;  %v2823_v18 = vpop.f32.mrf.mxu0 }
  0xc8   : > { %v578_v16 = vadd.f32 %v577_v14, %v500_v13  ;;  %v2340_v13 = vld [vmem:[%s3232_s3 + $0x70] sm:$0xff]  ;;  %v2352_v14 = vld [vmem:[%s3231_s2 + $0x80] sm:$0xff] }
  0xc9   : > { %v770_v20 = vpop.f32.mrf.mxu1  ;;  %1762 = vmatpush.msra.mxu3 %v2340_v13  ;;  %1872 = vmatpush.msra.mxu0 %v2352_v14 }
  0xca   : > { %v2827_v15 = vadd.f32 %v767_v6, %v578_v16  ;;  %2266 = vmatmul.msk.f32.gmra.mxu0 %vm292_vm0, %v1012_v12  ;;  %v1207_v6 = vld [vmem:[%s2477_s20 + $0x24] sm:$0xff] }
  0xcb   : > { %2242 = vmatmul.msk.f32.gmra.mxu2 %vm292_vm0, %v2690_v17 }
  0xcc   : > { %2254 = vmatmul.msk.f32.gmra.mxu3 %vm292_vm0, %v2694_v19  ;;  %2278 = vmatmul.msk.f32.gmra.mxu1 %vm292_vm0, %v1022_v21 }
  0xce   : > { %v503_v25 = vpop.f32.mrf.mxu2 }
  0xcf   : > { %v580_v26 = vpop.f32.mrf.mxu3  ;;  %v2838_v28 = vpop.f32.mrf.mxu0 }
  0xd0   : > { %v581_v27 = vadd.f32 %v580_v26, %v503_v25  ;;  %v1218_v26 = vld [vmem:[%s2542_s10 + $0x2c] sm:$0xff] }
  0xd1   : > { %v773_v17 = vpop.f32.mrf.mxu1 }
  0xd2   : > { %v2844_v36 = vadd.f32 %v770_v20, %v581_v27  ;;  %2267 = vmatmul.msk.f32.gmra.mxu0 %vm292_vm0, %v1013_v33 }
  0xd3   : > { %2243 = vmatmul.msk.f32.gmra.mxu2 %vm292_vm0, %v813_v31  ;;  %v2364_v31 = vld [vmem:[%s3232_s3 + $0x80] sm:$0xff] }
  0xd4   : > { %2255 = vmatmul.msk.f32.gmra.mxu3 %vm292_vm0, %v823_v34  ;;  %2279 = vmatmul.msk.f32.gmra.mxu1 %vm292_vm0, %v1023_v35 }
  0xd5   : > { %1962 = vmatpush.msra.mxu1 %v2364_v31 }
  0xd6   : > { %v506_v19 = vpop.f32.mrf.mxu2 }
  0xd7   : > { %v583_v37 = vpop.f32.mrf.mxu3  ;;  %v2850_v42 = vpop.f32.mrf.mxu0 }
  0xd8   : > { %v584_v40 = vadd.f32 %v583_v37, %v506_v19  ;;  %v1209_v19 = vld [vmem:[%s2477_s20 + $0x34] sm:$0xff] }
  0xd9   : > { %v776_v48 = vpop.f32.mrf.mxu1 }
  0xda   : > { %v2856_v51 = vadd.f32 %v773_v17, %v584_v40  ;;  %2306 = vmatmul.msk.f32.vlgmr.msrb.gmra.mxu0 %vm292_vm0, %v1205_v44  ;;  %v1219_v40 = vld [vmem:[%s2542_s10 + $0x34] sm:$0xff] }
  0xdb   : > { %2282 = vmatmul.msk.f32.vlgmr.msrb.gmra.mxu2 %vm292_vm0, %v1204_v43 }
  0xdc   : > { %2294 = vmatmul.msk.f32.vlgmr.msrb.gmra.mxu3 %vm292_vm0, %v1214_v45  ;;  %2318 = vmatmul.msk.f32.vlgmr.msrb.gmra.mxu1 %vm292_vm0, %v1215_v50 }
  0xde   : > { %v509_v52 = vpop.f32.mrf.mxu2 }
  0xdf   : > { %v586_v55 = vpop.f32.mrf.mxu3  ;;  %v2862_v58 = vpop.f32.mrf.mxu0 }
  0xe0   : > { %v587_v57 = vadd.f32 %v586_v55, %v509_v52  ;;  %v1210_v52 = vld [vmem:[%s2477_s20 + $0x3c] sm:$0xff] }
  0xe1   : > { %v779_v62 = vpop.f32.mrf.mxu1 }
  0xe2   : > { %v2866_v0 = vadd.f32 %v776_v48, %v587_v57  ;;  %2307 = vmatmul.msk.f32.gmra.mxu0 %vm292_vm0, %v1206_v59  ;;  %v1220_v57 = vld [vmem:[%s2542_s10 + $0x3c] sm:$0xff] }
  0xe3   : > { %2283 = vmatmul.msk.f32.gmra.mxu2 %vm292_vm0, %v1205_v44 }
  0xe4   : > { %2295 = vmatmul.msk.f32.gmra.mxu3 %vm292_vm0, %v1215_v50  ;;  %2319 = vmatmul.msk.f32.gmra.mxu1 %vm292_vm0, %v1216_v63 }
  0xe6   : > { %v512_v2 = vpop.f32.mrf.mxu2 }
  0xe7   : > { %v589_v3 = vpop.f32.mrf.mxu3  ;;  %v2875_v7 = vpop.f32.mrf.mxu0 }
  0xe8   : > { %v590_v4 = vadd.f32 %v589_v3, %v512_v2  ;;  %v1211_v3 = vld [vmem:[%s2477_s20 + $0x44] sm:$0xff] }
  0xe9   : > { %v782_v8 = vpop.f32.mrf.mxu1 }
  0xea   : > { %v2879_v11 = vadd.f32 %v779_v62, %v590_v4  ;;  %2308 = vmatmul.msk.f32.gmra.mxu0 %vm292_vm0, %v1207_v6 }
  0xeb   : > { %2284 = vmatmul.msk.f32.gmra.mxu2 %vm292_vm0, %v1206_v59 }
  0xec   : > { %2296 = vmatmul.msk.f32.gmra.mxu3 %vm292_vm0, %v1216_v63  ;;  %2320 = vmatmul.msk.f32.gmra.mxu1 %vm292_vm0, %v1217_v9 }
  0xee   : > { %v515_v16 = vpop.f32.mrf.mxu2 }
  0xef   : > { %v592_v12 = vpop.f32.mrf.mxu3  ;;  %v2891_v21 = vpop.f32.mrf.mxu0 }
  0xf0   : > { %v593_v20 = vadd.f32 %v592_v12, %v515_v16 }
  0xf1   : > { %v785_v25 = vpop.f32.mrf.mxu1 }
  0xf2   : > { %v2895_v27 = vadd.f32 %v782_v8, %v593_v20  ;;  %2309 = vmatmul.msk.f32.gmra.mxu0 %vm292_vm0, %v1208_v23 }
  0xf3   : > { %2285 = vmatmul.msk.f32.gmra.mxu2 %vm292_vm0, %v1207_v6  ;;  %v1221_v6 = vld [vmem:[%s2542_s10 + $0x44] sm:$0xff] }
  0xf4   : > { %2297 = vmatmul.msk.f32.gmra.mxu3 %vm292_vm0, %v1217_v9  ;;  %2321 = vmatmul.msk.f32.gmra.mxu1 %vm292_vm0, %v1218_v26  ;;  %v418_v9 = vadd.f32 %v2713_v24, %v2710_v22  ;;  %v1222_v24 = vld [vmem:[%s2542_s10 + $0x4c] sm:$0xff] }
  0xf6   : > { %v518_v33 = vpop.f32.mrf.mxu2  ;;  %v704_v13 = vadd.f32 %v2792_v61, %v418_v9 }
  0xf7   : > { %v595_v34 = vpop.f32.mrf.mxu3  ;;  %v2904_v35 = vpop.f32.mrf.mxu0 }
  0xf8   : > { %v596_v17 = vadd.f32 %v595_v34, %v518_v33  ;;  %v421_v33 = vadd.f32 %v2730_v32, %v2727_v30  ;;  %v1223_v32 = vld [vmem:[%s2542_s10 + $0x54] sm:$0xff] }
  0xf9   : > { %v788_v37 = vpop.f32.mrf.mxu1 }
  0xfa   : > { %v2908_v43 = vadd.f32 %v785_v25, %v596_v17  ;;  %2310 = vmatmul.msk.f32.gmra.mxu0 %vm292_vm0, %v1209_v19  ;;  %v1212_v25 = vld [vmem:[%s2477_s20 + $0x4c] sm:$0xff]  ;;  %v705_v61 = vadd.f32 %v2805_v5, %v421_v33 }
  0xfb   : > { %2286 = vmatmul.msk.f32.gmra.mxu2 %vm292_vm0, %v1208_v23 }
  0xfc   : > { %2298 = vmatmul.msk.f32.gmra.mxu3 %vm292_vm0, %v1218_v26  ;;  %2322 = vmatmul.msk.f32.gmra.mxu1 %vm292_vm0, %v1219_v40 }
  0xfe   : > { %v521_v44 = vpop.f32.mrf.mxu2 }
  0xff   : > { %v598_v45 = vpop.f32.mrf.mxu3  ;;  %v2914_v50 = vpop.f32.mrf.mxu0 }
 0x100   : > { %v599_v48 = vadd.f32 %v598_v45, %v521_v44 }
 0x101   : > { %v791_v55 = vpop.f32.mrf.mxu1 }
 0x102   : > { %v2918_v59 = vadd.f32 %v788_v37, %v599_v48  ;;  %2311 = vmatmul.msk.f32.gmra.mxu0 %vm292_vm0, %v1210_v52  ;;  %v424_v48 = vadd.f32 %v2750_v41, %v2747_v39  ;;  %v1423_v41 = vld [vmem:[%s2542_s10 + $0x5c] sm:$0xff] }
 0x103   : > { %2287 = vmatmul.msk.f32.gmra.mxu2 %vm292_vm0, %v1209_v19 }
 0x104   : > { %2299 = vmatmul.msk.f32.gmra.mxu3 %vm292_vm0, %v1219_v40  ;;  %2323 = vmatmul.msk.f32.gmra.mxu1 %vm292_vm0, %v1220_v57  ;;  %v1213_v40 = vld [vmem:[%s2477_s20 + $0x54] sm:$0xff]  ;;  %v706_v5 = vadd.f32 %v2823_v18, %v424_v48  ;;  %v1606_v48 = vld [vmem:[%s2477_s20 + $0x25] sm:$0xff] }
 0x106   : > { %v524_v62 = vpop.f32.mrf.mxu2 }
 0x107   : > { %v601_v63 = vpop.f32.mrf.mxu3  ;;  %v1074_v2 = vpop.f32.mrf.mxu0 }
 0x108   : > { %v602_v1 = vadd.f32 %v601_v63, %v524_v62  ;;  %v1413_v63 = vld [vmem:[%s2477_s20 + $0x5c] sm:$0xff] }
 0x109   : > { %v1164_v4 = vpop.f32.mrf.mxu1 }
 0x10a   : > { %v2926_v8 = vadd.f32 %v791_v55, %v602_v1  ;;  %2312 = vmatmul.msk.f32.gmra.mxu0 %vm292_vm0, %v1211_v3 }
 0x10b   : > { %2288 = vmatmul.msk.f32.gmra.mxu2 %vm292_vm0, %v1210_v52 }
 0x10c   : > { %2300 = vmatmul.msk.f32.gmra.mxu3 %vm292_vm0, %v1220_v57  ;;  %2324 = vmatmul.msk.f32.gmra.mxu1 %vm292_vm0, %v1221_v6 }
 0x10e   : > { %v874_v14 = vpop.f32.mrf.mxu2 }
 0x10f   : > { %v904_v16 = vadd.f32 %v874_v14, %v704_v13  ;;  %v964_v12 = vpop.f32.mrf.mxu3  ;;  %v1077_v23 = vpop.f32.mrf.mxu0  ;;  %v1604_v13 = vld [vmem:[%s2477_s20 + $0x15] sm:$0xff] }
 0x110   : > { %v994_v20 = vadd.f32 %v964_v12, %v2809_v10 }
 0x111   : > { %v2937_v26 = vadd.f32 %v1074_v2, %v904_v16  ;;  %v1167_v22 = vpop.f32.mrf.mxu1  ;;  %v1804_v16 = vld [vmem:[%s2477_s20 + $0x16] sm:$0xff] }
 0x112   : > { %v2940_v31 = vadd.f32 %v1164_v4, %v994_v20  ;;  %2313 = vmatmul.msk.f32.gmra.mxu0 %vm292_vm0, %v1212_v25  ;;  %v1814_v20 = vld [vmem:[%s2542_s10 + $0x16] sm:$0xff] }
 0x113   : > { %2289 = vmatmul.msk.f32.gmra.mxu2 %vm292_vm0, %v1211_v3  ;;  %v427_v3 = vadd.f32 %v2767_v49, %v2764_v47  ;;  %v1614_v49 = vld [vmem:[%s2542_s10 + $0x15] sm:$0xff] }
 0x114   : > { %2301 = vmatmul.msk.f32.gmra.mxu3 %vm292_vm0, %v1221_v6  ;;  %2325 = vmatmul.msk.f32.gmra.mxu1 %vm292_vm0, %v1222_v24 }
 0x115   : > { %v707_v18 = vadd.f32 %v2838_v28, %v427_v3  ;;  %v430_v28 = vadd.f32 %v2781_v56, %v2778_v54  ;;  %v1805_v54 = vld [vmem:[%s2477_s20 + $0x1e] sm:$0xff]  ;;  %v1607_v3 = vld [vmem:[%s2477_s20 + $0x2d] sm:$0xff] }
 0x116   : > { %v877_v10 = vpop.f32.mrf.mxu2 }
 0x117   : > { %v905_v34 = vadd.f32 %v877_v10, %v705_v61  ;;  %v967_v17 = vpop.f32.mrf.mxu3  ;;  %v1080_v37 = vpop.f32.mrf.mxu0  ;;  %v1605_v61 = vld [vmem:[%s2477_s20 + $0x1d] sm:$0xff] }
 0x118   : > { %v995_v19 = vadd.f32 %v967_v17, %v2827_v15 }
 0x119   : > { %v2951_v44 = vadd.f32 %v1077_v23, %v905_v34  ;;  %v1170_v30 = vpop.f32.mrf.mxu1  ;;  %v1615_v34 = vld [vmem:[%s2542_s10 + $0x1d] sm:$0xff] }
 0x11a   : > { %v2954_v45 = vadd.f32 %v1167_v22, %v995_v19  ;;  %2314 = vmatmul.msk.f32.gmra.mxu0 %vm292_vm0, %v1213_v40  ;;  %v1815_v19 = vld [vmem:[%s2542_s10 + $0x1e] sm:$0xff] }
 0x11b   : > { %2290 = vmatmul.msk.f32.gmra.mxu2 %vm292_vm0, %v1212_v25 }
 0x11c   : > { %2302 = vmatmul.msk.f32.gmra.mxu3 %vm292_vm0, %v1222_v24  ;;  %2326 = vmatmul.msk.f32.gmra.mxu1 %vm292_vm0, %v1223_v32 }
 0x11e   : > { %v880_v15 = vpop.f32.mrf.mxu2 }
 0x11f   : > { %v906_v52 = vadd.f32 %v880_v15, %v706_v5  ;;  %v970_v55 = vpop.f32.mrf.mxu3  ;;  %v1083_v62 = vpop.f32.mrf.mxu0  ;;  %v1806_v15 = vld [vmem:[%s2477_s20 + $0x26] sm:$0xff] }
 0x120   : > { %v996_v57 = vadd.f32 %v970_v55, %v2844_v36  ;;  %v1616_v55 = vld [vmem:[%s2542_s10 + $0x25] sm:$0xff] }
 0x121   : > { %v2965_v1 = vadd.f32 %v1080_v37, %v906_v52  ;;  %v1173_v39 = vpop.f32.mrf.mxu1 }
 0x122   : > { %v2968_v2 = vadd.f32 %v1170_v30, %v996_v57  ;;  %2315 = vmatmul.msk.f32.gmra.mxu0 %vm292_vm0, %v1413_v63 }
 0x123   : > { %2291 = vmatmul.msk.f32.gmra.mxu2 %vm292_vm0, %v1213_v40 }
 0x124   : > { %2303 = vmatmul.msk.f32.gmra.mxu3 %vm292_vm0, %v1223_v32  ;;  %2327 = vmatmul.msk.f32.gmra.mxu1 %vm292_vm0, %v1423_v41 }
 0x126   : > { %v883_v36 = vpop.f32.mrf.mxu2 }
 0x127   : > { %v907_v4 = vadd.f32 %v883_v36, %v707_v18  ;;  %v973_v6 = vpop.f32.mrf.mxu3  ;;  %v1086_v14 = vpop.f32.mrf.mxu0  ;;  %v1807_v36 = vld [vmem:[%s2477_s20 + $0x2e] sm:$0xff] }
 0x128   : > { %v997_v9 = vadd.f32 %v973_v6, %v2856_v51  ;;  %v708_v51 = vadd.f32 %v2850_v42, %v430_v28  ;;  %v709_v42 = vadd.f32 %v2862_v58, %v2725_v29  ;;  %v710_v29 = vadd.f32 %v2875_v7, %v2745_v38  ;;  %v1617_v6 = vld [vmem:[%s2542_s10 + $0x2d] sm:$0xff]  ;;  %v1808_v28 = vld [vmem:[%s2477_s20 + $0x36] sm:$0xff] }
 0x129   : > { %v2980_v47 = vadd.f32 %v1083_v62, %v907_v4  ;;  %v1176_v12 = vpop.f32.mrf.mxu1  ;;  %v1816_v62 = vld [vmem:[%s2542_s10 + $0x26] sm:$0xff]  ;;  %v711_v38 = vadd.f32 %v2891_v21, %v2762_v46  ;;  %v712_v46 = vadd.f32 %v2904_v35, %v2776_v53  ;;  %v713_v53 = vadd.f32 %v2914_v50, %v2790_v60 }
 0x12a   : > { %v2984_v23 = vadd.f32 %v1173_v39, %v997_v9  ;;  %2354 = vmatmul.msk.f32.vlgmr.msra.gmra.mxu0 %vm292_vm0, %v1804_v16 }
 0x12b   : > { %2330 = vmatmul.msk.f32.vlgmr.msra.gmra.mxu2 %vm292_vm0, %v1604_v13  ;;  %v1817_v13 = vld [vmem:[%s2542_s10 + $0x2e] sm:$0xff] }
 0x12c   : > { %2342 = vmatmul.msk.f32.vlgmr.msra.gmra.mxu3 %vm292_vm0, %v1614_v49  ;;  %2366 = vmatmul.msk.f32.vlgmr.msra.gmra.mxu1 %vm292_vm0, %v1814_v20 }
 0x12e   : > { %v886_v25 = vpop.f32.mrf.mxu2 }
 0x12f   : > { %v908_v22 = vadd.f32 %v886_v25, %v708_v51  ;;  %v976_v24 = vpop.f32.mrf.mxu3  ;;  %v1089_v10 = vpop.f32.mrf.mxu0  ;;  %v1618_v25 = vld [vmem:[%s2542_s10 + $0x35] sm:$0xff] }
 0x130   : > { %v998_v33 = vadd.f32 %v976_v24, %v2866_v0  ;;  %v1818_v24 = vld [vmem:[%s2542_s10 + $0x36] sm:$0xff] }
 0x131   : > { %v2996_v56 = vadd.f32 %v1086_v14, %v908_v22  ;;  %v1179_v17 = vpop.f32.mrf.mxu1 }
 0x132   : > { %v3000_v37 = vadd.f32 %v1176_v12, %v998_v33  ;;  %2355 = vmatmul.msk.f32.gmra.mxu0 %vm292_vm0, %v1805_v54  ;;  %v1608_v12 = vld [vmem:[%s2477_s20 + $0x35] sm:$0xff]  ;;  %v1609_v54 = vld [vmem:[%s2477_s20 + $0x3d] sm:$0xff] }
 0x133   : > { %2331 = vmatmul.msk.f32.gmra.mxu2 %vm292_vm0, %v1605_v61 }
 0x134   : > { %2343 = vmatmul.msk.f32.gmra.mxu3 %vm292_vm0, %v1615_v34  ;;  %2367 = vmatmul.msk.f32.gmra.mxu1 %vm292_vm0, %v1815_v19 }
 0x136   : > { %v889_v0 = vpop.f32.mrf.mxu2 }
 0x137   : > { %v909_v40 = vadd.f32 %v889_v0, %v709_v42  ;;  %v979_v30 = vpop.f32.mrf.mxu3  ;;  %v1092_v5 = vpop.f32.mrf.mxu0  ;;  %v1619_v42 = vld [vmem:[%s2542_s10 + $0x3d] sm:$0xff] }
 0x138   : > { %v999_v32 = vadd.f32 %v979_v30, %v2879_v11 }
 0x139   : > { %v3011_v52 = vadd.f32 %v1089_v10, %v909_v40  ;;  %v1182_v57 = vpop.f32.mrf.mxu1  ;;  %v1819_v40 = vld [vmem:[%s2542_s10 + $0x3e] sm:$0xff] }
 0x13a   : > { %v3015_v63 = vadd.f32 %v1179_v17, %v999_v32  ;;  %2356 = vmatmul.msk.f32.gmra.mxu0 %vm292_vm0, %v1806_v15  ;;  %v1809_v17 = vld [vmem:[%s2477_s20 + $0x3e] sm:$0xff] }
 0x13b   : > { %2332 = vmatmul.msk.f32.gmra.mxu2 %vm292_vm0, %v1606_v48 }
 0x13c   : > { %2344 = vmatmul.msk.f32.gmra.mxu3 %vm292_vm0, %v1616_v55  ;;  %2368 = vmatmul.msk.f32.gmra.mxu1 %vm292_vm0, %v1816_v62  ;;  %v1810_v55 = vld [vmem:[%s2477_s20 + $0x46] sm:$0xff] }
 0x13d   : > { %v1620_v62 = vld [vmem:[%s2542_s10 + $0x45] sm:$0xff] }
 0x13e   : > { %v892_v58 = vpop.f32.mrf.mxu2 }
 0x13f   : > { %v910_v11 = vadd.f32 %v892_v58, %v710_v29  ;;  %v982_v39 = vpop.f32.mrf.mxu3  ;;  %v1095_v18 = vpop.f32.mrf.mxu0  ;;  %v1820_v58 = vld [vmem:[%s2542_s10 + $0x46] sm:$0xff] }
 0x140   : > { %v1000_v41 = vadd.f32 %v982_v39, %v2895_v27 }
 0x141   : > { %v3026_v4 = vadd.f32 %v1092_v5, %v910_v11  ;;  %v1185_v9 = vpop.f32.mrf.mxu1  ;;  %v1610_v5 = vld [vmem:[%s2477_s20 + $0x45] sm:$0xff] }
 0x142   : > { %v3030_v14 = vadd.f32 %v1182_v57, %v1000_v41  ;;  %2357 = vmatmul.msk.f32.gmra.mxu0 %vm292_vm0, %v1807_v36  ;;  %v1611_v41 = vld [vmem:[%s2477_s20 + $0x4d] sm:$0xff] }
 0x143   : > { %2333 = vmatmul.msk.f32.gmra.mxu2 %vm292_vm0, %v1607_v3 }
 0x144   : > { %2345 = vmatmul.msk.f32.gmra.mxu3 %vm292_vm0, %v1617_v6  ;;  %2369 = vmatmul.msk.f32.gmra.mxu1 %vm292_vm0, %v1817_v13  ;;  %v1621_v6 = vld [vmem:[%s2542_s10 + $0x4d] sm:$0xff] }
 0x145   : > { %v1821_v13 = vld [vmem:[%s2542_s10 + $0x4e] sm:$0xff] }
 0x146   : > { %v895_v7 = vpop.f32.mrf.mxu2 }
 0x147   : > { %v911_v27 = vadd.f32 %v895_v7, %v711_v38  ;;  %v985_v16 = vpop.f32.mrf.mxu3  ;;  %v1098_v20 = vpop.f32.mrf.mxu0 }
 0x148   : > { %v1001_v49 = vadd.f32 %v985_v16, %v2908_v43  ;;  %v1612_v16 = vld [vmem:[%s2477_s20 + $0x55] sm:$0xff] }
 0x149   : > { %v3041_v51 = vadd.f32 %v1095_v18, %v911_v27  ;;  %v1188_v22 = vpop.f32.mrf.mxu1  ;;  %v1811_v18 = vld [vmem:[%s2477_s20 + $0x4e] sm:$0xff] }
 0x14a   : > { %v3045_v33 = vadd.f32 %v1185_v9, %v1001_v49  ;;  %2358 = vmatmul.msk.f32.gmra.mxu0 %vm292_vm0, %v1808_v28  ;;  %v1622_v28 = vld [vmem:[%s2542_s10 + $0x55] sm:$0xff] }
 0x14b   : > { %2334 = vmatmul.msk.f32.gmra.mxu2 %vm292_vm0, %v1608_v12  ;;  %v1812_v12 = vld [vmem:[%s2477_s20 + $0x56] sm:$0xff] }
 0x14c   : > { %2346 = vmatmul.msk.f32.gmra.mxu3 %vm292_vm0, %v1618_v25  ;;  %2370 = vmatmul.msk.f32.gmra.mxu1 %vm292_vm0, %v1818_v24 }
 0x14e   : > { %v898_v21 = vpop.f32.mrf.mxu2 }
 0x14f   : > { %v912_v43 = vadd.f32 %v898_v21, %v712_v46  ;;  %v988_v61 = vpop.f32.mrf.mxu3  ;;  %v1101_v34 = vpop.f32.mrf.mxu0 }
 0x150   : > { %v1002_v10 = vadd.f32 %v988_v61, %v2918_v59 }
 0x151   : > { %v3056_v19 = vadd.f32 %v1098_v20, %v912_v43  ;;  %v1191_v0 = vpop.f32.mrf.mxu1  ;;  %v1613_v43 = vld [vmem:[%s2477_s20 + $0x5d] sm:$0xff] }
 0x152   : > { %v3060_v30 = vadd.f32 %v1188_v22, %v1002_v10  ;;  %2359 = vmatmul.msk.f32.gmra.mxu0 %vm292_vm0, %v1809_v17  ;;  %v1822_v22 = vld [vmem:[%s2542_s10 + $0x56] sm:$0xff]  ;;  %v1813_v10 = vld [vmem:[%s2477_s20 + $0x5e] sm:$0xff] }
 0x153   : > { %2335 = vmatmul.msk.f32.gmra.mxu2 %vm292_vm0, %v1609_v54 }
 0x154   : > { %2347 = vmatmul.msk.f32.gmra.mxu3 %vm292_vm0, %v1619_v42  ;;  %2371 = vmatmul.msk.f32.gmra.mxu1 %vm292_vm0, %v1819_v40  ;;  %v1823_v42 = vld [vmem:[%s2542_s10 + $0x5e] sm:$0xff] }
 0x156   : > { %v901_v35 = vpop.f32.mrf.mxu2 }
 0x157   : > { %v913_v59 = vadd.f32 %v901_v35, %v713_v53  ;;  %v991_v32 = vpop.f32.mrf.mxu3  ;;  %v1474_v15 = vpop.f32.mrf.mxu0 }
 0x158   : > { %v1003_v48 = vadd.f32 %v991_v32, %v2926_v8 }
 0x159   : > { %v3071_v57 = vadd.f32 %v1101_v34, %v913_v59  ;;  %v1564_v29 = vpop.f32.mrf.mxu1  ;;  %v1623_v34 = vld [vmem:[%s2542_s10 + $0x5d] sm:$0xff] }
 0x15a   : > { %v3075_v11 = vadd.f32 %v1191_v0, %v1003_v48  ;;  %2360 = vmatmul.msk.f32.gmra.mxu0 %vm292_vm0, %v1810_v55 }
 0x15b   : > { %2336 = vmatmul.msk.f32.gmra.mxu2 %vm292_vm0, %v1610_v5 }
 0x15c   : > { %2348 = vmatmul.msk.f32.gmra.mxu3 %vm292_vm0, %v1620_v62  ;;  %2372 = vmatmul.msk.f32.gmra.mxu1 %vm292_vm0, %v1820_v58 }
 0x15e   : > { %v1274_v60 = vpop.f32.mrf.mxu2 }
 0x15f   : > { %v1304_v50 = vadd.f32 %v1274_v60, %v2937_v26  ;;  %v1364_v8 = vpop.f32.mrf.mxu3  ;;  %v1477_v3 = vpop.f32.mrf.mxu0 }
 0x160   : > { %v1394_v39 = vadd.f32 %v1364_v8, %v2940_v31 }
 0x161   : > { %v3085_v36 = vadd.f32 %v1474_v15, %v1304_v50  ;;  %v1567_v9 = vpop.f32.mrf.mxu1 }
 0x162   : > { %v3089_v38 = vadd.f32 %v1564_v29, %v1394_v39  ;;  %2361 = vmatmul.msk.f32.gmra.mxu0 %vm292_vm0, %v1811_v18 }
 0x163   : > { %2337 = vmatmul.msk.f32.gmra.mxu2 %vm292_vm0, %v1611_v41 }
 0x164   : > { %2349 = vmatmul.msk.f32.gmra.mxu3 %vm292_vm0, %v1621_v6  ;;  %2373 = vmatmul.msk.f32.gmra.mxu1 %vm292_vm0, %v1821_v13 }
 0x166   : > { %v1277_v26 = vpop.f32.mrf.mxu2 }
 0x167   : > { %v1305_v31 = vadd.f32 %v1277_v26, %v2951_v44  ;;  %v1367_v7 = vpop.f32.mrf.mxu3  ;;  %v1480_v49 = vpop.f32.mrf.mxu0 }
 0x168   : > { %v1395_v27 = vadd.f32 %v1367_v7, %v2954_v45 }
 0x169   : > { %v3099_v20 = vadd.f32 %v1477_v3, %v1305_v31  ;;  %v1570_v25 = vpop.f32.mrf.mxu1 }
 0x16a   : > { %v3103_v24 = vadd.f32 %v1567_v9, %v1395_v27  ;;  %2362 = vmatmul.msk.f32.gmra.mxu0 %vm292_vm0, %v1812_v12 }
 0x16b   : > { %2338 = vmatmul.msk.f32.gmra.mxu2 %vm292_vm0, %v1612_v16 }
 0x16c   : > { %2350 = vmatmul.msk.f32.gmra.mxu3 %vm292_vm0, %v1622_v28  ;;  %2374 = vmatmul.msk.f32.gmra.mxu1 %vm292_vm0, %v1822_v22 }
 0x16e   : > { %v1280_v44 = vpop.f32.mrf.mxu2 }
 0x16f   : > { %v1306_v45 = vadd.f32 %v1280_v44, %v2965_v1  ;;  %v1370_v46 = vpop.f32.mrf.mxu3  ;;  %v1483_v61 = vpop.f32.mrf.mxu0 }
 0x170   : > { %v1396_v21 = vadd.f32 %v1370_v46, %v2968_v2 }
 0x171   : > { %v3113_v54 = vadd.f32 %v1480_v49, %v1306_v45  ;;  %v1573_v17 = vpop.f32.mrf.mxu1 }
 0x172   : > { %v3117_v0 = vadd.f32 %v1570_v25, %v1396_v21  ;;  %2363 = vmatmul.msk.f32.gmra.mxu0 %vm292_vm0, %v1813_v10 }
 0x173   : > { %2339 = vmatmul.msk.f32.gmra.mxu2 %vm292_vm0, %v1613_v43 }
 0x174   : > { %2351 = vmatmul.msk.f32.gmra.mxu3 %vm292_vm0, %v1623_v34  ;;  %2375 = vmatmul.msk.f32.gmra.mxu1 %vm292_vm0, %v1823_v42 }
 0x176   : > { %v1283_v1 = vpop.f32.mrf.mxu2 }
 0x177   : > { %v1307_v2 = vadd.f32 %v1283_v1, %v2980_v47  ;;  %v1373_v40 = vpop.f32.mrf.mxu3  ;;  %v1486_v35 = vpop.f32.mrf.mxu0 }
 0x178   : > { %v1397_v53 = vadd.f32 %v1373_v40, %v2984_v23 }
 0x179   : > { %v3125_v59 = vadd.f32 %v1483_v61, %v1307_v2  ;;  %v1576_v32 = vpop.f32.mrf.mxu1 }
 0x17a   : > { %v3127_v48 = vadd.f32 %v1573_v17, %v1397_v53  ;;  %v3169_v53 = vld [vmem:[%s3233_s4] ss:$0 sm:$0xff] }
 0x17e   : > { %v1286_v5 = vpop.f32.mrf.mxu2 }
 0x17f   : > { %v1308_v15 = vadd.f32 %v1286_v5, %v2996_v56  ;;  %v1376_v55 = vpop.f32.mrf.mxu3  ;;  %v1489_v29 = vpop.f32.mrf.mxu0 }
 0x180   : > { %v1398_v62 = vadd.f32 %v1376_v55, %v3000_v37 }
 0x181   : > { %v3131_v58 = vadd.f32 %v1486_v35, %v1308_v15  ;;  %v1579_v60 = vpop.f32.mrf.mxu1 }
 0x182   : > { %v3133_v47 = vadd.f32 %v1576_v32, %v1398_v62 }
 0x186   : > { %v1289_v50 = vpop.f32.mrf.mxu2 }
 0x187   : > { %v1309_v23 = vadd.f32 %v1289_v50, %v3011_v52  ;;  %v1379_v8 = vpop.f32.mrf.mxu3  ;;  %v1492_v41 = vpop.f32.mrf.mxu0 }
 0x188   : > { %v1399_v39 = vadd.f32 %v1379_v8, %v3015_v63 }
 0x189   : > { %v3137_v3 = vadd.f32 %v1489_v29, %v1309_v23  ;;  %v1582_v18 = vpop.f32.mrf.mxu1 }
 0x18a   : > { %v3139_v56 = vadd.f32 %v1579_v60, %v1399_v39 }
 0x18e   : > { %v1292_v6 = vpop.f32.mrf.mxu2 }
 0x18f   : > { %v1310_v37 = vadd.f32 %v1292_v6, %v3026_v4  ;;  %v1382_v9 = vpop.f32.mrf.mxu3  ;;  %v1495_v26 = vpop.f32.mrf.mxu0 }
 0x190   : > { %v1400_v13 = vadd.f32 %v1382_v9, %v3030_v14 }
 0x191   : > { %v3143_v31 = vadd.f32 %v1492_v41, %v1310_v37  ;;  %v1585_v7 = vpop.f32.mrf.mxu1 }
 0x192   : > { %v3145_v52 = vadd.f32 %v1582_v18, %v1400_v13 }
 0x196   : > { %v1295_v27 = vpop.f32.mrf.mxu2 }
 0x197   : > { %v1311_v63 = vadd.f32 %v1295_v27, %v3041_v51  ;;  %v1385_v16 = vpop.f32.mrf.mxu3  ;;  %v1498_v12 = vpop.f32.mrf.mxu0 }
 0x198   : > { %v1401_v49 = vadd.f32 %v1385_v16, %v3045_v33 }
 0x199   : > { %v3149_v28 = vadd.f32 %v1495_v26, %v1311_v63  ;;  %v1588_v25 = vpop.f32.mrf.mxu1 }
 0x19a   : > { %v3151_v4 = vadd.f32 %v1585_v7, %v1401_v49 }
 0x19e   : > { %v1298_v22 = vpop.f32.mrf.mxu2 }
 0x19f   : > { %v1312_v14 = vadd.f32 %v1298_v22, %v3056_v19  ;;  %v1388_v44 = vpop.f32.mrf.mxu3  ;;  %v1501_v46 = vpop.f32.mrf.mxu0 }
 0x1a0   : > { %v1402_v45 = vadd.f32 %v1388_v44, %v3060_v30 }
 0x1a1   : > { %v3155_v21 = vadd.f32 %v1498_v12, %v1312_v14  ;;  %v1591_v43 = vpop.f32.mrf.mxu1 }
 0x1a2   : > { %v3157_v51 = vadd.f32 %v1588_v25, %v1402_v45 }
 0x1a6   : > { %v1301_v61 = vpop.f32.mrf.mxu2 }
 0x1a7   : > { %v1313_v33 = vadd.f32 %v1301_v61, %v3071_v57  ;;  %v1391_v10 = vpop.f32.mrf.mxu3  ;;  %v1874_v17 = vpop.f32.mrf.mxu0 }
 0x1a8   : > { %v1403_v34 = vadd.f32 %v1391_v10, %v3075_v11 }
 0x1a9   : > { %v3161_v42 = vadd.f32 %v1501_v46, %v1313_v33  ;;  %v1964_v19 = vpop.f32.mrf.mxu1 }
 0x1aa   : > { %v3163_v1 = vadd.f32 %v1591_v43, %v1403_v34 }
 0x1ae   : > { %v1674_v30 = vpop.f32.mrf.mxu2 }
 0x1af   : > { %v1704_v2 = vadd.f32 %v1674_v30, %v3085_v36  ;;  %v1764_v40 = vpop.f32.mrf.mxu3  ;;  %v1877_v57 = vpop.f32.mrf.mxu0 }
 0x1b0   : > { %v1794_v5 = vadd.f32 %v1764_v40, %v3089_v38 }
 0x1b1   : > { %v1904_v35 = vadd.f32 %v1874_v17, %v1704_v2  ;;  %v1967_v32 = vpop.f32.mrf.mxu1 }
 0x1b2   : > { %v1994_v60 = vadd.f32 %v1964_v19, %v1794_v5 }
 0x1b3   : > { %v2008_v11 = vadd.f32 %v3169_v53, %v1904_v35 }
 0x1b5   : > { %v2028_v15 = vmul.f32 0.2, %v2008_v11  ;;  %vm2018_vm1 = vcmp.ge.f32.partialorder %v2008_v11, 0.0 }
 0x1b6   : > { %v1677_v55 = vpop.f32.mrf.mxu2 }
 0x1b7   : > { %v2038_v62 = vsel %vm2018_vm1, %v2008_v11, %v2028_v15  ;;  %v1705_v36 = vadd.f32 %v1677_v55, %v3099_v20  ;;  %v1767_v29 = vpop.f32.mrf.mxu3  ;;  %v1880_v23 = vpop.f32.mrf.mxu0 }
 0x1b8   : > { %v2048_v50 = vmul.f32 1.4142135, %v2038_v62  ;;  %v1795_v6 = vadd.f32 %v1767_v29, %v3103_v24 }
 0x1b9   : > { %v1905_v8 = vadd.f32 %v1877_v57, %v1705_v36  ;;  %v1970_v39 = vpop.f32.mrf.mxu1 }
 0x1ba   : > { %v2058_v41 = vadd.f32 %v2048_v50, %v1994_v60  ;;  %v1995_v7 = vadd.f32 %v1967_v32, %v1795_v6 }
 0x1bb   : > { %v2009_v38 = vadd.f32 %v3169_v53, %v1905_v8 }
 0x1bc   : > { %v2068_v18 = vmul.f32 0.70710677, %v2058_v41 }
 0x1bd   : > { %v2029_v20 = vmul.f32 0.2, %v2009_v38  ;;  %vm2019_vm3 = vcmp.ge.f32.partialorder %v2009_v38, 0.0 }
 0x1be   : > { %2079 = vst.msk [vmem:[%s3178_s12] sm:$0xff] %vm2078_vm2, %v2068_v18  ;;  %v1680_v37 = vpop.f32.mrf.mxu2 }
 0x1bf   : > { %v2039_v9 = vsel %vm2019_vm3, %v2009_v38, %v2029_v20  ;;  %v1706_v13 = vadd.f32 %v1680_v37, %v3113_v54  ;;  %v1770_v26 = vpop.f32.mrf.mxu3  ;;  %v1883_v63 = vpop.f32.mrf.mxu0 }
 0x1c0   : > { %v2049_v27 = vmul.f32 1.4142135, %v2039_v9  ;;  %v1796_v24 = vadd.f32 %v1770_v26, %v3117_v0 }
 0x1c1   : > { %v1906_v16 = vadd.f32 %v1880_v23, %v1706_v13  ;;  %v1973_v49 = vpop.f32.mrf.mxu1 }
 0x1c2   : > { %v2059_v12 = vadd.f32 %v2049_v27, %v1995_v7  ;;  %v1996_v43 = vadd.f32 %v1970_v39, %v1796_v24 }
 0x1c3   : > { %v2010_v25 = vadd.f32 %v3169_v53, %v1906_v16 }
 0x1c4   : > { %v2069_v22 = vmul.f32 0.70710677, %v2059_v12 }
 0x1c5   : > { %v2030_v14 = vmul.f32 0.2, %v2010_v25  ;;  %vm2020_vm4 = vcmp.ge.f32.partialorder %v2010_v25, 0.0 }
 0x1c6   : > { %2080 = vst.msk [vmem:[%s3178_s12 + $0x8] sm:$0xff] %vm2078_vm2, %v2069_v22  ;;  %v1683_v44 = vpop.f32.mrf.mxu2 }
 0x1c7   : > { %v2040_v45 = vsel %vm2020_vm4, %v2010_v25, %v2030_v14  ;;  %v1707_v54 = vadd.f32 %v1683_v44, %v3125_v59  ;;  %v1773_v46 = vpop.f32.mrf.mxu3  ;;  %v1886_v33 = vpop.f32.mrf.mxu0 }
 0x1c8   : > { %v2050_v61 = vmul.f32 1.4142135, %v2040_v45  ;;  %v1797_v0 = vadd.f32 %v1773_v46, %v3127_v48 }
 0x1c9   : > { %v1907_v10 = vadd.f32 %v1883_v63, %v1707_v54  ;;  %v1976_v19 = vpop.f32.mrf.mxu1 }
 0x1ca   : > { %v2060_v34 = vadd.f32 %v2050_v61, %v1996_v43  ;;  %v1997_v32 = vadd.f32 %v1973_v49, %v1797_v0 }
 0x1cb   : > { %v2011_v17 = vadd.f32 %v3169_v53, %v1907_v10 }
 0x1cc   : > { %v2070_v30 = vmul.f32 0.70710677, %v2060_v34 }
 0x1cd   : > { %v2031_v2 = vmul.f32 0.2, %v2011_v17  ;;  %vm2021_vm5 = vcmp.ge.f32.partialorder %v2011_v17, 0.0 }
 0x1ce   : > { %2081 = vst.msk [vmem:[%s3178_s12 + $0x10] sm:$0xff] %vm2078_vm2, %v2070_v30  ;;  %v1686_v40 = vpop.f32.mrf.mxu2 }
 0x1cf   : > { %v2041_v57 = vsel %vm2021_vm5, %v2011_v17, %v2031_v2  ;;  %v1708_v59 = vadd.f32 %v1686_v40, %v3131_v58  ;;  %v1776_v35 = vpop.f32.mrf.mxu3  ;;  %v1889_v5 = vpop.f32.mrf.mxu0 }
 0x1d0   : > { %v2051_v11 = vmul.f32 1.4142135, %v2041_v57  ;;  %v1798_v48 = vadd.f32 %v1776_v35, %v3133_v47 }
 0x1d1   : > { %v1908_v15 = vadd.f32 %v1886_v33, %v1708_v59  ;;  %v1979_v60 = vpop.f32.mrf.mxu1 }
 0x1d2   : > { %v2061_v55 = vadd.f32 %v2051_v11, %v1997_v32  ;;  %v1998_v39 = vadd.f32 %v1976_v19, %v1798_v48 }
 0x1d3   : > { %v2012_v62 = vadd.f32 %v3169_v53, %v1908_v15 }
 0x1d4   : > { %v2071_v36 = vmul.f32 0.70710677, %v2061_v55 }
 0x1d5   : > { %v2032_v29 = vmul.f32 0.2, %v2012_v62  ;;  %vm2022_vm6 = vcmp.ge.f32.partialorder %v2012_v62, 0.0 }
 0x1d6   : > { %2082 = vst.msk [vmem:[%s3178_s12 + $0x18] sm:$0xff] %vm2078_vm2, %v2071_v36  ;;  %v1689_v50 = vpop.f32.mrf.mxu2 }
 0x1d7   : > { %v2042_v23 = vsel %vm2022_vm6, %v2012_v62, %v2032_v29  ;;  %v1709_v58 = vadd.f32 %v1689_v50, %v3137_v3  ;;  %v1779_v8 = vpop.f32.mrf.mxu3  ;;  %v1892_v38 = vpop.f32.mrf.mxu0 }
 0x1d8   : > { %v2052_v41 = vmul.f32 1.4142135, %v2042_v23  ;;  %v1799_v47 = vadd.f32 %v1779_v8, %v3139_v56 }
 0x1d9   : > { %v1909_v18 = vadd.f32 %v1889_v5, %v1709_v58  ;;  %v1982_v27 = vpop.f32.mrf.mxu1 }
 0x1da   : > { %v2062_v6 = vadd.f32 %v2052_v41, %v1998_v39  ;;  %v1999_v63 = vadd.f32 %v1979_v60, %v1799_v47 }
 0x1db   : > { %v2013_v20 = vadd.f32 %v3169_v53, %v1909_v18 }
 0x1dc   : > { %v2072_v37 = vmul.f32 0.70710677, %v2062_v6 }
 0x1dd   : > { %v2033_v9 = vmul.f32 0.2, %v2013_v20  ;;  %vm2023_vm7 = vcmp.ge.f32.partialorder %v2013_v20, 0.0 }
 0x1de   : > { %2083 = vst.msk [vmem:[%s3178_s12 + $0x20] sm:$0xff] %vm2078_vm2, %v2072_v37  ;;  %v1692_v13 = vpop.f32.mrf.mxu2 }
 0x1df   : > { %v2043_v26 = vsel %vm2023_vm7, %v2013_v20, %v2033_v9  ;;  %v1710_v3 = vadd.f32 %v1692_v13, %v3143_v31  ;;  %v1782_v7 = vpop.f32.mrf.mxu3  ;;  %v1895_v25 = vpop.f32.mrf.mxu0 }
 0x1e0   : > { %v2053_v16 = vmul.f32 1.4142135, %v2043_v26  ;;  %v1800_v56 = vadd.f32 %v1782_v7, %v3145_v52 }
 0x1e1   : > { %v1910_v49 = vadd.f32 %v1892_v38, %v1710_v3  ;;  %v1985_v33 = vpop.f32.mrf.mxu1 }
 0x1e2   : > { %v2063_v12 = vadd.f32 %v2053_v16, %v1999_v63  ;;  %v2000_v46 = vadd.f32 %v1982_v27, %v1800_v56 }
 0x1e3   : > { %v2014_v22 = vadd.f32 %v3169_v53, %v1910_v49 }
 0x1e4   : > { %v2073_v24 = vmul.f32 0.70710677, %v2063_v12 }
 0x1e5   : > { %v2034_v14 = vmul.f32 0.2, %v2014_v22  ;;  %vm2024_vm8 = vcmp.ge.f32.partialorder %v2014_v22, 0.0 }
 0x1e6   : > { %2084 = vst.msk [vmem:[%s3178_s12 + $0x28] sm:$0xff] %vm2078_vm2, %v2073_v24  ;;  %v1695_v44 = vpop.f32.mrf.mxu2 }
 0x1e7   : > { %v2044_v45 = vsel %vm2024_vm8, %v2014_v22, %v2034_v14  ;;  %v1711_v31 = vadd.f32 %v1695_v44, %v3149_v28  ;;  %v1785_v54 = vpop.f32.mrf.mxu3  ;;  %v1898_v19 = vpop.f32.mrf.mxu0 }
 0x1e8   : > { %v2054_v43 = vmul.f32 1.4142135, %v2044_v45  ;;  %v1801_v52 = vadd.f32 %v1785_v54, %v3151_v4 }
 0x1e9   : > { %v1911_v61 = vadd.f32 %v1895_v25, %v1711_v31  ;;  %v1988_v5 = vpop.f32.mrf.mxu1 }
 0x1ea   : > { %v2064_v10 = vadd.f32 %v2054_v43, %v2000_v46  ;;  %v2001_v57 = vadd.f32 %v1985_v33, %v1801_v52 }
 0x1eb   : > { %v2015_v34 = vadd.f32 %v3169_v53, %v1911_v61 }
 0x1ec   : > { %v2074_v17 = vmul.f32 0.70710677, %v2064_v10 }
 0x1ed   : > { %v2035_v30 = vmul.f32 0.2, %v2015_v34  ;;  %vm2025_vm9 = vcmp.ge.f32.partialorder %v2015_v34, 0.0 }
 0x1ee   : > { %2085 = vst.msk [vmem:[%s3178_s12 + $0x30] sm:$0xff] %vm2078_vm2, %v2074_v17  ;;  %v1698_v0 = vpop.f32.mrf.mxu2 }
 0x1ef   : > { %v2045_v2 = vsel %vm2025_vm9, %v2015_v34, %v2035_v30  ;;  %v1712_v28 = vadd.f32 %v1698_v0, %v3155_v21  ;;  %v1788_v40 = vpop.f32.mrf.mxu3  ;;  %v1901_v36 = vpop.f32.mrf.mxu0 }
 0x1f0   : > { %v2055_v59 = vmul.f32 1.4142135, %v2045_v2  ;;  %v1802_v4 = vadd.f32 %v1788_v40, %v3157_v51 }
 0x1f1   : > { %v1912_v35 = vadd.f32 %v1898_v19, %v1712_v28  ;;  %v1991_v38 = vpop.f32.mrf.mxu1 }
 0x1f2   : > { %v2065_v32 = vadd.f32 %v2055_v59, %v2001_v57  ;;  %v2002_v29 = vadd.f32 %v1988_v5, %v1802_v4 }
 0x1f3   : > { %v2016_v11 = vadd.f32 %v3169_v53, %v1912_v35 }
 0x1f4   : > { %v2075_v15 = vmul.f32 0.70710677, %v2065_v32 }
 0x1f5   : > { %v2036_v55 = vmul.f32 0.2, %v2016_v11  ;;  %vm2026_vm10 = vcmp.ge.f32.partialorder %v2016_v11, 0.0 }
 0x1f6   : > { %2086 = vst.msk [vmem:[%s3178_s12 + $0x38] sm:$0xff] %vm2078_vm2, %v2075_v15  ;;  %v1701_v62 = vpop.f32.mrf.mxu2 }
 0x1f7   : > { %v2046_v48 = vsel %vm2026_vm10, %v2016_v11, %v2036_v55  ;;  %v1713_v21 = vadd.f32 %v1701_v62, %v3161_v42  ;;  %v1791_v50 = vpop.f32.mrf.mxu3 }
 0x1f8   : > { %v2056_v60 = vmul.f32 1.4142135, %v2046_v48  ;;  %v1803_v51 = vadd.f32 %v1791_v50, %v3163_v1 }
 0x1f9   : > { %v1913_v23 = vadd.f32 %v1901_v36, %v1713_v21 }
 0x1fa   : > { %v2066_v58 = vadd.f32 %v2056_v60, %v2002_v29  ;;  %v2003_v6 = vadd.f32 %v1991_v38, %v1803_v51 }
 0x1fb   : > { %v2017_v8 = vadd.f32 %v3169_v53, %v1913_v23 }
 0x1fc   : > { %v2076_v39 = vmul.f32 0.70710677, %v2066_v58 }
 0x1fd   : > { %v2037_v41 = vmul.f32 0.2, %v2017_v8  ;;  %vm2027_vm11 = vcmp.ge.f32.partialorder %v2017_v8, 0.0 }
 0x1fe   : > { %2087 = vst.msk [vmem:[%s3178_s12 + $0x40] sm:$0xff] %vm2078_vm2, %v2076_v39 }
 0x1ff   : > { %v2047_v18 = vsel %vm2027_vm11, %v2017_v8, %v2037_v41 }
 0x200   : > { %v2057_v20 = vmul.f32 1.4142135, %v2047_v18 }
 0x202   : > { %v2067_v42 = vadd.f32 %v2057_v20, %v2003_v6 }
 0x204   : > { %v2077_v37 = vmul.f32 0.70710677, %v2067_v42 }
 0x206   : > { %2088 = vst.msk [vmem:[%s3178_s12 + $0x48] sm:$0xff] %vm2078_vm2, %v2077_v37 }
 0x207 PF: > { %s15_s18 = sadd.s32 1, %s2399_s18  }
 0x208   : > { %p12_p4 = scmp.ge.s32.totalorder %s15_s18, 4  }
 0x20a   :  { %14 = sbr.rel (!%p12_p4) target bundleno = 1 (0x1), region = 89 }

</bundles_post_ra>
